<compile_context>
chip_gen: v5e
topology: v5e:2x2
jax: 0.10.0
libtpu: 0.0.40
codegen_flags: <defaults>
</compile_context>

<pallas_src>
import math
import jax
import jax.numpy as jnp
from jax.experimental import pallas as pl
from jax.experimental.pallas import tpu as pltpu


# ------------------------------ kernel body --------------------------------

def _make_fclstm_kernel(n_layers, n_hist, n_pred, H):
    """Whole forward pass (encoder + decoder + projector) in one kernel body.

    refs layout:
      [0]                    x_seq   [n_hist, M, input_dim]   f32
      [1 : 1+L]              encoder fused weights, layer l: [d_l+H+1, 4H] bf16
      [1+L : 1+2L]           decoder fused weights
      [1+2L]                 w_p     [H, out_dim]             bf16
      [2+2L]                 b_p     [1, out_dim]             f32
      [3+2L]                 out     [n_pred, M, out_dim]     f32 (output)
    """
    def kernel(*refs):
        x_ref = refs[0]
        enc_w = refs[1:1 + n_layers]
        dec_w = refs[1 + n_layers:1 + 2 * n_layers]
        wp_ref = refs[1 + 2 * n_layers]
        bp_ref = refs[2 + 2 * n_layers]
        out_ref = refs[3 + 2 * n_layers]

        M = x_ref.shape[1]
        out_dim = out_ref.shape[2]

        # hoisted loop invariants
        ones_col = jnp.ones((M, 1), jnp.float32)     # bias lane of [x|h|1]
        wp = wp_ref[...]                              # [H, out_dim] bf16
        bp = bp_ref[...]                              # [1, out_dim] f32

        def cell(x_f32, h, c, w_ref):
            """One LSTM cell: single bf16 MXU dot + single full-width tanh.

            w_ref columns are (i,f,o,g)-permuted with i/f/o (and their bias)
            pre-scaled by 0.5, so sigmoid(z) = 0.5*tanh(col)+0.5 and the g
            column is tanh(col) directly.
            """
            xh1 = jnp.concatenate([x_f32, h, ones_col], axis=-1)   # [M, d+H+1]
            gates = jnp.dot(xh1.astype(jnp.bfloat16), w_ref[...],
                            preferred_element_type=jnp.float32)    # [M, 4H]
            t = jnp.tanh(gates)                       # one EUP pass, 4H lanes
            sig = 0.5 * t[:, :3 * H] + 0.5            # i | f | o
            g = t[:, 3 * H:]                          # g
            c_new = sig[:, H:2 * H] * c + sig[:, :H] * g
            h_new = sig[:, 2 * H:] * jnp.tanh(c_new)
            return h_new, c_new

        h = [jnp.zeros((M, H), jnp.float32) for _ in range(n_layers)]
        c = [jnp.zeros((M, H), jnp.float32) for _ in range(n_layers)]

        # ---- encoder: fully unrolled time loop over VMEM-resident x_seq ----
        for ts in range(n_hist):
            layer_in = x_ref[ts]                      # [M, input_dim] f32
            for l in range(n_layers):
                h[l], c[l] = cell(layer_in, h[l], c[l], enc_w[l])
                layer_in = h[l]

        # ---- decoder + projection: fully unrolled autoregressive loop ----
        dec_in = jnp.zeros((M, out_dim), jnp.float32)  # GO token = zeros
        for ts in range(n_pred):
            layer_in = dec_in
            for l in range(n_layers):
                h[l], c[l] = cell(layer_in, h[l], c[l], dec_w[l])
                layer_in = h[l]
            proj = jnp.dot(layer_in.astype(jnp.bfloat16), wp,
                           preferred_element_type=jnp.float32) + bp
            out_ref[ts] = proj                         # row ts, written once
            dec_in = proj                              # autoregressive feedback
    return kernel


def _const_spec(shape):
    """Whole-array block, constant index_map -> VMEM-resident for the call."""
    n = len(shape)
    return pl.BlockSpec(tuple(shape), lambda i, n=n: (0,) * n)


# --------------------------- parameter building ----------------------------

def init_fclstm_params(key, input_dim, output_dim, hidden_size, n_rnn_layers):
    """nn.LSTM / nn.Linear-equivalent params in natural (i,f,g,o) gate order,
    pre-transposed to [d_in, 4H] / [H, 4H]; b = b_ih + b_hh."""
    H = hidden_size
    k = 1.0 / math.sqrt(H)

    def uni(key, shape):
        return jax.random.uniform(key, shape, jnp.float32, -k, k)

    params = {"hidden_size": H, "encoder": [], "decoder": []}
    for which, in0 in (("encoder", input_dim), ("decoder", output_dim)):
        for layer in range(n_rnn_layers):
            d_in = in0 if layer == 0 else H
            key, k1, k2, k3, k4 = jax.random.split(key, 5)
            w_ih = uni(k1, (d_in, 4 * H))         # columns: i | f | g | o
            w_hh = uni(k2, (H, 4 * H))
            b = uni(k3, (1, 4 * H)) + uni(k4, (1, 4 * H))
            params[which].append((w_ih, w_hh, b))
    key, k1, k2 = jax.random.split(key, 3)
    w_p = jax.random.uniform(k1, (H, output_dim), jnp.float32, -k, k)
    b_p = jax.random.uniform(k2, (1, output_dim), jnp.float32, -k, k)
    params["proj"] = (w_p, b_p)
    return params


def _pack_lstm_layer(w_ih, w_hh, b, H):
    """Pack one LSTM layer for the kernel:
      * stack [w_ih; w_hh; b] -> [d_in + H + 1, 4H] (bias folded via '1' lane),
      * permute gate columns (i,f,g,o) -> (i,f,o,g),
      * pre-scale i/f/o columns (incl. bias row) by 0.5 so that
        sigmoid(z) == 0.5 * tanh(kernel_gate) + 0.5,
      * cast to bf16 (MXU operand dtype)."""
    perm = jnp.concatenate([jnp.arange(0, 2 * H),        # i, f
                            jnp.arange(3 * H, 4 * H),    # o
                            jnp.arange(2 * H, 3 * H)])   # g
    col_scale = jnp.concatenate([jnp.full((3 * H,), 0.5, jnp.float32),
                                 jnp.ones((H,), jnp.float32)])
    w = jnp.concatenate([w_ih, w_hh, b], axis=0)[:, perm] * col_scale[None, :]
    return w.astype(jnp.bfloat16)


# ------------------------------ forward pass -------------------------------

def fclstm_forward(inputs, params, n_pred):
    """inputs: [B, n_hist, N, input_dim] -> [B, n_pred, N, output_dim]."""
    B, n_hist, N, input_dim = inputs.shape
    M = B * N
    H = params["hidden_size"]
    enc, dec = params["encoder"], params["decoder"]
    w_p, b_p = params["proj"]
    out_dim = w_p.shape[1]
    n_layers = len(enc)

    # [B, n_hist, N, D] -> [n_hist, B*N, D]
    x_seq = (jnp.transpose(inputs, (1, 0, 2, 3))
             .reshape(n_hist, M, input_dim).astype(jnp.float32))

    # kernel-side packed weights (constant-folded under jit).
    enc_w = [_pack_lstm_layer(*layer, H) for layer in enc]
    dec_w = [_pack_lstm_layer(*layer, H) for layer in dec]
    wp_b16 = w_p.astype(jnp.bfloat16)
    bp_f32 = b_p.astype(jnp.float32)

    ops = [x_seq] + enc_w + dec_w + [wp_b16, bp_f32]

    out_seq = pl.pallas_call(
        _make_fclstm_kernel(n_layers, n_hist, n_pred, H),
        out_shape=jax.ShapeDtypeStruct((n_pred, M, out_dim), jnp.float32),
        grid=(1,),
        in_specs=[_const_spec(a.shape) for a in ops],
        out_specs=_const_spec((n_pred, M, out_dim)),
        compiler_params=pltpu.CompilerParams(
            dimension_semantics=("arbitrary",)),
    )(*ops)

    # [n_pred, B*N, out] -> [B, n_pred, N, out]
    out = out_seq.reshape(n_pred, B, N, out_dim)
    return jnp.transpose(out, (1, 0, 2, 3))


# --------------------------- pure-JAX reference ----------------------------

def fclstm_forward_ref(inputs, params, n_pred):
    """Same math as nn.LSTM / nn.Linear in plain f32 XLA ops (validation only)."""
    B, n_hist, N, input_dim = inputs.shape
    M = B * N
    H = params["hidden_size"]
    enc, dec = params["encoder"], params["decoder"]
    w_p, b_p = params["proj"]
    out_dim = w_p.shape[1]
    n_layers = len(enc)
    hp = jax.lax.Precision.HIGHEST

    def cell(x, h, c, w_ih, w_hh, b):
        gates = (jnp.dot(x, w_ih, precision=hp)
                 + jnp.dot(h, w_hh, precision=hp) + b)
        i = jax.nn.sigmoid(gates[:, :H])
        f = jax.nn.sigmoid(gates[:, H:2 * H])
        g = jnp.tanh(gates[:, 2 * H:3 * H])
        o = jax.nn.sigmoid(gates[:, 3 * H:])
        c_new = f * c + i * g
        h_new = o * jnp.tanh(c_new)
        return h_new, c_new

    x_seq = (jnp.transpose(inputs, (1, 0, 2, 3))
             .reshape(n_hist, M, input_dim).astype(jnp.float32))
    h = [jnp.zeros((M, H), jnp.float32) for _ in range(n_layers)]
    c = [jnp.zeros((M, H), jnp.float32) for _ in range(n_layers)]
    for t in range(n_hist):
        layer_in = x_seq[t]
        for l in range(n_layers):
            w_ih, w_hh, b = enc[l]
            h[l], c[l] = cell(layer_in, h[l], c[l], w_ih, w_hh, b)
            layer_in = h[l]
    dec_in = jnp.zeros((M, out_dim), jnp.float32)
    outs = []
    for t in range(n_pred):
        layer_in = dec_in
        for l in range(n_layers):
            w_ih, w_hh, b = dec[l]
            h[l], c[l] = cell(layer_in, h[l], c[l], w_ih, w_hh, b)
            layer_in = h[l]
        dec_in = jnp.dot(layer_in, w_p, precision=hp) + b_p
        outs.append(dec_in)
    out = jnp.stack(outs, 0).reshape(n_pred, B, N, out_dim)
    return jnp.transpose(out, (1, 0, 2, 3))


# ---------------------------------- main -----------------------------------

if __name__ == "__main__":
    # module hyper-params
    n_hist, n_pred = 8, 4
    hidden_size = 32
    n_rnn_layers = 2
    input_dim, output_dim = 4, 4
    # decay_steps only affects teacher forcing during training; unused at inference.

    # inputs
    B, N = 2, 16
    key = jax.random.PRNGKey(0)
    key, kx, kp = jax.random.split(key, 3)
    x = jax.random.normal(kx, (B, n_hist, N, input_dim), jnp.float32)

    params = init_fclstm_params(kp, input_dim, output_dim, hidden_size,
                                n_rnn_layers)

    fwd = jax.jit(lambda xx: fclstm_forward(xx, params, n_pred))
    y = fwd(x)
    jax.block_until_ready(y)
    assert y.shape == (B, n_pred, N, output_dim), y.shape
    assert bool(jnp.all(jnp.isfinite(y)))

    # Kernel uses bf16 MXU operands (f32 accumulation) vs. the f32 HIGHEST-
    # precision reference, and the error recirculates through 12 recurrent
    # steps, so the tolerance is slightly looser than the pure-f32 version.
    y_ref = fclstm_forward_ref(x, params, n_pred)
    assert bool(jnp.allclose(y, y_ref, atol=3e-2, rtol=2e-2)), \
        ("max abs err", float(jnp.max(jnp.abs(y - y_ref))))
    print("KERNEL_OK")
</pallas_src>

<mosaic_0001>
module attributes {stable_mosaic.version = 11 : i64} {
  func.func @kernel(%arg0: i32, %arg1: memref<8x32x4xf32, #tpu.memory_space<vmem>>, %arg2: memref<37x128xbf16, #tpu.memory_space<vmem>>, %arg3: memref<65x128xbf16, #tpu.memory_space<vmem>>, %arg4: memref<37x128xbf16, #tpu.memory_space<vmem>>, %arg5: memref<65x128xbf16, #tpu.memory_space<vmem>>, %arg6: memref<32x4xbf16, #tpu.memory_space<vmem>>, %arg7: memref<1x4xf32, #tpu.memory_space<vmem>>, %arg8: memref<4x32x4xf32, #tpu.memory_space<vmem>>) attributes {dimension_semantics = [#tpu.dimension_semantics<arbitrary>], iteration_bounds = array<i64: 1>, scalar_prefetch = 0 : i64, scratch_operands = 0 : i64, tpu.core_type = #tpu.core_type<tc>, window_params = [{pipeline_mode = #tpu.pipeline_mode<synchronous>, transform_indices = @transform_0, window_bounds = array<i64: 8, 32, 4>}, {pipeline_mode = #tpu.pipeline_mode<synchronous>, transform_indices = @transform_1, window_bounds = array<i64: 37, 128>}, {pipeline_mode = #tpu.pipeline_mode<synchronous>, transform_indices = @transform_2, window_bounds = array<i64: 65, 128>}, {pipeline_mode = #tpu.pipeline_mode<synchronous>, transform_indices = @transform_3, window_bounds = array<i64: 37, 128>}, {pipeline_mode = #tpu.pipeline_mode<synchronous>, transform_indices = @transform_4, window_bounds = array<i64: 65, 128>}, {pipeline_mode = #tpu.pipeline_mode<synchronous>, transform_indices = @transform_5, window_bounds = array<i64: 32, 4>}, {pipeline_mode = #tpu.pipeline_mode<synchronous>, transform_indices = @transform_6, window_bounds = array<i64: 1, 4>}, {pipeline_mode = #tpu.pipeline_mode<synchronous>, transform_indices = @transform_7, window_bounds = array<i64: 4, 32, 4>}]} {
    %cst = arith.constant 1.000000e+00 : f32
    %0 = vector.broadcast %cst : f32 to vector<32x1xf32>
    %c0 = arith.constant 0 : index
    %c0_0 = arith.constant 0 : index
    %1 = vector.load %arg6[%c0, %c0_0] : memref<32x4xbf16, #tpu.memory_space<vmem>>, vector<32x4xbf16>
    %c0_1 = arith.constant 0 : index
    %c0_2 = arith.constant 0 : index
    %2 = vector.load %arg7[%c0_1, %c0_2] : memref<1x4xf32, #tpu.memory_space<vmem>>, vector<1x4xf32>
    %cst_3 = arith.constant 0.000000e+00 : f32
    %3 = vector.broadcast %cst_3 : f32 to vector<32x32xf32>
    %cst_4 = arith.constant 0.000000e+00 : f32
    %4 = vector.broadcast %cst_4 : f32 to vector<32x32xf32>
    %cst_5 = arith.constant 0.000000e+00 : f32
    %5 = vector.broadcast %cst_5 : f32 to vector<32x32xf32>
    %cst_6 = arith.constant 0.000000e+00 : f32
    %6 = vector.broadcast %cst_6 : f32 to vector<32x32xf32>
    %c0_7 = arith.constant 0 : index
    %c0_8 = arith.constant 0 : index
    %c0_9 = arith.constant 0 : index
    %7 = vector.load %arg1[%c0_7, %c0_8, %c0_9] : memref<8x32x4xf32, #tpu.memory_space<vmem>>, vector<1x32x4xf32>
    %8 = vector.shape_cast %7 : vector<1x32x4xf32> to vector<32x4xf32>
    %9 = tpu.concatenate %8, %3, %0 in 1 : vector<32x4xf32>, vector<32x32xf32>, vector<32x1xf32> -> vector<32x37xf32>
    %10 = arith.truncf %9 : vector<32x37xf32> to vector<32x37xbf16>
    %c0_10 = arith.constant 0 : index
    %c0_11 = arith.constant 0 : index
    %11 = vector.load %arg2[%c0_10, %c0_11] : memref<37x128xbf16, #tpu.memory_space<vmem>>, vector<37x128xbf16>
    %cst_12 = arith.constant dense<0.000000e+00> : vector<32x128xf32>
    %12 = tpu.matmul %10, %11, %cst_12 {dimension_numbers = #tpu.dot_dimension_numbers<[1], [0], [0], [1], [0, 0, 1, 1], [], []>} : vector<32x37xbf16>, vector<37x128xbf16>, vector<32x128xf32> -> vector<32x128xf32>
    %13 = math.tanh %12 : vector<32x128xf32>
    %14 = vector.extract_strided_slice %13 {offsets = [0, 0], sizes = [32, 96], strides = [1, 1]} : vector<32x128xf32> to vector<32x96xf32>
    %cst_13 = arith.constant 5.000000e-01 : f32
    %15 = vector.broadcast %cst_13 : f32 to vector<32x96xf32>
    %16 = arith.mulf %15, %14 : vector<32x96xf32>
    %cst_14 = arith.constant 5.000000e-01 : f32
    %17 = vector.broadcast %cst_14 : f32 to vector<32x96xf32>
    %18 = arith.addf %16, %17 : vector<32x96xf32>
    %19 = vector.extract_strided_slice %13 {offsets = [0, 96], sizes = [32, 32], strides = [1, 1]} : vector<32x128xf32> to vector<32x32xf32>
    %20 = vector.extract_strided_slice %18 {offsets = [0, 32], sizes = [32, 32], strides = [1, 1]} : vector<32x96xf32> to vector<32x32xf32>
    %21 = arith.mulf %20, %5 : vector<32x32xf32>
    %22 = vector.extract_strided_slice %18 {offsets = [0, 0], sizes = [32, 32], strides = [1, 1]} : vector<32x96xf32> to vector<32x32xf32>
    %23 = arith.mulf %22, %19 : vector<32x32xf32>
    %24 = arith.addf %21, %23 : vector<32x32xf32>
    %25 = vector.extract_strided_slice %18 {offsets = [0, 64], sizes = [32, 32], strides = [1, 1]} : vector<32x96xf32> to vector<32x32xf32>
    %26 = math.tanh %24 : vector<32x32xf32>
    %27 = arith.mulf %25, %26 : vector<32x32xf32>
    %28 = tpu.concatenate %27, %4, %0 in 1 : vector<32x32xf32>, vector<32x32xf32>, vector<32x1xf32> -> vector<32x65xf32>
    %29 = arith.truncf %28 : vector<32x65xf32> to vector<32x65xbf16>
    %c0_15 = arith.constant 0 : index
    %c0_16 = arith.constant 0 : index
    %30 = vector.load %arg3[%c0_15, %c0_16] : memref<65x128xbf16, #tpu.memory_space<vmem>>, vector<65x128xbf16>
    %cst_17 = arith.constant dense<0.000000e+00> : vector<32x128xf32>
    %31 = tpu.matmul %29, %30, %cst_17 {dimension_numbers = #tpu.dot_dimension_numbers<[1], [0], [0], [1], [0, 0, 1, 1], [], []>} : vector<32x65xbf16>, vector<65x128xbf16>, vector<32x128xf32> -> vector<32x128xf32>
    %32 = math.tanh %31 : vector<32x128xf32>
    %33 = vector.extract_strided_slice %32 {offsets = [0, 0], sizes = [32, 96], strides = [1, 1]} : vector<32x128xf32> to vector<32x96xf32>
    %cst_18 = arith.constant 5.000000e-01 : f32
    %34 = vector.broadcast %cst_18 : f32 to vector<32x96xf32>
    %35 = arith.mulf %34, %33 : vector<32x96xf32>
    %cst_19 = arith.constant 5.000000e-01 : f32
    %36 = vector.broadcast %cst_19 : f32 to vector<32x96xf32>
    %37 = arith.addf %35, %36 : vector<32x96xf32>
    %38 = vector.extract_strided_slice %32 {offsets = [0, 96], sizes = [32, 32], strides = [1, 1]} : vector<32x128xf32> to vector<32x32xf32>
    %39 = vector.extract_strided_slice %37 {offsets = [0, 32], sizes = [32, 32], strides = [1, 1]} : vector<32x96xf32> to vector<32x32xf32>
    %40 = arith.mulf %39, %6 : vector<32x32xf32>
    %41 = vector.extract_strided_slice %37 {offsets = [0, 0], sizes = [32, 32], strides = [1, 1]} : vector<32x96xf32> to vector<32x32xf32>
    %42 = arith.mulf %41, %38 : vector<32x32xf32>
    %43 = arith.addf %40, %42 : vector<32x32xf32>
    %44 = vector.extract_strided_slice %37 {offsets = [0, 64], sizes = [32, 32], strides = [1, 1]} : vector<32x96xf32> to vector<32x32xf32>
    %45 = math.tanh %43 : vector<32x32xf32>
    %46 = arith.mulf %44, %45 : vector<32x32xf32>
    %c1 = arith.constant 1 : index
    %c0_20 = arith.constant 0 : index
    %c0_21 = arith.constant 0 : index
    %47 = vector.load %arg1[%c1, %c0_20, %c0_21] : memref<8x32x4xf32, #tpu.memory_space<vmem>>, vector<1x32x4xf32>
    %48 = vector.shape_cast %47 : vector<1x32x4xf32> to vector<32x4xf32>
    %49 = tpu.concatenate %48, %27, %0 in 1 : vector<32x4xf32>, vector<32x32xf32>, vector<32x1xf32> -> vector<32x37xf32>
    %50 = arith.truncf %49 : vector<32x37xf32> to vector<32x37xbf16>
    %c0_22 = arith.constant 0 : index
    %c0_23 = arith.constant 0 : index
    %51 = vector.load %arg2[%c0_22, %c0_23] : memref<37x128xbf16, #tpu.memory_space<vmem>>, vector<37x128xbf16>
    %cst_24 = arith.constant dense<0.000000e+00> : vector<32x128xf32>
    %52 = tpu.matmul %50, %51, %cst_24 {dimension_numbers = #tpu.dot_dimension_numbers<[1], [0], [0], [1], [0, 0, 1, 1], [], []>} : vector<32x37xbf16>, vector<37x128xbf16>, vector<32x128xf32> -> vector<32x128xf32>
    %53 = math.tanh %52 : vector<32x128xf32>
    %54 = vector.extract_strided_slice %53 {offsets = [0, 0], sizes = [32, 96], strides = [1, 1]} : vector<32x128xf32> to vector<32x96xf32>
    %cst_25 = arith.constant 5.000000e-01 : f32
    %55 = vector.broadcast %cst_25 : f32 to vector<32x96xf32>
    %56 = arith.mulf %55, %54 : vector<32x96xf32>
    %cst_26 = arith.constant 5.000000e-01 : f32
    %57 = vector.broadcast %cst_26 : f32 to vector<32x96xf32>
    %58 = arith.addf %56, %57 : vector<32x96xf32>
    %59 = vector.extract_strided_slice %53 {offsets = [0, 96], sizes = [32, 32], strides = [1, 1]} : vector<32x128xf32> to vector<32x32xf32>
    %60 = vector.extract_strided_slice %58 {offsets = [0, 32], sizes = [32, 32], strides = [1, 1]} : vector<32x96xf32> to vector<32x32xf32>
    %61 = arith.mulf %60, %24 : vector<32x32xf32>
    %62 = vector.extract_strided_slice %58 {offsets = [0, 0], sizes = [32, 32], strides = [1, 1]} : vector<32x96xf32> to vector<32x32xf32>
    %63 = arith.mulf %62, %59 : vector<32x32xf32>
    %64 = arith.addf %61, %63 : vector<32x32xf32>
    %65 = vector.extract_strided_slice %58 {offsets = [0, 64], sizes = [32, 32], strides = [1, 1]} : vector<32x96xf32> to vector<32x32xf32>
    %66 = math.tanh %64 : vector<32x32xf32>
    %67 = arith.mulf %65, %66 : vector<32x32xf32>
    %68 = tpu.concatenate %67, %46, %0 in 1 : vector<32x32xf32>, vector<32x32xf32>, vector<32x1xf32> -> vector<32x65xf32>
    %69 = arith.truncf %68 : vector<32x65xf32> to vector<32x65xbf16>
    %c0_27 = arith.constant 0 : index
    %c0_28 = arith.constant 0 : index
    %70 = vector.load %arg3[%c0_27, %c0_28] : memref<65x128xbf16, #tpu.memory_space<vmem>>, vector<65x128xbf16>
    %cst_29 = arith.constant dense<0.000000e+00> : vector<32x128xf32>
    %71 = tpu.matmul %69, %70, %cst_29 {dimension_numbers = #tpu.dot_dimension_numbers<[1], [0], [0], [1], [0, 0, 1, 1], [], []>} : vector<32x65xbf16>, vector<65x128xbf16>, vector<32x128xf32> -> vector<32x128xf32>
    %72 = math.tanh %71 : vector<32x128xf32>
    %73 = vector.extract_strided_slice %72 {offsets = [0, 0], sizes = [32, 96], strides = [1, 1]} : vector<32x128xf32> to vector<32x96xf32>
    %cst_30 = arith.constant 5.000000e-01 : f32
    %74 = vector.broadcast %cst_30 : f32 to vector<32x96xf32>
    %75 = arith.mulf %74, %73 : vector<32x96xf32>
    %cst_31 = arith.constant 5.000000e-01 : f32
    %76 = vector.broadcast %cst_31 : f32 to vector<32x96xf32>
    %77 = arith.addf %75, %76 : vector<32x96xf32>
    %78 = vector.extract_strided_slice %72 {offsets = [0, 96], sizes = [32, 32], strides = [1, 1]} : vector<32x128xf32> to vector<32x32xf32>
    %79 = vector.extract_strided_slice %77 {offsets = [0, 32], sizes = [32, 32], strides = [1, 1]} : vector<32x96xf32> to vector<32x32xf32>
    %80 = arith.mulf %79, %43 : vector<32x32xf32>
    %81 = vector.extract_strided_slice %77 {offsets = [0, 0], sizes = [32, 32], strides = [1, 1]} : vector<32x96xf32> to vector<32x32xf32>
    %82 = arith.mulf %81, %78 : vector<32x32xf32>
    %83 = arith.addf %80, %82 : vector<32x32xf32>
    %84 = vector.extract_strided_slice %77 {offsets = [0, 64], sizes = [32, 32], strides = [1, 1]} : vector<32x96xf32> to vector<32x32xf32>
    %85 = math.tanh %83 : vector<32x32xf32>
    %86 = arith.mulf %84, %85 : vector<32x32xf32>
    %c2 = arith.constant 2 : index
    %c0_32 = arith.constant 0 : index
    %c0_33 = arith.constant 0 : index
    %87 = vector.load %arg1[%c2, %c0_32, %c0_33] : memref<8x32x4xf32, #tpu.memory_space<vmem>>, vector<1x32x4xf32>
    %88 = vector.shape_cast %87 : vector<1x32x4xf32> to vector<32x4xf32>
    %89 = tpu.concatenate %88, %67, %0 in 1 : vector<32x4xf32>, vector<32x32xf32>, vector<32x1xf32> -> vector<32x37xf32>
    %90 = arith.truncf %89 : vector<32x37xf32> to vector<32x37xbf16>
    %c0_34 = arith.constant 0 : index
    %c0_35 = arith.constant 0 : index
    %91 = vector.load %arg2[%c0_34, %c0_35] : memref<37x128xbf16, #tpu.memory_space<vmem>>, vector<37x128xbf16>
    %cst_36 = arith.constant dense<0.000000e+00> : vector<32x128xf32>
    %92 = tpu.matmul %90, %91, %cst_36 {dimension_numbers = #tpu.dot_dimension_numbers<[1], [0], [0], [1], [0, 0, 1, 1], [], []>} : vector<32x37xbf16>, vector<37x128xbf16>, vector<32x128xf32> -> vector<32x128xf32>
    %93 = math.tanh %92 : vector<32x128xf32>
    %94 = vector.extract_strided_slice %93 {offsets = [0, 0], sizes = [32, 96], strides = [1, 1]} : vector<32x128xf32> to vector<32x96xf32>
    %cst_37 = arith.constant 5.000000e-01 : f32
    %95 = vector.broadcast %cst_37 : f32 to vector<32x96xf32>
    %96 = arith.mulf %95, %94 : vector<32x96xf32>
    %cst_38 = arith.constant 5.000000e-01 : f32
    %97 = vector.broadcast %cst_38 : f32 to vector<32x96xf32>
    %98 = arith.addf %96, %97 : vector<32x96xf32>
    %99 = vector.extract_strided_slice %93 {offsets = [0, 96], sizes = [32, 32], strides = [1, 1]} : vector<32x128xf32> to vector<32x32xf32>
    %100 = vector.extract_strided_slice %98 {offsets = [0, 32], sizes = [32, 32], strides = [1, 1]} : vector<32x96xf32> to vector<32x32xf32>
    %101 = arith.mulf %100, %64 : vector<32x32xf32>
    %102 = vector.extract_strided_slice %98 {offsets = [0, 0], sizes = [32, 32], strides = [1, 1]} : vector<32x96xf32> to vector<32x32xf32>
    %103 = arith.mulf %102, %99 : vector<32x32xf32>
    %104 = arith.addf %101, %103 : vector<32x32xf32>
    %105 = vector.extract_strided_slice %98 {offsets = [0, 64], sizes = [32, 32], strides = [1, 1]} : vector<32x96xf32> to vector<32x32xf32>
    %106 = math.tanh %104 : vector<32x32xf32>
    %107 = arith.mulf %105, %106 : vector<32x32xf32>
    %108 = tpu.concatenate %107, %86, %0 in 1 : vector<32x32xf32>, vector<32x32xf32>, vector<32x1xf32> -> vector<32x65xf32>
    %109 = arith.truncf %108 : vector<32x65xf32> to vector<32x65xbf16>
    %c0_39 = arith.constant 0 : index
    %c0_40 = arith.constant 0 : index
    %110 = vector.load %arg3[%c0_39, %c0_40] : memref<65x128xbf16, #tpu.memory_space<vmem>>, vector<65x128xbf16>
    %cst_41 = arith.constant dense<0.000000e+00> : vector<32x128xf32>
    %111 = tpu.matmul %109, %110, %cst_41 {dimension_numbers = #tpu.dot_dimension_numbers<[1], [0], [0], [1], [0, 0, 1, 1], [], []>} : vector<32x65xbf16>, vector<65x128xbf16>, vector<32x128xf32> -> vector<32x128xf32>
    %112 = math.tanh %111 : vector<32x128xf32>
    %113 = vector.extract_strided_slice %112 {offsets = [0, 0], sizes = [32, 96], strides = [1, 1]} : vector<32x128xf32> to vector<32x96xf32>
    %cst_42 = arith.constant 5.000000e-01 : f32
    %114 = vector.broadcast %cst_42 : f32 to vector<32x96xf32>
    %115 = arith.mulf %114, %113 : vector<32x96xf32>
    %cst_43 = arith.constant 5.000000e-01 : f32
    %116 = vector.broadcast %cst_43 : f32 to vector<32x96xf32>
    %117 = arith.addf %115, %116 : vector<32x96xf32>
    %118 = vector.extract_strided_slice %112 {offsets = [0, 96], sizes = [32, 32], strides = [1, 1]} : vector<32x128xf32> to vector<32x32xf32>
    %119 = vector.extract_strided_slice %117 {offsets = [0, 32], sizes = [32, 32], strides = [1, 1]} : vector<32x96xf32> to vector<32x32xf32>
    %120 = arith.mulf %119, %83 : vector<32x32xf32>
    %121 = vector.extract_strided_slice %117 {offsets = [0, 0], sizes = [32, 32], strides = [1, 1]} : vector<32x96xf32> to vector<32x32xf32>
    %122 = arith.mulf %121, %118 : vector<32x32xf32>
    %123 = arith.addf %120, %122 : vector<32x32xf32>
    %124 = vector.extract_strided_slice %117 {offsets = [0, 64], sizes = [32, 32], strides = [1, 1]} : vector<32x96xf32> to vector<32x32xf32>
    %125 = math.tanh %123 : vector<32x32xf32>
    %126 = arith.mulf %124, %125 : vector<32x32xf32>
    %c3 = arith.constant 3 : index
    %c0_44 = arith.constant 0 : index
    %c0_45 = arith.constant 0 : index
    %127 = vector.load %arg1[%c3, %c0_44, %c0_45] : memref<8x32x4xf32, #tpu.memory_space<vmem>>, vector<1x32x4xf32>
    %128 = vector.shape_cast %127 : vector<1x32x4xf32> to vector<32x4xf32>
    %129 = tpu.concatenate %128, %107, %0 in 1 : vector<32x4xf32>, vector<32x32xf32>, vector<32x1xf32> -> vector<32x37xf32>
    %130 = arith.truncf %129 : vector<32x37xf32> to vector<32x37xbf16>
    %c0_46 = arith.constant 0 : index
    %c0_47 = arith.constant 0 : index
    %131 = vector.load %arg2[%c0_46, %c0_47] : memref<37x128xbf16, #tpu.memory_space<vmem>>, vector<37x128xbf16>
    %cst_48 = arith.constant dense<0.000000e+00> : vector<32x128xf32>
    %132 = tpu.matmul %130, %131, %cst_48 {dimension_numbers = #tpu.dot_dimension_numbers<[1], [0], [0], [1], [0, 0, 1, 1], [], []>} : vector<32x37xbf16>, vector<37x128xbf16>, vector<32x128xf32> -> vector<32x128xf32>
    %133 = math.tanh %132 : vector<32x128xf32>
    %134 = vector.extract_strided_slice %133 {offsets = [0, 0], sizes = [32, 96], strides = [1, 1]} : vector<32x128xf32> to vector<32x96xf32>
    %cst_49 = arith.constant 5.000000e-01 : f32
    %135 = vector.broadcast %cst_49 : f32 to vector<32x96xf32>
    %136 = arith.mulf %135, %134 : vector<32x96xf32>
    %cst_50 = arith.constant 5.000000e-01 : f32
    %137 = vector.broadcast %cst_50 : f32 to vector<32x96xf32>
    %138 = arith.addf %136, %137 : vector<32x96xf32>
    %139 = vector.extract_strided_slice %133 {offsets = [0, 96], sizes = [32, 32], strides = [1, 1]} : vector<32x128xf32> to vector<32x32xf32>
    %140 = vector.extract_strided_slice %138 {offsets = [0, 32], sizes = [32, 32], strides = [1, 1]} : vector<32x96xf32> to vector<32x32xf32>
    %141 = arith.mulf %140, %104 : vector<32x32xf32>
    %142 = vector.extract_strided_slice %138 {offsets = [0, 0], sizes = [32, 32], strides = [1, 1]} : vector<32x96xf32> to vector<32x32xf32>
    %143 = arith.mulf %142, %139 : vector<32x32xf32>
    %144 = arith.addf %141, %143 : vector<32x32xf32>
    %145 = vector.extract_strided_slice %138 {offsets = [0, 64], sizes = [32, 32], strides = [1, 1]} : vector<32x96xf32> to vector<32x32xf32>
    %146 = math.tanh %144 : vector<32x32xf32>
    %147 = arith.mulf %145, %146 : vector<32x32xf32>
    %148 = tpu.concatenate %147, %126, %0 in 1 : vector<32x32xf32>, vector<32x32xf32>, vector<32x1xf32> -> vector<32x65xf32>
    %149 = arith.truncf %148 : vector<32x65xf32> to vector<32x65xbf16>
    %c0_51 = arith.constant 0 : index
    %c0_52 = arith.constant 0 : index
    %150 = vector.load %arg3[%c0_51, %c0_52] : memref<65x128xbf16, #tpu.memory_space<vmem>>, vector<65x128xbf16>
    %cst_53 = arith.constant dense<0.000000e+00> : vector<32x128xf32>
    %151 = tpu.matmul %149, %150, %cst_53 {dimension_numbers = #tpu.dot_dimension_numbers<[1], [0], [0], [1], [0, 0, 1, 1], [], []>} : vector<32x65xbf16>, vector<65x128xbf16>, vector<32x128xf32> -> vector<32x128xf32>
    %152 = math.tanh %151 : vector<32x128xf32>
    %153 = vector.extract_strided_slice %152 {offsets = [0, 0], sizes = [32, 96], strides = [1, 1]} : vector<32x128xf32> to vector<32x96xf32>
    %cst_54 = arith.constant 5.000000e-01 : f32
    %154 = vector.broadcast %cst_54 : f32 to vector<32x96xf32>
    %155 = arith.mulf %154, %153 : vector<32x96xf32>
    %cst_55 = arith.constant 5.000000e-01 : f32
    %156 = vector.broadcast %cst_55 : f32 to vector<32x96xf32>
    %157 = arith.addf %155, %156 : vector<32x96xf32>
    %158 = vector.extract_strided_slice %152 {offsets = [0, 96], sizes = [32, 32], strides = [1, 1]} : vector<32x128xf32> to vector<32x32xf32>
    %159 = vector.extract_strided_slice %157 {offsets = [0, 32], sizes = [32, 32], strides = [1, 1]} : vector<32x96xf32> to vector<32x32xf32>
    %160 = arith.mulf %159, %123 : vector<32x32xf32>
    %161 = vector.extract_strided_slice %157 {offsets = [0, 0], sizes = [32, 32], strides = [1, 1]} : vector<32x96xf32> to vector<32x32xf32>
    %162 = arith.mulf %161, %158 : vector<32x32xf32>
    %163 = arith.addf %160, %162 : vector<32x32xf32>
    %164 = vector.extract_strided_slice %157 {offsets = [0, 64], sizes = [32, 32], strides = [1, 1]} : vector<32x96xf32> to vector<32x32xf32>
    %165 = math.tanh %163 : vector<32x32xf32>
    %166 = arith.mulf %164, %165 : vector<32x32xf32>
    %c4 = arith.constant 4 : index
    %c0_56 = arith.constant 0 : index
    %c0_57 = arith.constant 0 : index
    %167 = vector.load %arg1[%c4, %c0_56, %c0_57] : memref<8x32x4xf32, #tpu.memory_space<vmem>>, vector<1x32x4xf32>
    %168 = vector.shape_cast %167 : vector<1x32x4xf32> to vector<32x4xf32>
    %169 = tpu.concatenate %168, %147, %0 in 1 : vector<32x4xf32>, vector<32x32xf32>, vector<32x1xf32> -> vector<32x37xf32>
    %170 = arith.truncf %169 : vector<32x37xf32> to vector<32x37xbf16>
    %c0_58 = arith.constant 0 : index
    %c0_59 = arith.constant 0 : index
    %171 = vector.load %arg2[%c0_58, %c0_59] : memref<37x128xbf16, #tpu.memory_space<vmem>>, vector<37x128xbf16>
    %cst_60 = arith.constant dense<0.000000e+00> : vector<32x128xf32>
    %172 = tpu.matmul %170, %171, %cst_60 {dimension_numbers = #tpu.dot_dimension_numbers<[1], [0], [0], [1], [0, 0, 1, 1], [], []>} : vector<32x37xbf16>, vector<37x128xbf16>, vector<32x128xf32> -> vector<32x128xf32>
    %173 = math.tanh %172 : vector<32x128xf32>
    %174 = vector.extract_strided_slice %173 {offsets = [0, 0], sizes = [32, 96], strides = [1, 1]} : vector<32x128xf32> to vector<32x96xf32>
    %cst_61 = arith.constant 5.000000e-01 : f32
    %175 = vector.broadcast %cst_61 : f32 to vector<32x96xf32>
    %176 = arith.mulf %175, %174 : vector<32x96xf32>
    %cst_62 = arith.constant 5.000000e-01 : f32
    %177 = vector.broadcast %cst_62 : f32 to vector<32x96xf32>
    %178 = arith.addf %176, %177 : vector<32x96xf32>
    %179 = vector.extract_strided_slice %173 {offsets = [0, 96], sizes = [32, 32], strides = [1, 1]} : vector<32x128xf32> to vector<32x32xf32>
    %180 = vector.extract_strided_slice %178 {offsets = [0, 32], sizes = [32, 32], strides = [1, 1]} : vector<32x96xf32> to vector<32x32xf32>
    %181 = arith.mulf %180, %144 : vector<32x32xf32>
    %182 = vector.extract_strided_slice %178 {offsets = [0, 0], sizes = [32, 32], strides = [1, 1]} : vector<32x96xf32> to vector<32x32xf32>
    %183 = arith.mulf %182, %179 : vector<32x32xf32>
    %184 = arith.addf %181, %183 : vector<32x32xf32>
    %185 = vector.extract_strided_slice %178 {offsets = [0, 64], sizes = [32, 32], strides = [1, 1]} : vector<32x96xf32> to vector<32x32xf32>
    %186 = math.tanh %184 : vector<32x32xf32>
    %187 = arith.mulf %185, %186 : vector<32x32xf32>
    %188 = tpu.concatenate %187, %166, %0 in 1 : vector<32x32xf32>, vector<32x32xf32>, vector<32x1xf32> -> vector<32x65xf32>
    %189 = arith.truncf %188 : vector<32x65xf32> to vector<32x65xbf16>
    %c0_63 = arith.constant 0 : index
    %c0_64 = arith.constant 0 : index
    %190 = vector.load %arg3[%c0_63, %c0_64] : memref<65x128xbf16, #tpu.memory_space<vmem>>, vector<65x128xbf16>
    %cst_65 = arith.constant dense<0.000000e+00> : vector<32x128xf32>
    %191 = tpu.matmul %189, %190, %cst_65 {dimension_numbers = #tpu.dot_dimension_numbers<[1], [0], [0], [1], [0, 0, 1, 1], [], []>} : vector<32x65xbf16>, vector<65x128xbf16>, vector<32x128xf32> -> vector<32x128xf32>
    %192 = math.tanh %191 : vector<32x128xf32>
    %193 = vector.extract_strided_slice %192 {offsets = [0, 0], sizes = [32, 96], strides = [1, 1]} : vector<32x128xf32> to vector<32x96xf32>
    %cst_66 = arith.constant 5.000000e-01 : f32
    %194 = vector.broadcast %cst_66 : f32 to vector<32x96xf32>
    %195 = arith.mulf %194, %193 : vector<32x96xf32>
    %cst_67 = arith.constant 5.000000e-01 : f32
    %196 = vector.broadcast %cst_67 : f32 to vector<32x96xf32>
    %197 = arith.addf %195, %196 : vector<32x96xf32>
    %198 = vector.extract_strided_slice %192 {offsets = [0, 96], sizes = [32, 32], strides = [1, 1]} : vector<32x128xf32> to vector<32x32xf32>
    %199 = vector.extract_strided_slice %197 {offsets = [0, 32], sizes = [32, 32], strides = [1, 1]} : vector<32x96xf32> to vector<32x32xf32>
    %200 = arith.mulf %199, %163 : vector<32x32xf32>
    %201 = vector.extract_strided_slice %197 {offsets = [0, 0], sizes = [32, 32], strides = [1, 1]} : vector<32x96xf32> to vector<32x32xf32>
    %202 = arith.mulf %201, %198 : vector<32x32xf32>
    %203 = arith.addf %200, %202 : vector<32x32xf32>
    %204 = vector.extract_strided_slice %197 {offsets = [0, 64], sizes = [32, 32], strides = [1, 1]} : vector<32x96xf32> to vector<32x32xf32>
    %205 = math.tanh %203 : vector<32x32xf32>
    %206 = arith.mulf %204, %205 : vector<32x32xf32>
    %c5 = arith.constant 5 : index
    %c0_68 = arith.constant 0 : index
    %c0_69 = arith.constant 0 : index
    %207 = vector.load %arg1[%c5, %c0_68, %c0_69] : memref<8x32x4xf32, #tpu.memory_space<vmem>>, vector<1x32x4xf32>
    %208 = vector.shape_cast %207 : vector<1x32x4xf32> to vector<32x4xf32>
    %209 = tpu.concatenate %208, %187, %0 in 1 : vector<32x4xf32>, vector<32x32xf32>, vector<32x1xf32> -> vector<32x37xf32>
    %210 = arith.truncf %209 : vector<32x37xf32> to vector<32x37xbf16>
    %c0_70 = arith.constant 0 : index
    %c0_71 = arith.constant 0 : index
    %211 = vector.load %arg2[%c0_70, %c0_71] : memref<37x128xbf16, #tpu.memory_space<vmem>>, vector<37x128xbf16>
    %cst_72 = arith.constant dense<0.000000e+00> : vector<32x128xf32>
    %212 = tpu.matmul %210, %211, %cst_72 {dimension_numbers = #tpu.dot_dimension_numbers<[1], [0], [0], [1], [0, 0, 1, 1], [], []>} : vector<32x37xbf16>, vector<37x128xbf16>, vector<32x128xf32> -> vector<32x128xf32>
    %213 = math.tanh %212 : vector<32x128xf32>
    %214 = vector.extract_strided_slice %213 {offsets = [0, 0], sizes = [32, 96], strides = [1, 1]} : vector<32x128xf32> to vector<32x96xf32>
    %cst_73 = arith.constant 5.000000e-01 : f32
    %215 = vector.broadcast %cst_73 : f32 to vector<32x96xf32>
    %216 = arith.mulf %215, %214 : vector<32x96xf32>
    %cst_74 = arith.constant 5.000000e-01 : f32
    %217 = vector.broadcast %cst_74 : f32 to vector<32x96xf32>
    %218 = arith.addf %216, %217 : vector<32x96xf32>
    %219 = vector.extract_strided_slice %213 {offsets = [0, 96], sizes = [32, 32], strides = [1, 1]} : vector<32x128xf32> to vector<32x32xf32>
    %220 = vector.extract_strided_slice %218 {offsets = [0, 32], sizes = [32, 32], strides = [1, 1]} : vector<32x96xf32> to vector<32x32xf32>
    %221 = arith.mulf %220, %184 : vector<32x32xf32>
    %222 = vector.extract_strided_slice %218 {offsets = [0, 0], sizes = [32, 32], strides = [1, 1]} : vector<32x96xf32> to vector<32x32xf32>
    %223 = arith.mulf %222, %219 : vector<32x32xf32>
    %224 = arith.addf %221, %223 : vector<32x32xf32>
    %225 = vector.extract_strided_slice %218 {offsets = [0, 64], sizes = [32, 32], strides = [1, 1]} : vector<32x96xf32> to vector<32x32xf32>
    %226 = math.tanh %224 : vector<32x32xf32>
    %227 = arith.mulf %225, %226 : vector<32x32xf32>
    %228 = tpu.concatenate %227, %206, %0 in 1 : vector<32x32xf32>, vector<32x32xf32>, vector<32x1xf32> -> vector<32x65xf32>
    %229 = arith.truncf %228 : vector<32x65xf32> to vector<32x65xbf16>
    %c0_75 = arith.constant 0 : index
    %c0_76 = arith.constant 0 : index
    %230 = vector.load %arg3[%c0_75, %c0_76] : memref<65x128xbf16, #tpu.memory_space<vmem>>, vector<65x128xbf16>
    %cst_77 = arith.constant dense<0.000000e+00> : vector<32x128xf32>
    %231 = tpu.matmul %229, %230, %cst_77 {dimension_numbers = #tpu.dot_dimension_numbers<[1], [0], [0], [1], [0, 0, 1, 1], [], []>} : vector<32x65xbf16>, vector<65x128xbf16>, vector<32x128xf32> -> vector<32x128xf32>
    %232 = math.tanh %231 : vector<32x128xf32>
    %233 = vector.extract_strided_slice %232 {offsets = [0, 0], sizes = [32, 96], strides = [1, 1]} : vector<32x128xf32> to vector<32x96xf32>
    %cst_78 = arith.constant 5.000000e-01 : f32
    %234 = vector.broadcast %cst_78 : f32 to vector<32x96xf32>
    %235 = arith.mulf %234, %233 : vector<32x96xf32>
    %cst_79 = arith.constant 5.000000e-01 : f32
    %236 = vector.broadcast %cst_79 : f32 to vector<32x96xf32>
    %237 = arith.addf %235, %236 : vector<32x96xf32>
    %238 = vector.extract_strided_slice %232 {offsets = [0, 96], sizes = [32, 32], strides = [1, 1]} : vector<32x128xf32> to vector<32x32xf32>
    %239 = vector.extract_strided_slice %237 {offsets = [0, 32], sizes = [32, 32], strides = [1, 1]} : vector<32x96xf32> to vector<32x32xf32>
    %240 = arith.mulf %239, %203 : vector<32x32xf32>
    %241 = vector.extract_strided_slice %237 {offsets = [0, 0], sizes = [32, 32], strides = [1, 1]} : vector<32x96xf32> to vector<32x32xf32>
    %242 = arith.mulf %241, %238 : vector<32x32xf32>
    %243 = arith.addf %240, %242 : vector<32x32xf32>
    %244 = vector.extract_strided_slice %237 {offsets = [0, 64], sizes = [32, 32], strides = [1, 1]} : vector<32x96xf32> to vector<32x32xf32>
    %245 = math.tanh %243 : vector<32x32xf32>
    %246 = arith.mulf %244, %245 : vector<32x32xf32>
    %c6 = arith.constant 6 : index
    %c0_80 = arith.constant 0 : index
    %c0_81 = arith.constant 0 : index
    %247 = vector.load %arg1[%c6, %c0_80, %c0_81] : memref<8x32x4xf32, #tpu.memory_space<vmem>>, vector<1x32x4xf32>
    %248 = vector.shape_cast %247 : vector<1x32x4xf32> to vector<32x4xf32>
    %249 = tpu.concatenate %248, %227, %0 in 1 : vector<32x4xf32>, vector<32x32xf32>, vector<32x1xf32> -> vector<32x37xf32>
    %250 = arith.truncf %249 : vector<32x37xf32> to vector<32x37xbf16>
    %c0_82 = arith.constant 0 : index
    %c0_83 = arith.constant 0 : index
    %251 = vector.load %arg2[%c0_82, %c0_83] : memref<37x128xbf16, #tpu.memory_space<vmem>>, vector<37x128xbf16>
    %cst_84 = arith.constant dense<0.000000e+00> : vector<32x128xf32>
    %252 = tpu.matmul %250, %251, %cst_84 {dimension_numbers = #tpu.dot_dimension_numbers<[1], [0], [0], [1], [0, 0, 1, 1], [], []>} : vector<32x37xbf16>, vector<37x128xbf16>, vector<32x128xf32> -> vector<32x128xf32>
    %253 = math.tanh %252 : vector<32x128xf32>
    %254 = vector.extract_strided_slice %253 {offsets = [0, 0], sizes = [32, 96], strides = [1, 1]} : vector<32x128xf32> to vector<32x96xf32>
    %cst_85 = arith.constant 5.000000e-01 : f32
    %255 = vector.broadcast %cst_85 : f32 to vector<32x96xf32>
    %256 = arith.mulf %255, %254 : vector<32x96xf32>
    %cst_86 = arith.constant 5.000000e-01 : f32
    %257 = vector.broadcast %cst_86 : f32 to vector<32x96xf32>
    %258 = arith.addf %256, %257 : vector<32x96xf32>
    %259 = vector.extract_strided_slice %253 {offsets = [0, 96], sizes = [32, 32], strides = [1, 1]} : vector<32x128xf32> to vector<32x32xf32>
    %260 = vector.extract_strided_slice %258 {offsets = [0, 32], sizes = [32, 32], strides = [1, 1]} : vector<32x96xf32> to vector<32x32xf32>
    %261 = arith.mulf %260, %224 : vector<32x32xf32>
    %262 = vector.extract_strided_slice %258 {offsets = [0, 0], sizes = [32, 32], strides = [1, 1]} : vector<32x96xf32> to vector<32x32xf32>
    %263 = arith.mulf %262, %259 : vector<32x32xf32>
    %264 = arith.addf %261, %263 : vector<32x32xf32>
    %265 = vector.extract_strided_slice %258 {offsets = [0, 64], sizes = [32, 32], strides = [1, 1]} : vector<32x96xf32> to vector<32x32xf32>
    %266 = math.tanh %264 : vector<32x32xf32>
    %267 = arith.mulf %265, %266 : vector<32x32xf32>
    %268 = tpu.concatenate %267, %246, %0 in 1 : vector<32x32xf32>, vector<32x32xf32>, vector<32x1xf32> -> vector<32x65xf32>
    %269 = arith.truncf %268 : vector<32x65xf32> to vector<32x65xbf16>
    %c0_87 = arith.constant 0 : index
    %c0_88 = arith.constant 0 : index
    %270 = vector.load %arg3[%c0_87, %c0_88] : memref<65x128xbf16, #tpu.memory_space<vmem>>, vector<65x128xbf16>
    %cst_89 = arith.constant dense<0.000000e+00> : vector<32x128xf32>
    %271 = tpu.matmul %269, %270, %cst_89 {dimension_numbers = #tpu.dot_dimension_numbers<[1], [0], [0], [1], [0, 0, 1, 1], [], []>} : vector<32x65xbf16>, vector<65x128xbf16>, vector<32x128xf32> -> vector<32x128xf32>
    %272 = math.tanh %271 : vector<32x128xf32>
    %273 = vector.extract_strided_slice %272 {offsets = [0, 0], sizes = [32, 96], strides = [1, 1]} : vector<32x128xf32> to vector<32x96xf32>
    %cst_90 = arith.constant 5.000000e-01 : f32
    %274 = vector.broadcast %cst_90 : f32 to vector<32x96xf32>
    %275 = arith.mulf %274, %273 : vector<32x96xf32>
    %cst_91 = arith.constant 5.000000e-01 : f32
    %276 = vector.broadcast %cst_91 : f32 to vector<32x96xf32>
    %277 = arith.addf %275, %276 : vector<32x96xf32>
    %278 = vector.extract_strided_slice %272 {offsets = [0, 96], sizes = [32, 32], strides = [1, 1]} : vector<32x128xf32> to vector<32x32xf32>
    %279 = vector.extract_strided_slice %277 {offsets = [0, 32], sizes = [32, 32], strides = [1, 1]} : vector<32x96xf32> to vector<32x32xf32>
    %280 = arith.mulf %279, %243 : vector<32x32xf32>
    %281 = vector.extract_strided_slice %277 {offsets = [0, 0], sizes = [32, 32], strides = [1, 1]} : vector<32x96xf32> to vector<32x32xf32>
    %282 = arith.mulf %281, %278 : vector<32x32xf32>
    %283 = arith.addf %280, %282 : vector<32x32xf32>
    %284 = vector.extract_strided_slice %277 {offsets = [0, 64], sizes = [32, 32], strides = [1, 1]} : vector<32x96xf32> to vector<32x32xf32>
    %285 = math.tanh %283 : vector<32x32xf32>
    %286 = arith.mulf %284, %285 : vector<32x32xf32>
    %c7 = arith.constant 7 : index
    %c0_92 = arith.constant 0 : index
    %c0_93 = arith.constant 0 : index
    %287 = vector.load %arg1[%c7, %c0_92, %c0_93] : memref<8x32x4xf32, #tpu.memory_space<vmem>>, vector<1x32x4xf32>
    %288 = vector.shape_cast %287 : vector<1x32x4xf32> to vector<32x4xf32>
    %289 = tpu.concatenate %288, %267, %0 in 1 : vector<32x4xf32>, vector<32x32xf32>, vector<32x1xf32> -> vector<32x37xf32>
    %290 = arith.truncf %289 : vector<32x37xf32> to vector<32x37xbf16>
    %c0_94 = arith.constant 0 : index
    %c0_95 = arith.constant 0 : index
    %291 = vector.load %arg2[%c0_94, %c0_95] : memref<37x128xbf16, #tpu.memory_space<vmem>>, vector<37x128xbf16>
    %cst_96 = arith.constant dense<0.000000e+00> : vector<32x128xf32>
    %292 = tpu.matmul %290, %291, %cst_96 {dimension_numbers = #tpu.dot_dimension_numbers<[1], [0], [0], [1], [0, 0, 1, 1], [], []>} : vector<32x37xbf16>, vector<37x128xbf16>, vector<32x128xf32> -> vector<32x128xf32>
    %293 = math.tanh %292 : vector<32x128xf32>
    %294 = vector.extract_strided_slice %293 {offsets = [0, 0], sizes = [32, 96], strides = [1, 1]} : vector<32x128xf32> to vector<32x96xf32>
    %cst_97 = arith.constant 5.000000e-01 : f32
    %295 = vector.broadcast %cst_97 : f32 to vector<32x96xf32>
    %296 = arith.mulf %295, %294 : vector<32x96xf32>
    %cst_98 = arith.constant 5.000000e-01 : f32
    %297 = vector.broadcast %cst_98 : f32 to vector<32x96xf32>
    %298 = arith.addf %296, %297 : vector<32x96xf32>
    %299 = vector.extract_strided_slice %293 {offsets = [0, 96], sizes = [32, 32], strides = [1, 1]} : vector<32x128xf32> to vector<32x32xf32>
    %300 = vector.extract_strided_slice %298 {offsets = [0, 32], sizes = [32, 32], strides = [1, 1]} : vector<32x96xf32> to vector<32x32xf32>
    %301 = arith.mulf %300, %264 : vector<32x32xf32>
    %302 = vector.extract_strided_slice %298 {offsets = [0, 0], sizes = [32, 32], strides = [1, 1]} : vector<32x96xf32> to vector<32x32xf32>
    %303 = arith.mulf %302, %299 : vector<32x32xf32>
    %304 = arith.addf %301, %303 : vector<32x32xf32>
    %305 = vector.extract_strided_slice %298 {offsets = [0, 64], sizes = [32, 32], strides = [1, 1]} : vector<32x96xf32> to vector<32x32xf32>
    %306 = math.tanh %304 : vector<32x32xf32>
    %307 = arith.mulf %305, %306 : vector<32x32xf32>
    %308 = tpu.concatenate %307, %286, %0 in 1 : vector<32x32xf32>, vector<32x32xf32>, vector<32x1xf32> -> vector<32x65xf32>
    %309 = arith.truncf %308 : vector<32x65xf32> to vector<32x65xbf16>
    %c0_99 = arith.constant 0 : index
    %c0_100 = arith.constant 0 : index
    %310 = vector.load %arg3[%c0_99, %c0_100] : memref<65x128xbf16, #tpu.memory_space<vmem>>, vector<65x128xbf16>
    %cst_101 = arith.constant dense<0.000000e+00> : vector<32x128xf32>
    %311 = tpu.matmul %309, %310, %cst_101 {dimension_numbers = #tpu.dot_dimension_numbers<[1], [0], [0], [1], [0, 0, 1, 1], [], []>} : vector<32x65xbf16>, vector<65x128xbf16>, vector<32x128xf32> -> vector<32x128xf32>
    %312 = math.tanh %311 : vector<32x128xf32>
    %313 = vector.extract_strided_slice %312 {offsets = [0, 0], sizes = [32, 96], strides = [1, 1]} : vector<32x128xf32> to vector<32x96xf32>
    %cst_102 = arith.constant 5.000000e-01 : f32
    %314 = vector.broadcast %cst_102 : f32 to vector<32x96xf32>
    %315 = arith.mulf %314, %313 : vector<32x96xf32>
    %cst_103 = arith.constant 5.000000e-01 : f32
    %316 = vector.broadcast %cst_103 : f32 to vector<32x96xf32>
    %317 = arith.addf %315, %316 : vector<32x96xf32>
    %318 = vector.extract_strided_slice %312 {offsets = [0, 96], sizes = [32, 32], strides = [1, 1]} : vector<32x128xf32> to vector<32x32xf32>
    %319 = vector.extract_strided_slice %317 {offsets = [0, 32], sizes = [32, 32], strides = [1, 1]} : vector<32x96xf32> to vector<32x32xf32>
    %320 = arith.mulf %319, %283 : vector<32x32xf32>
    %321 = vector.extract_strided_slice %317 {offsets = [0, 0], sizes = [32, 32], strides = [1, 1]} : vector<32x96xf32> to vector<32x32xf32>
    %322 = arith.mulf %321, %318 : vector<32x32xf32>
    %323 = arith.addf %320, %322 : vector<32x32xf32>
    %324 = vector.extract_strided_slice %317 {offsets = [0, 64], sizes = [32, 32], strides = [1, 1]} : vector<32x96xf32> to vector<32x32xf32>
    %325 = math.tanh %323 : vector<32x32xf32>
    %326 = arith.mulf %324, %325 : vector<32x32xf32>
    %cst_104 = arith.constant 0.000000e+00 : f32
    %327 = vector.broadcast %cst_104 : f32 to vector<32x4xf32>
    %328 = tpu.concatenate %327, %307, %0 in 1 : vector<32x4xf32>, vector<32x32xf32>, vector<32x1xf32> -> vector<32x37xf32>
    %329 = arith.truncf %328 : vector<32x37xf32> to vector<32x37xbf16>
    %c0_105 = arith.constant 0 : index
    %c0_106 = arith.constant 0 : index
    %330 = vector.load %arg4[%c0_105, %c0_106] : memref<37x128xbf16, #tpu.memory_space<vmem>>, vector<37x128xbf16>
    %cst_107 = arith.constant dense<0.000000e+00> : vector<32x128xf32>
    %331 = tpu.matmul %329, %330, %cst_107 {dimension_numbers = #tpu.dot_dimension_numbers<[1], [0], [0], [1], [0, 0, 1, 1], [], []>} : vector<32x37xbf16>, vector<37x128xbf16>, vector<32x128xf32> -> vector<32x128xf32>
    %332 = math.tanh %331 : vector<32x128xf32>
    %333 = vector.extract_strided_slice %332 {offsets = [0, 0], sizes = [32, 96], strides = [1, 1]} : vector<32x128xf32> to vector<32x96xf32>
    %cst_108 = arith.constant 5.000000e-01 : f32
    %334 = vector.broadcast %cst_108 : f32 to vector<32x96xf32>
    %335 = arith.mulf %334, %333 : vector<32x96xf32>
    %cst_109 = arith.constant 5.000000e-01 : f32
    %336 = vector.broadcast %cst_109 : f32 to vector<32x96xf32>
    %337 = arith.addf %335, %336 : vector<32x96xf32>
    %338 = vector.extract_strided_slice %332 {offsets = [0, 96], sizes = [32, 32], strides = [1, 1]} : vector<32x128xf32> to vector<32x32xf32>
    %339 = vector.extract_strided_slice %337 {offsets = [0, 32], sizes = [32, 32], strides = [1, 1]} : vector<32x96xf32> to vector<32x32xf32>
    %340 = arith.mulf %339, %304 : vector<32x32xf32>
    %341 = vector.extract_strided_slice %337 {offsets = [0, 0], sizes = [32, 32], strides = [1, 1]} : vector<32x96xf32> to vector<32x32xf32>
    %342 = arith.mulf %341, %338 : vector<32x32xf32>
    %343 = arith.addf %340, %342 : vector<32x32xf32>
    %344 = vector.extract_strided_slice %337 {offsets = [0, 64], sizes = [32, 32], strides = [1, 1]} : vector<32x96xf32> to vector<32x32xf32>
    %345 = math.tanh %343 : vector<32x32xf32>
    %346 = arith.mulf %344, %345 : vector<32x32xf32>
    %347 = tpu.concatenate %346, %326, %0 in 1 : vector<32x32xf32>, vector<32x32xf32>, vector<32x1xf32> -> vector<32x65xf32>
    %348 = arith.truncf %347 : vector<32x65xf32> to vector<32x65xbf16>
    %c0_110 = arith.constant 0 : index
    %c0_111 = arith.constant 0 : index
    %349 = vector.load %arg5[%c0_110, %c0_111] : memref<65x128xbf16, #tpu.memory_space<vmem>>, vector<65x128xbf16>
    %cst_112 = arith.constant dense<0.000000e+00> : vector<32x128xf32>
    %350 = tpu.matmul %348, %349, %cst_112 {dimension_numbers = #tpu.dot_dimension_numbers<[1], [0], [0], [1], [0, 0, 1, 1], [], []>} : vector<32x65xbf16>, vector<65x128xbf16>, vector<32x128xf32> -> vector<32x128xf32>
    %351 = math.tanh %350 : vector<32x128xf32>
    %352 = vector.extract_strided_slice %351 {offsets = [0, 0], sizes = [32, 96], strides = [1, 1]} : vector<32x128xf32> to vector<32x96xf32>
    %cst_113 = arith.constant 5.000000e-01 : f32
    %353 = vector.broadcast %cst_113 : f32 to vector<32x96xf32>
    %354 = arith.mulf %353, %352 : vector<32x96xf32>
    %cst_114 = arith.constant 5.000000e-01 : f32
    %355 = vector.broadcast %cst_114 : f32 to vector<32x96xf32>
    %356 = arith.addf %354, %355 : vector<32x96xf32>
    %357 = vector.extract_strided_slice %351 {offsets = [0, 96], sizes = [32, 32], strides = [1, 1]} : vector<32x128xf32> to vector<32x32xf32>
    %358 = vector.extract_strided_slice %356 {offsets = [0, 32], sizes = [32, 32], strides = [1, 1]} : vector<32x96xf32> to vector<32x32xf32>
    %359 = arith.mulf %358, %323 : vector<32x32xf32>
    %360 = vector.extract_strided_slice %356 {offsets = [0, 0], sizes = [32, 32], strides = [1, 1]} : vector<32x96xf32> to vector<32x32xf32>
    %361 = arith.mulf %360, %357 : vector<32x32xf32>
    %362 = arith.addf %359, %361 : vector<32x32xf32>
    %363 = vector.extract_strided_slice %356 {offsets = [0, 64], sizes = [32, 32], strides = [1, 1]} : vector<32x96xf32> to vector<32x32xf32>
    %364 = math.tanh %362 : vector<32x32xf32>
    %365 = arith.mulf %363, %364 : vector<32x32xf32>
    %366 = arith.truncf %365 : vector<32x32xf32> to vector<32x32xbf16>
    %cst_115 = arith.constant dense<0.000000e+00> : vector<32x4xf32>
    %367 = tpu.matmul %366, %1, %cst_115 {dimension_numbers = #tpu.dot_dimension_numbers<[1], [0], [0], [1], [0, 0, 1, 1], [], []>} : vector<32x32xbf16>, vector<32x4xbf16>, vector<32x4xf32> -> vector<32x4xf32>
    %368 = vector.broadcast %2 : vector<1x4xf32> to vector<32x4xf32>
    %369 = arith.addf %367, %368 : vector<32x4xf32>
    %c0_116 = arith.constant 0 : index
    %c0_117 = arith.constant 0 : index
    %c0_118 = arith.constant 0 : index
    %370 = vector.load %arg8[%c0_116, %c0_117, %c0_118] : memref<4x32x4xf32, #tpu.memory_space<vmem>>, vector<1x32x4xf32>
    %371 = vector.shape_cast %370 : vector<1x32x4xf32> to vector<32x4xf32>
    %372 = vector.shape_cast %369 : vector<32x4xf32> to vector<1x32x4xf32>
    tpu.vector_store %arg8[%c0_116, %c0_117, %c0_118], %372 {strides = array<i32>} : memref<4x32x4xf32, #tpu.memory_space<vmem>>, vector<1x32x4xf32>,
    %373 = tpu.concatenate %369, %346, %0 in 1 : vector<32x4xf32>, vector<32x32xf32>, vector<32x1xf32> -> vector<32x37xf32>
    %374 = arith.truncf %373 : vector<32x37xf32> to vector<32x37xbf16>
    %c0_119 = arith.constant 0 : index
    %c0_120 = arith.constant 0 : index
    %375 = vector.load %arg4[%c0_119, %c0_120] : memref<37x128xbf16, #tpu.memory_space<vmem>>, vector<37x128xbf16>
    %cst_121 = arith.constant dense<0.000000e+00> : vector<32x128xf32>
    %376 = tpu.matmul %374, %375, %cst_121 {dimension_numbers = #tpu.dot_dimension_numbers<[1], [0], [0], [1], [0, 0, 1, 1], [], []>} : vector<32x37xbf16>, vector<37x128xbf16>, vector<32x128xf32> -> vector<32x128xf32>
    %377 = math.tanh %376 : vector<32x128xf32>
    %378 = vector.extract_strided_slice %377 {offsets = [0, 0], sizes = [32, 96], strides = [1, 1]} : vector<32x128xf32> to vector<32x96xf32>
    %cst_122 = arith.constant 5.000000e-01 : f32
    %379 = vector.broadcast %cst_122 : f32 to vector<32x96xf32>
    %380 = arith.mulf %379, %378 : vector<32x96xf32>
    %cst_123 = arith.constant 5.000000e-01 : f32
    %381 = vector.broadcast %cst_123 : f32 to vector<32x96xf32>
    %382 = arith.addf %380, %381 : vector<32x96xf32>
    %383 = vector.extract_strided_slice %377 {offsets = [0, 96], sizes = [32, 32], strides = [1, 1]} : vector<32x128xf32> to vector<32x32xf32>
    %384 = vector.extract_strided_slice %382 {offsets = [0, 32], sizes = [32, 32], strides = [1, 1]} : vector<32x96xf32> to vector<32x32xf32>
    %385 = arith.mulf %384, %343 : vector<32x32xf32>
    %386 = vector.extract_strided_slice %382 {offsets = [0, 0], sizes = [32, 32], strides = [1, 1]} : vector<32x96xf32> to vector<32x32xf32>
    %387 = arith.mulf %386, %383 : vector<32x32xf32>
    %388 = arith.addf %385, %387 : vector<32x32xf32>
    %389 = vector.extract_strided_slice %382 {offsets = [0, 64], sizes = [32, 32], strides = [1, 1]} : vector<32x96xf32> to vector<32x32xf32>
    %390 = math.tanh %388 : vector<32x32xf32>
    %391 = arith.mulf %389, %390 : vector<32x32xf32>
    %392 = tpu.concatenate %391, %365, %0 in 1 : vector<32x32xf32>, vector<32x32xf32>, vector<32x1xf32> -> vector<32x65xf32>
    %393 = arith.truncf %392 : vector<32x65xf32> to vector<32x65xbf16>
    %c0_124 = arith.constant 0 : index
    %c0_125 = arith.constant 0 : index
    %394 = vector.load %arg5[%c0_124, %c0_125] : memref<65x128xbf16, #tpu.memory_space<vmem>>, vector<65x128xbf16>
    %cst_126 = arith.constant dense<0.000000e+00> : vector<32x128xf32>
    %395 = tpu.matmul %393, %394, %cst_126 {dimension_numbers = #tpu.dot_dimension_numbers<[1], [0], [0], [1], [0, 0, 1, 1], [], []>} : vector<32x65xbf16>, vector<65x128xbf16>, vector<32x128xf32> -> vector<32x128xf32>
    %396 = math.tanh %395 : vector<32x128xf32>
    %397 = vector.extract_strided_slice %396 {offsets = [0, 0], sizes = [32, 96], strides = [1, 1]} : vector<32x128xf32> to vector<32x96xf32>
    %cst_127 = arith.constant 5.000000e-01 : f32
    %398 = vector.broadcast %cst_127 : f32 to vector<32x96xf32>
    %399 = arith.mulf %398, %397 : vector<32x96xf32>
    %cst_128 = arith.constant 5.000000e-01 : f32
    %400 = vector.broadcast %cst_128 : f32 to vector<32x96xf32>
    %401 = arith.addf %399, %400 : vector<32x96xf32>
    %402 = vector.extract_strided_slice %396 {offsets = [0, 96], sizes = [32, 32], strides = [1, 1]} : vector<32x128xf32> to vector<32x32xf32>
    %403 = vector.extract_strided_slice %401 {offsets = [0, 32], sizes = [32, 32], strides = [1, 1]} : vector<32x96xf32> to vector<32x32xf32>
    %404 = arith.mulf %403, %362 : vector<32x32xf32>
    %405 = vector.extract_strided_slice %401 {offsets = [0, 0], sizes = [32, 32], strides = [1, 1]} : vector<32x96xf32> to vector<32x32xf32>
    %406 = arith.mulf %405, %402 : vector<32x32xf32>
    %407 = arith.addf %404, %406 : vector<32x32xf32>
    %408 = vector.extract_strided_slice %401 {offsets = [0, 64], sizes = [32, 32], strides = [1, 1]} : vector<32x96xf32> to vector<32x32xf32>
    %409 = math.tanh %407 : vector<32x32xf32>
    %410 = arith.mulf %408, %409 : vector<32x32xf32>
    %411 = arith.truncf %410 : vector<32x32xf32> to vector<32x32xbf16>
    %cst_129 = arith.constant dense<0.000000e+00> : vector<32x4xf32>
    %412 = tpu.matmul %411, %1, %cst_129 {dimension_numbers = #tpu.dot_dimension_numbers<[1], [0], [0], [1], [0, 0, 1, 1], [], []>} : vector<32x32xbf16>, vector<32x4xbf16>, vector<32x4xf32> -> vector<32x4xf32>
    %413 = vector.broadcast %2 : vector<1x4xf32> to vector<32x4xf32>
    %414 = arith.addf %412, %413 : vector<32x4xf32>
    %c1_130 = arith.constant 1 : index
    %c0_131 = arith.constant 0 : index
    %c0_132 = arith.constant 0 : index
    %415 = vector.load %arg8[%c1_130, %c0_131, %c0_132] : memref<4x32x4xf32, #tpu.memory_space<vmem>>, vector<1x32x4xf32>
    %416 = vector.shape_cast %415 : vector<1x32x4xf32> to vector<32x4xf32>
    %417 = vector.shape_cast %414 : vector<32x4xf32> to vector<1x32x4xf32>
    tpu.vector_store %arg8[%c1_130, %c0_131, %c0_132], %417 {strides = array<i32>} : memref<4x32x4xf32, #tpu.memory_space<vmem>>, vector<1x32x4xf32>,
    %418 = tpu.concatenate %414, %391, %0 in 1 : vector<32x4xf32>, vector<32x32xf32>, vector<32x1xf32> -> vector<32x37xf32>
    %419 = arith.truncf %418 : vector<32x37xf32> to vector<32x37xbf16>
    %c0_133 = arith.constant 0 : index
    %c0_134 = arith.constant 0 : index
    %420 = vector.load %arg4[%c0_133, %c0_134] : memref<37x128xbf16, #tpu.memory_space<vmem>>, vector<37x128xbf16>
    %cst_135 = arith.constant dense<0.000000e+00> : vector<32x128xf32>
    %421 = tpu.matmul %419, %420, %cst_135 {dimension_numbers = #tpu.dot_dimension_numbers<[1], [0], [0], [1], [0, 0, 1, 1], [], []>} : vector<32x37xbf16>, vector<37x128xbf16>, vector<32x128xf32> -> vector<32x128xf32>
    %422 = math.tanh %421 : vector<32x128xf32>
    %423 = vector.extract_strided_slice %422 {offsets = [0, 0], sizes = [32, 96], strides = [1, 1]} : vector<32x128xf32> to vector<32x96xf32>
    %cst_136 = arith.constant 5.000000e-01 : f32
    %424 = vector.broadcast %cst_136 : f32 to vector<32x96xf32>
    %425 = arith.mulf %424, %423 : vector<32x96xf32>
    %cst_137 = arith.constant 5.000000e-01 : f32
    %426 = vector.broadcast %cst_137 : f32 to vector<32x96xf32>
    %427 = arith.addf %425, %426 : vector<32x96xf32>
    %428 = vector.extract_strided_slice %422 {offsets = [0, 96], sizes = [32, 32], strides = [1, 1]} : vector<32x128xf32> to vector<32x32xf32>
    %429 = vector.extract_strided_slice %427 {offsets = [0, 32], sizes = [32, 32], strides = [1, 1]} : vector<32x96xf32> to vector<32x32xf32>
    %430 = arith.mulf %429, %388 : vector<32x32xf32>
    %431 = vector.extract_strided_slice %427 {offsets = [0, 0], sizes = [32, 32], strides = [1, 1]} : vector<32x96xf32> to vector<32x32xf32>
    %432 = arith.mulf %431, %428 : vector<32x32xf32>
    %433 = arith.addf %430, %432 : vector<32x32xf32>
    %434 = vector.extract_strided_slice %427 {offsets = [0, 64], sizes = [32, 32], strides = [1, 1]} : vector<32x96xf32> to vector<32x32xf32>
    %435 = math.tanh %433 : vector<32x32xf32>
    %436 = arith.mulf %434, %435 : vector<32x32xf32>
    %437 = tpu.concatenate %436, %410, %0 in 1 : vector<32x32xf32>, vector<32x32xf32>, vector<32x1xf32> -> vector<32x65xf32>
    %438 = arith.truncf %437 : vector<32x65xf32> to vector<32x65xbf16>
    %c0_138 = arith.constant 0 : index
    %c0_139 = arith.constant 0 : index
    %439 = vector.load %arg5[%c0_138, %c0_139] : memref<65x128xbf16, #tpu.memory_space<vmem>>, vector<65x128xbf16>
    %cst_140 = arith.constant dense<0.000000e+00> : vector<32x128xf32>
    %440 = tpu.matmul %438, %439, %cst_140 {dimension_numbers = #tpu.dot_dimension_numbers<[1], [0], [0], [1], [0, 0, 1, 1], [], []>} : vector<32x65xbf16>, vector<65x128xbf16>, vector<32x128xf32> -> vector<32x128xf32>
    %441 = math.tanh %440 : vector<32x128xf32>
    %442 = vector.extract_strided_slice %441 {offsets = [0, 0], sizes = [32, 96], strides = [1, 1]} : vector<32x128xf32> to vector<32x96xf32>
    %cst_141 = arith.constant 5.000000e-01 : f32
    %443 = vector.broadcast %cst_141 : f32 to vector<32x96xf32>
    %444 = arith.mulf %443, %442 : vector<32x96xf32>
    %cst_142 = arith.constant 5.000000e-01 : f32
    %445 = vector.broadcast %cst_142 : f32 to vector<32x96xf32>
    %446 = arith.addf %444, %445 : vector<32x96xf32>
    %447 = vector.extract_strided_slice %441 {offsets = [0, 96], sizes = [32, 32], strides = [1, 1]} : vector<32x128xf32> to vector<32x32xf32>
    %448 = vector.extract_strided_slice %446 {offsets = [0, 32], sizes = [32, 32], strides = [1, 1]} : vector<32x96xf32> to vector<32x32xf32>
    %449 = arith.mulf %448, %407 : vector<32x32xf32>
    %450 = vector.extract_strided_slice %446 {offsets = [0, 0], sizes = [32, 32], strides = [1, 1]} : vector<32x96xf32> to vector<32x32xf32>
    %451 = arith.mulf %450, %447 : vector<32x32xf32>
    %452 = arith.addf %449, %451 : vector<32x32xf32>
    %453 = vector.extract_strided_slice %446 {offsets = [0, 64], sizes = [32, 32], strides = [1, 1]} : vector<32x96xf32> to vector<32x32xf32>
    %454 = math.tanh %452 : vector<32x32xf32>
    %455 = arith.mulf %453, %454 : vector<32x32xf32>
    %456 = arith.truncf %455 : vector<32x32xf32> to vector<32x32xbf16>
    %cst_143 = arith.constant dense<0.000000e+00> : vector<32x4xf32>
    %457 = tpu.matmul %456, %1, %cst_143 {dimension_numbers = #tpu.dot_dimension_numbers<[1], [0], [0], [1], [0, 0, 1, 1], [], []>} : vector<32x32xbf16>, vector<32x4xbf16>, vector<32x4xf32> -> vector<32x4xf32>
    %458 = vector.broadcast %2 : vector<1x4xf32> to vector<32x4xf32>
    %459 = arith.addf %457, %458 : vector<32x4xf32>
    %c2_144 = arith.constant 2 : index
    %c0_145 = arith.constant 0 : index
    %c0_146 = arith.constant 0 : index
    %460 = vector.load %arg8[%c2_144, %c0_145, %c0_146] : memref<4x32x4xf32, #tpu.memory_space<vmem>>, vector<1x32x4xf32>
    %461 = vector.shape_cast %460 : vector<1x32x4xf32> to vector<32x4xf32>
    %462 = vector.shape_cast %459 : vector<32x4xf32> to vector<1x32x4xf32>
    tpu.vector_store %arg8[%c2_144, %c0_145, %c0_146], %462 {strides = array<i32>} : memref<4x32x4xf32, #tpu.memory_space<vmem>>, vector<1x32x4xf32>,
    %463 = tpu.concatenate %459, %436, %0 in 1 : vector<32x4xf32>, vector<32x32xf32>, vector<32x1xf32> -> vector<32x37xf32>
    %464 = arith.truncf %463 : vector<32x37xf32> to vector<32x37xbf16>
    %c0_147 = arith.constant 0 : index
    %c0_148 = arith.constant 0 : index
    %465 = vector.load %arg4[%c0_147, %c0_148] : memref<37x128xbf16, #tpu.memory_space<vmem>>, vector<37x128xbf16>
    %cst_149 = arith.constant dense<0.000000e+00> : vector<32x128xf32>
    %466 = tpu.matmul %464, %465, %cst_149 {dimension_numbers = #tpu.dot_dimension_numbers<[1], [0], [0], [1], [0, 0, 1, 1], [], []>} : vector<32x37xbf16>, vector<37x128xbf16>, vector<32x128xf32> -> vector<32x128xf32>
    %467 = math.tanh %466 : vector<32x128xf32>
    %468 = vector.extract_strided_slice %467 {offsets = [0, 0], sizes = [32, 96], strides = [1, 1]} : vector<32x128xf32> to vector<32x96xf32>
    %cst_150 = arith.constant 5.000000e-01 : f32
    %469 = vector.broadcast %cst_150 : f32 to vector<32x96xf32>
    %470 = arith.mulf %469, %468 : vector<32x96xf32>
    %cst_151 = arith.constant 5.000000e-01 : f32
    %471 = vector.broadcast %cst_151 : f32 to vector<32x96xf32>
    %472 = arith.addf %470, %471 : vector<32x96xf32>
    %473 = vector.extract_strided_slice %467 {offsets = [0, 96], sizes = [32, 32], strides = [1, 1]} : vector<32x128xf32> to vector<32x32xf32>
    %474 = vector.extract_strided_slice %472 {offsets = [0, 32], sizes = [32, 32], strides = [1, 1]} : vector<32x96xf32> to vector<32x32xf32>
    %475 = arith.mulf %474, %433 : vector<32x32xf32>
    %476 = vector.extract_strided_slice %472 {offsets = [0, 0], sizes = [32, 32], strides = [1, 1]} : vector<32x96xf32> to vector<32x32xf32>
    %477 = arith.mulf %476, %473 : vector<32x32xf32>
    %478 = arith.addf %475, %477 : vector<32x32xf32>
    %479 = vector.extract_strided_slice %472 {offsets = [0, 64], sizes = [32, 32], strides = [1, 1]} : vector<32x96xf32> to vector<32x32xf32>
    %480 = math.tanh %478 : vector<32x32xf32>
    %481 = arith.mulf %479, %480 : vector<32x32xf32>
    %482 = tpu.concatenate %481, %455, %0 in 1 : vector<32x32xf32>, vector<32x32xf32>, vector<32x1xf32> -> vector<32x65xf32>
    %483 = arith.truncf %482 : vector<32x65xf32> to vector<32x65xbf16>
    %c0_152 = arith.constant 0 : index
    %c0_153 = arith.constant 0 : index
    %484 = vector.load %arg5[%c0_152, %c0_153] : memref<65x128xbf16, #tpu.memory_space<vmem>>, vector<65x128xbf16>
    %cst_154 = arith.constant dense<0.000000e+00> : vector<32x128xf32>
    %485 = tpu.matmul %483, %484, %cst_154 {dimension_numbers = #tpu.dot_dimension_numbers<[1], [0], [0], [1], [0, 0, 1, 1], [], []>} : vector<32x65xbf16>, vector<65x128xbf16>, vector<32x128xf32> -> vector<32x128xf32>
    %486 = math.tanh %485 : vector<32x128xf32>
    %487 = vector.extract_strided_slice %486 {offsets = [0, 0], sizes = [32, 96], strides = [1, 1]} : vector<32x128xf32> to vector<32x96xf32>
    %cst_155 = arith.constant 5.000000e-01 : f32
    %488 = vector.broadcast %cst_155 : f32 to vector<32x96xf32>
    %489 = arith.mulf %488, %487 : vector<32x96xf32>
    %cst_156 = arith.constant 5.000000e-01 : f32
    %490 = vector.broadcast %cst_156 : f32 to vector<32x96xf32>
    %491 = arith.addf %489, %490 : vector<32x96xf32>
    %492 = vector.extract_strided_slice %486 {offsets = [0, 96], sizes = [32, 32], strides = [1, 1]} : vector<32x128xf32> to vector<32x32xf32>
    %493 = vector.extract_strided_slice %491 {offsets = [0, 32], sizes = [32, 32], strides = [1, 1]} : vector<32x96xf32> to vector<32x32xf32>
    %494 = arith.mulf %493, %452 : vector<32x32xf32>
    %495 = vector.extract_strided_slice %491 {offsets = [0, 0], sizes = [32, 32], strides = [1, 1]} : vector<32x96xf32> to vector<32x32xf32>
    %496 = arith.mulf %495, %492 : vector<32x32xf32>
    %497 = arith.addf %494, %496 : vector<32x32xf32>
    %498 = vector.extract_strided_slice %491 {offsets = [0, 64], sizes = [32, 32], strides = [1, 1]} : vector<32x96xf32> to vector<32x32xf32>
    %499 = math.tanh %497 : vector<32x32xf32>
    %500 = arith.mulf %498, %499 : vector<32x32xf32>
    %501 = arith.truncf %500 : vector<32x32xf32> to vector<32x32xbf16>
    %cst_157 = arith.constant dense<0.000000e+00> : vector<32x4xf32>
    %502 = tpu.matmul %501, %1, %cst_157 {dimension_numbers = #tpu.dot_dimension_numbers<[1], [0], [0], [1], [0, 0, 1, 1], [], []>} : vector<32x32xbf16>, vector<32x4xbf16>, vector<32x4xf32> -> vector<32x4xf32>
    %503 = vector.broadcast %2 : vector<1x4xf32> to vector<32x4xf32>
    %504 = arith.addf %502, %503 : vector<32x4xf32>
    %c3_158 = arith.constant 3 : index
    %c0_159 = arith.constant 0 : index
    %c0_160 = arith.constant 0 : index
    %505 = vector.load %arg8[%c3_158, %c0_159, %c0_160] : memref<4x32x4xf32, #tpu.memory_space<vmem>>, vector<1x32x4xf32>
    %506 = vector.shape_cast %505 : vector<1x32x4xf32> to vector<32x4xf32>
    %507 = vector.shape_cast %504 : vector<32x4xf32> to vector<1x32x4xf32>
    tpu.vector_store %arg8[%c3_158, %c0_159, %c0_160], %507 {strides = array<i32>} : memref<4x32x4xf32, #tpu.memory_space<vmem>>, vector<1x32x4xf32>,
    return
  }
  func.func @transform_0(%arg0: i32) -> (i32, i32, i32) {
    %c0_i32 = arith.constant 0 : i32
    %c0_i32_0 = arith.constant 0 : i32
    %c0_i32_1 = arith.constant 0 : i32
    %c0_i32_2 = arith.constant 0 : i32
    return %c0_i32, %c0_i32_0, %c0_i32_1 : i32, i32, i32
  }
  func.func @transform_1(%arg0: i32) -> (i32, i32) {
    %c0_i32 = arith.constant 0 : i32
    %c0_i32_0 = arith.constant 0 : i32
    %c0_i32_1 = arith.constant 0 : i32
    return %c0_i32, %c0_i32_0 : i32, i32
  }
  func.func @transform_2(%arg0: i32) -> (i32, i32) {
    %c0_i32 = arith.constant 0 : i32
    %c0_i32_0 = arith.constant 0 : i32
    %c0_i32_1 = arith.constant 0 : i32
    return %c0_i32, %c0_i32_0 : i32, i32
  }
  func.func @transform_3(%arg0: i32) -> (i32, i32) {
    %c0_i32 = arith.constant 0 : i32
    %c0_i32_0 = arith.constant 0 : i32
    %c0_i32_1 = arith.constant 0 : i32
    return %c0_i32, %c0_i32_0 : i32, i32
  }
  func.func @transform_4(%arg0: i32) -> (i32, i32) {
    %c0_i32 = arith.constant 0 : i32
    %c0_i32_0 = arith.constant 0 : i32
    %c0_i32_1 = arith.constant 0 : i32
    return %c0_i32, %c0_i32_0 : i32, i32
  }
  func.func @transform_5(%arg0: i32) -> (i32, i32) {
    %c0_i32 = arith.constant 0 : i32
    %c0_i32_0 = arith.constant 0 : i32
    %c0_i32_1 = arith.constant 0 : i32
    return %c0_i32, %c0_i32_0 : i32, i32
  }
  func.func @transform_6(%arg0: i32) -> (i32, i32) {
    %c0_i32 = arith.constant 0 : i32
    %c0_i32_0 = arith.constant 0 : i32
    %c0_i32_1 = arith.constant 0 : i32
    return %c0_i32, %c0_i32_0 : i32, i32
  }
  func.func @transform_7(%arg0: i32) -> (i32, i32, i32) {
    %c0_i32 = arith.constant 0 : i32
    %c0_i32_0 = arith.constant 0 : i32
    %c0_i32_1 = arith.constant 0 : i32
    %c0_i32_2 = arith.constant 0 : i32
    return %c0_i32, %c0_i32_0, %c0_i32_1 : i32, i32, i32
  }
}

</mosaic_0001>

<bundles_post_ra>
// kernel: _lambda_.1
= control target key start
LH: loop header
LB: loop body
LE: loop exit
PB: predicated region body
PF: predicated region fallthrough
CT: control target
= control target key end

     0   :  { %vm75_vm0 = vcmask 1041408   ;;  %vm76_vm1 = vcmask 1042432   ;;  %v4818_v1 = vmov 65535   ;;  %vm36_vm2 = vcmask 31744   ;;  %s4819_s15 = smov 32   ;;  %s4820_s16 = smov 68   ;;  %s6667_s1 = inlined_call_operand.vmem [shape: bf16[37,128], index: 1, kind: input, shape index: {}]   ;;  %s6668_s0 = inlined_call_operand.vmem [shape: f32[8,32,4], index: 0, kind: input, shape index: {}]   ;;  %s6669_s2 = inlined_call_operand.vmem [shape: bf16[65,128], index: 2, kind: input, shape index: {}]   ;;  %s6670_s3 = inlined_call_operand.vmem [shape: bf16[37,128], index: 3, kind: input, shape index: {}]   ;;  %s6671_s4 = inlined_call_operand.vmem [shape: bf16[65,128], index: 4, kind: input, shape index: {}]   ;;  %s6672_s5 = inlined_call_operand.vmem [shape: bf16[32,4], index: 5, kind: input, shape index: {}]   ;;  %s6673_s6 = inlined_call_operand.vmem [shape: f32[1,4], index: 6, kind: input, shape index: {}]   ;;  %s6674_s7 = inlined_call_operand.vmem [shape: f32[4,32,4], index: 7, kind: output, shape index: {}]  }
   0x1   :  { %v52_v0 = vld [vmem:[%s6667_s1 + $0x10] sm:$0x7]  ;;  %v77_v2 = vsel %vm75_vm0, 4294967295, %v4818_v1  ;;  %v32_v7 = vld [vmem:[%s6668_s0] sm:$0xff]  ;;  %v33_v8 = vld [vmem:[%s6668_s0 + $0x8] sm:$0xff]  ;;  %vm41_vm3 = vcmask 293888  }
   0x2   :  { %v62_v3 = vunpack.c.l.b16 %v52_v0  ;;  %v4867_v4 = vsel %vm76_vm1, %v77_v2, 0  ;;  %v4882_v9 = vld [vmem:[%s6667_s1 + $0x8] sm:$0xff]  ;;  %v37_v10 = vsel %vm36_vm2, %v32_v7, 0.0  ;;  %v38_v11 = vsel %vm36_vm2, %v33_v8, 0.0  ;;  %v4891_v12 = vld [vmem:[%s6667_s1] sm:$0xff]  ;;  %v34_v16 = vld [vmem:[%s6668_s0 + $0x10] sm:$0xff] }
   0x3   :  { %v42_v13 = vsel %vm41_vm3, %v37_v10, 1.0  ;;  %v43_v14 = vsel %vm41_vm3, %v38_v11, 1.0  ;;  %vm68_vm4 = vcmask 302080   ;;  %v35_v17 = vld [vmem:[%s6668_s0 + $0x18] sm:$0xff]  ;;  %v39_v18 = vsel %vm36_vm2, %v34_v16, 0.0  ;;  %s4821_s17 = smov 64  }
   0x4   :  { %v65_v5 = vpack.c.b16 %v62_v3, %v62_v3  ;;  %v46_v15 = vpack.c.bf16 %v43_v14, %v42_v13  ;;  %v40_v19 = vsel %vm36_vm2, %v35_v17, 0.0  ;;  %v44_v20 = vsel %vm41_vm3, %v39_v18, 1.0  ;;  %v4958_v14 = vld [vmem:[%s6669_s2 + $0x18] sm:$0xff]  ;;  %v4974_v16 = vld [vmem:[%s6669_s2 + $0x8] sm:$0xff]  ;;  %s4823_s13 = smov 96  }
   0x5   :  { %v45_v21 = vsel %vm41_vm3, %v40_v19, 1.0  ;;  %vm252_vm5 = vcmask 1040384   ;;  %v4822_v8 = vmov 0   ;;  %vm197_vm6 = vcmask 261120  }
   0x6   :  { %v4870_v6 = vand.u32 %v4867_v4, %v65_v5  ;;  %v47_v22 = vpack.c.bf16 %v45_v21, %v44_v20  ;;  %v217_v5 = vld [vmem:[%s6669_s2 + $0x20] sm:$0x1]  ;;  %v4949_v10 = vsel %vm252_vm5, 65535, %v4822_v8  ;;  %vm202_vm7 = vcmask 523264  }
   0x7   :  { %v235_v7 = vunpack.c.l.b16 %v217_v5  ;;  %vm245_vm8 = vcmask 531456  }
   0x8   :  { %87 = vmatpush.bf16.msra.mxu0 %v4870_v6  ;;  %395 = vmatpush.bf16.msra.mxu2 %v4870_v6 }
   0x9   :  { %v240_v11 = vpack.c.b16 %v235_v7, %v235_v7 }
   0xb   :  { %v4952_v13 = vand.u32 %v4949_v10, %v240_v11 }
   0xc   :  { %88 = vmatpush.bf16.msra.mxu0 %v4882_v9  ;;  %396 = vmatpush.bf16.msra.mxu2 %v4882_v9 }
   0xd   :  { %261 = vmatpush.bf16.msra.mxu1 %v4952_v13  ;;  %540 = vmatpush.bf16.msra.mxu3 %v4952_v13 }
  0x10   :  { %89 = vmatpush.bf16.msra.mxu0 %v4891_v12  ;;  %397 = vmatpush.bf16.msra.mxu2 %v4891_v12 }
  0x11   :  { %262 = vmatpush.bf16.msra.mxu1 %v4958_v14  ;;  %541 = vmatpush.bf16.msra.mxu3 %v4958_v14 }
  0x13   :  { %3832 = vmatmul.msk.bf16.vlgmr.msra.gmra.mxu0 %vm68_vm4, %v46_v15  ;;  %v4966_v15 = vld [vmem:[%s6669_s2 + $0x10] sm:$0xff] }
  0x14   :  { %674 = vmatpush.bf16.msrb.mxu0 %v4870_v6  ;;  %819 = vmatpush.bf16.msrb.mxu2 %v4952_v13 }
  0x15   :  { %263 = vmatpush.bf16.msra.mxu1 %v4966_v15  ;;  %542 = vmatpush.bf16.msra.mxu3 %v4966_v15 }
  0x18   :  { %675 = vmatpush.bf16.msrb.mxu0 %v4882_v9  ;;  %820 = vmatpush.bf16.msrb.mxu2 %v4958_v14 }
  0x19   :  { %264 = vmatpush.bf16.msra.mxu1 %v4974_v16  ;;  %543 = vmatpush.bf16.msra.mxu3 %v4974_v16 }
  0x1c   :  { %676 = vmatpush.bf16.msrb.mxu0 %v4891_v12  ;;  %821 = vmatpush.bf16.msrb.mxu2 %v4966_v15 }
  0x20   :  { %1232 = vmatpush.bf16.msra.mxu0 %v4870_v6  ;;  %822 = vmatpush.bf16.msrb.mxu2 %v4974_v16 }
  0x23   :  { %3833 = vmatmul.msk.bf16.gmra.mxu0 %vm68_vm4, %v47_v22  ;;  %v4987_v22 = vld [vmem:[%s6669_s2] sm:$0xff] }
  0x24   :  { %1233 = vmatpush.bf16.msra.mxu0 %v4882_v9  ;;  %265 = vmatpush.bf16.msra.mxu1 %v4987_v22 }
  0x25   :  { %544 = vmatpush.bf16.msra.mxu3 %v4987_v22  ;;  %823 = vmatpush.bf16.msrb.mxu2 %v4987_v22 }
  0x28   :  { %1234 = vmatpush.bf16.msra.mxu0 %v4891_v12  ;;  %953 = vmatpush.bf16.msrb.mxu1 %v4870_v6 }
  0x29   :  { %1098 = vmatpush.bf16.msrb.mxu3 %v4952_v13 }
  0x2c   :  { %954 = vmatpush.bf16.msrb.mxu1 %v4882_v9 }
  0x2d   :  { %1099 = vmatpush.bf16.msrb.mxu3 %v4958_v14 }
  0x30   :  { %955 = vmatpush.bf16.msrb.mxu1 %v4891_v12 }
  0x31   :  { %1100 = vmatpush.bf16.msrb.mxu3 %v4966_v15 }
  0x35   :  { %1101 = vmatpush.bf16.msrb.mxu3 %v4974_v16 }
  0x39   :  { %1102 = vmatpush.bf16.msrb.mxu3 %v4987_v22 }
  0x90   :  { %v91_v23 = vpop.f32.mrf.mxu0 }
  0x91   :  { %4427 = vtanh.f32 %v91_v23 }
  0x97   :  { %v4428_v24 = vpop.eup %4427 }
  0x98   :  { %121 = vrot.lane.b32.xlu0 %v4428_v24, %s4819_s15  ;;  %v93_v25 = vpop.f32.mrf.mxu0  ;;  %v105_v31 = vmul.f32 0.5, %v4428_v24 }
  0x99   :  { %4429 = vtanh.f32 %v93_v25  ;;  %v3852_v25 = vld [vmem:[%s6668_s0 + $0x20] sm:$0xff] }
  0x9a   :  { %v109_v32 = vadd.f32 0.5, %v105_v31 }
  0x9c   :  { %v113_v47 = vmul.f32 0.0, %v109_v32 }
  0x9f   :  { %v4430_v26 = vpop.eup %4429 }
  0xa0   :  { %123 = vrot.lane.b32.xlu0 %v4430_v26, %s4819_s15  ;;  %v96_v27 = vpop.f32.mrf.mxu0  ;;  %v106_v35 = vmul.f32 0.5, %v4430_v26  ;;  %v3853_v26 = vld [vmem:[%s6668_s0 + $0x28] sm:$0xff] }
  0xa1   :  { %4431 = vtanh.f32 %v96_v27 }
  0xa2   :  { %v110_v36 = vadd.f32 0.5, %v106_v35 }
  0xa4   :  { %v114_v50 = vmul.f32 0.0, %v110_v36 }
  0xa7   :  { %v4432_v28 = vpop.eup %4431 }
  0xa8   :  { %125 = vrot.lane.b32.xlu1 %v4432_v28, %s4819_s15  ;;  %v98_v29 = vpop.f32.mrf.mxu0  ;;  %v107_v39 = vmul.f32 0.5, %v4432_v28 }
  0xa9   :  { %4433 = vtanh.f32 %v98_v29 }
  0xaa   :  { %v4922_v40 = vadd.f32 0.5, %v107_v39 }
  0xac   :  { %v115_v55 = vmul.f32 0.0, %v4922_v40 }
  0xaf   :  { %v4434_v30 = vpop.eup %4433 }
  0xb0   :  { %127 = vrot.lane.b32.xlu1 %v4434_v30, %s4819_s15  ;;  %v108_v43 = vmul.f32 0.5, %v4434_v30 }
  0xb2   :  { %v112_v44 = vadd.f32 0.5, %v108_v43 }
  0xb4   :  { %v116_v58 = vmul.f32 0.0, %v112_v44 }
 0x10a   :  { %v122_v33 = vpop.permute.xlu0 %121 }
 0x10b   :  { %v133_v34 = vmul.f32 %v122_v33, %v109_v32 }
 0x10d   :  { %141 = vrot.lane.b32.xlu2 %v133_v34, %s4819_s15 }
 0x112   :  { %v124_v37 = vpop.permute.xlu0 %123 }
 0x113   :  { %v134_v38 = vmul.f32 %v124_v37, %v110_v36 }
 0x115   :  { %143 = vrot.lane.b32.xlu2 %v134_v38, %s4819_s15 }
 0x11a   :  { %v126_v41 = vpop.permute.xlu1 %125 }
 0x11b   :  { %v135_v42 = vmul.f32 %v126_v41, %v4922_v40 }
 0x11d   :  { %145 = vrot.lane.b32.xlu0 %v135_v42, %s4819_s15 }
 0x122   :  { %v128_v45 = vpop.permute.xlu1 %127 }
 0x123   :  { %v136_v46 = vmul.f32 %v128_v45, %v112_v44  ;;  %v3855_v45 = vld [vmem:[%s6668_s0 + $0x38] sm:$0xff] }
 0x125   :  { %147 = vrot.lane.b32.xlu1 %v136_v46, %s4819_s15 }
 0x167   :  { %v142_v48 = vpop.permute.xlu2 %141 }
 0x168   :  { %v4927_v49 = vadd.f32 %v142_v48, %v113_v47 }
 0x16a   :  { %4435 = vtanh.f32 %v4927_v49 }
 0x16f   :  { %v144_v51 = vpop.permute.xlu2 %143 }
 0x170   :  { %v4436_v52 = vpop.eup %4435  ;;  %v4930_v53 = vadd.f32 %v144_v51, %v114_v50 }
 0x171   :  { %165 = vrot.lane.b32.xlu2 %v4436_v52, %s4819_s15 }
 0x172   :  { %4437 = vtanh.f32 %v4930_v53 }
 0x178   :  { %v4438_v54 = vpop.eup %4437 }
 0x179   :  { %167 = vrot.lane.b32.xlu0 %v4438_v54, %s4819_s15 }
 0x18f   :  { %v146_v56 = vpop.permute.xlu0 %145 }
 0x190   :  { %v4936_v57 = vadd.f32 %v146_v56, %v115_v55 }
 0x192   :  { %4439 = vtanh.f32 %v4936_v57 }
 0x197   :  { %v148_v59 = vpop.permute.xlu1 %147 }
 0x198   :  { %v4440_v60 = vpop.eup %4439  ;;  %v4939_v61 = vadd.f32 %v148_v59, %v116_v58 }
 0x199   :  { %169 = vrot.lane.b32.xlu1 %v4440_v60, %s4819_s15 }
 0x19a   :  { %4441 = vtanh.f32 %v4939_v61 }
 0x1a0   :  { %v4442_v62 = vpop.eup %4441 }
 0x1a1   :  { %171 = vrot.lane.b32.xlu2 %v4442_v62, %s4819_s15 }
 0x1cb   :  { %v166_v63 = vpop.permute.xlu2 %165 }
 0x1cc   :  { %v177_v1 = vmul.f32 %v166_v63, %v109_v32 }
 0x1eb   :  { %v168_v0 = vpop.permute.xlu0 %167 }
 0x1ec   :  { %v178_v2 = vmul.f32 %v168_v0, %v110_v36 }
 0x1ee   :  { %v4091_v3 = vpack.i.bf16 %v178_v2, %v177_v1 }
 0x1f0   :  { %4087 = vrot.lane.b32.xlu0 %v4091_v3, %s4820_s16  ;;  %4092 = vrot.lane.b32.xlu1 %v4091_v3, %s4821_s17 }
 0x1fb   :  { %v172_v17 = vpop.permute.xlu2 %171 }
 0x1fc   :  { %v180_v19 = vmul.f32 %v172_v17, %v112_v44  ;;  %v3854_v44 = vld [vmem:[%s6668_s0 + $0x30] sm:$0xff] }
 0x20b   :  { %v170_v18 = vpop.permute.xlu1 %169 }
 0x20c   :  { %v179_v20 = vmul.f32 %v170_v18, %v4922_v40 }
 0x20e   :  { %v4101_v21 = vpack.i.bf16 %v180_v19, %v179_v20 }
 0x210   :  { %4102 = vrot.lane.b32.xlu0 %v4101_v21, %s4821_s17  ;;  %4097 = vrot.lane.b32.xlu2 %v4101_v21, %s4820_s16 }
 0x262   :  { %v4088_v23 = vpop.permute.xlu0 %4087  ;;  %v4093_v24 = vpop.permute.xlu1 %4092 }
 0x263   :  { %v4090_v27 = vunpack.i.h.bf16 %v4088_v23  ;;  %v4089_v28 = vunpack.i.l.bf16 %v4088_v23  ;;  %v4095_v29 = vunpack.i.h.bf16 %v4093_v24  ;;  %v4094_v30 = vunpack.i.l.bf16 %v4093_v24 }
 0x265   :  { %v199_v31 = vsel %vm197_vm6, %v4095_v29, 0.0  ;;  %v198_v32 = vsel %vm197_vm6, %v4094_v30, 0.0  ;;  %v374_v33 = vsel %vm36_vm2, %v3852_v25, %v4089_v28  ;;  %v375_v34 = vsel %vm36_vm2, %v3853_v26, %v4090_v27 }
 0x266   :  { %v203_v35 = vsel %vm202_vm7, %v198_v32, 1.0  ;;  %v204_v36 = vsel %vm202_vm7, %v199_v31, 1.0  ;;  %v378_v37 = vsel %vm41_vm3, %v374_v33, 1.0  ;;  %v379_v38 = vsel %vm41_vm3, %v375_v34, 1.0 }
 0x267   :  { %v207_v39 = vpack.c.bf16 %v204_v36, %v203_v35  ;;  %v382_v40 = vpack.c.bf16 %v379_v38, %v378_v37 }
 0x269   :  { %3850 = vmatmul.msk.bf16.vlgmr.msra.gmra.mxu1 %vm245_vm8, %v207_v39  ;;  %3856 = vmatmul.msk.bf16.vlgmr.msra.gmra.mxu2 %vm68_vm4, %v382_v40 }
 0x26a   :  { %v4098_v41 = vpop.permute.xlu2 %4097  ;;  %1377 = vmatpush.bf16.msra.mxu2 %v4952_v13  ;;  %1511 = vmatpush.bf16.msra.mxu1 %v4870_v6 }
 0x26b   :  { %v4100_v42 = vunpack.i.h.bf16 %v4098_v41  ;;  %v4099_v43 = vunpack.i.l.bf16 %v4098_v41 }
 0x26d   :  { %v376_v46 = vsel %vm36_vm2, %v3854_v44, %v4099_v43  ;;  %v377_v47 = vsel %vm36_vm2, %v3855_v45, %v4100_v42 }
 0x26e   :  { %1378 = vmatpush.bf16.msra.mxu2 %v4958_v14  ;;  %1512 = vmatpush.bf16.msra.mxu1 %v4882_v9  ;;  %v380_v48 = vsel %vm41_vm3, %v376_v46, 1.0  ;;  %v381_v50 = vsel %vm41_vm3, %v377_v47, 1.0 }
 0x26f   :  { %v383_v51 = vpack.c.bf16 %v381_v50, %v380_v48 }
 0x272   :  { %1379 = vmatpush.bf16.msra.mxu2 %v4966_v15  ;;  %1513 = vmatpush.bf16.msra.mxu1 %v4891_v12 }
 0x276   :  { %1380 = vmatpush.bf16.msra.mxu2 %v4974_v16 }
 0x279   :  { %3857 = vmatmul.msk.bf16.gmra.mxu2 %vm68_vm4, %v383_v51 }
 0x27a   :  { %1381 = vmatpush.bf16.msra.mxu2 %v4987_v22 }
 0x282   :  { %v4103_v52 = vpop.permute.xlu0 %4102 }
 0x283   :  { %v4105_v54 = vunpack.i.h.bf16 %v4103_v52  ;;  %v4104_v55 = vunpack.i.l.bf16 %v4103_v52 }
 0x285   :  { %v201_v56 = vsel %vm197_vm6, %v4105_v54, 0.0  ;;  %v200_v58 = vsel %vm197_vm6, %v4104_v55, 0.0 }
 0x286   :  { %v205_v59 = vsel %vm202_vm7, %v200_v58, 1.0  ;;  %v206_v60 = vsel %vm202_vm7, %v201_v56, 1.0 }
 0x287   :  { %v208_v62 = vpack.c.bf16 %v206_v60, %v205_v59 }
 0x289   :  { %3851 = vmatmul.msk.bf16.gmra.mxu1 %vm245_vm8, %v208_v62 }
 0x2e6   :  { %v267_v63 = vpop.f32.mrf.mxu1 }
 0x2e7   :  { %4443 = vtanh.f32 %v267_v63 }
 0x2ec   :  { %v399_v0 = vpop.f32.mrf.mxu2 }
 0x2ed   :  { %v4444_v1 = vpop.eup %4443  ;;  %4445 = vtanh.f32 %v399_v0 }
 0x2ee   :  { %297 = vrot.lane.b32.xlu1 %v4444_v1, %s4819_s15  ;;  %v269_v2 = vpop.f32.mrf.mxu1  ;;  %v281_v29 = vmul.f32 0.5, %v4444_v1 }
 0x2ef   :  { %4447 = vtanh.f32 %v269_v2 }
 0x2f0   :  { %v5052_v30 = vadd.f32 0.5, %v281_v29 }
 0x2f3   :  { %v4446_v3 = vpop.eup %4445 }
 0x2f4   :  { %v401_v5 = vpop.f32.mrf.mxu2  ;;  %429 = vrot.lane.b32.xlu0 %v4446_v3, %s4819_s15  ;;  %v413_v33 = vmul.f32 0.5, %v4446_v3 }
 0x2f5   :  { %v4448_v7 = vpop.eup %4447  ;;  %4449 = vtanh.f32 %v401_v5 }
 0x2f6   :  { %299 = vrot.lane.b32.xlu2 %v4448_v7, %s4819_s15  ;;  %v282_v25 = vmul.f32 0.5, %v4448_v7  ;;  %v5056_v35 = vadd.f32 0.5, %v413_v33 }
 0x2f8   :  { %v5048_v26 = vadd.f32 0.5, %v282_v25  ;;  %v421_v60 = vmul.f32 %v5056_v35, %v4927_v49  ;;  %v289_v49 = vmul.f32 0.0, %v5052_v30 }
 0x2fa   :  { %v290_v0 = vmul.f32 0.0, %v5048_v26 }
 0x2fb   :  { %v4450_v8 = vpop.eup %4449 }
 0x2fc   :  { %431 = vrot.lane.b32.xlu1 %v4450_v8, %s4819_s15  ;;  %v404_v11 = vpop.f32.mrf.mxu2  ;;  %v414_v41 = vmul.f32 0.5, %v4450_v8 }
 0x2fd   :  { %4451 = vtanh.f32 %v404_v11 }
 0x2fe   :  { %v5064_v43 = vadd.f32 0.5, %v414_v41 }
 0x303   :  { %v4452_v17 = vpop.eup %4451 }
 0x304   :  { %433 = vrot.lane.b32.xlu1 %v4452_v17, %s4819_s15  ;;  %v406_v19 = vpop.f32.mrf.mxu2  ;;  %v415_v50 = vmul.f32 0.5, %v4452_v17 }
 0x306   :  { %v272_v18 = vpop.f32.mrf.mxu1  ;;  %v5072_v51 = vadd.f32 0.5, %v415_v50 }
 0x307   :  { %4453 = vtanh.f32 %v272_v18 }
 0x308   :  { %4455 = vtanh.f32 %v406_v19 }
 0x30d   :  { %v4454_v20 = vpop.eup %4453 }
 0x30e   :  { %v274_v21 = vpop.f32.mrf.mxu1  ;;  %301 = vrot.lane.b32.xlu2 %v4454_v20, %s4819_s15  ;;  %v4456_v23 = vpop.eup %4455  ;;  %v283_v34 = vmul.f32 0.5, %v4454_v20  ;;  %v422_v20 = vmul.f32 %v5064_v43, %v4930_v53  ;;  %v423_v53 = vmul.f32 %v5072_v51, %v4936_v57 }
 0x30f   :  { %4457 = vtanh.f32 %v274_v21  ;;  %v416_v42 = vmul.f32 0.5, %v4456_v23 }
 0x310   :  { %v5059_v38 = vadd.f32 0.5, %v283_v34 }
 0x311   :  { %v5067_v46 = vadd.f32 0.5, %v416_v42 }
 0x312   :  { %v291_v11 = vmul.f32 0.0, %v5059_v38 }
 0x313   :  { %v424_v25 = vmul.f32 %v5067_v46, %v4939_v61 }
 0x315   :  { %v4458_v24 = vpop.eup %4457 }
 0x316   :  { %303 = vrot.lane.b32.xlu0 %v4458_v24, %s4819_s15  ;;  %435 = vrot.lane.b32.xlu2 %v4456_v23, %s4819_s15  ;;  %v284_v55 = vmul.f32 0.5, %v4458_v24 }
 0x318   :  { %v5076_v56 = vadd.f32 0.5, %v284_v55 }
 0x31a   :  { %v292_v24 = vmul.f32 0.0, %v5076_v56 }
 0x350   :  { %v300_v27 = vpop.permute.xlu2 %299 }
 0x351   :  { %v310_v28 = vmul.f32 %v300_v27, %v5048_v26 }
 0x353   :  { %319 = vrot.lane.b32.xlu1 %v310_v28, %s4819_s15 }
 0x360   :  { %v298_v31 = vpop.permute.xlu1 %297 }
 0x361   :  { %v309_v32 = vmul.f32 %v298_v31, %v5052_v30 }
 0x363   :  { %317 = vrot.lane.b32.xlu0 %v309_v32, %s4819_s15 }
 0x366   :  { %v430_v36 = vpop.permute.xlu0 %429 }
 0x367   :  { %v441_v37 = vmul.f32 %v430_v36, %v5056_v35 }
 0x368   :  { %v302_v39 = vpop.permute.xlu2 %301 }
 0x369   :  { %v311_v40 = vmul.f32 %v302_v39, %v5059_v38  ;;  %449 = vrot.lane.b32.xlu2 %v441_v37, %s4819_s15 }
 0x36b   :  { %321 = vrot.lane.b32.xlu1 %v311_v40, %s4819_s15 }
 0x36e   :  { %v432_v44 = vpop.permute.xlu1 %431 }
 0x36f   :  { %v442_v45 = vmul.f32 %v432_v44, %v5064_v43 }
 0x370   :  { %v436_v47 = vpop.permute.xlu2 %435 }
 0x371   :  { %v444_v48 = vmul.f32 %v436_v47, %v5067_v46  ;;  %451 = vrot.lane.b32.xlu0 %v442_v45, %s4819_s15 }
 0x373   :  { %455 = vrot.lane.b32.xlu1 %v444_v48, %s4819_s15 }
 0x376   :  { %v434_v52 = vpop.permute.xlu1 %433 }
 0x377   :  { %v443_v54 = vmul.f32 %v434_v52, %v5072_v51 }
 0x379   :  { %453 = vrot.lane.b32.xlu0 %v443_v54, %s4819_s15 }
 0x388   :  { %v304_v58 = vpop.permute.xlu0 %303 }
 0x389   :  { %v312_v59 = vmul.f32 %v304_v58, %v5076_v56 }
 0x38b   :  { %323 = vrot.lane.b32.xlu2 %v312_v59, %s4819_s15 }
 0x3c3   :  { %v450_v62 = vpop.permute.xlu2 %449 }
 0x3c4   :  { %v5082_v63 = vadd.f32 %v450_v62, %v421_v60 }
 0x3c5   :  { %v320_v1 = vpop.permute.xlu1 %319 }
 0x3c6   :  { %4459 = vtanh.f32 %v5082_v63  ;;  %v5086_v2 = vadd.f32 %v320_v1, %v290_v0 }
 0x3c8   :  { %4461 = vtanh.f32 %v5086_v2 }
 0x3cc   :  { %v4460_v3 = vpop.eup %4459 }
 0x3cd   :  { %473 = vrot.lane.b32.xlu1 %v4460_v3, %s4819_s15 }
 0x3ce   :  { %v4462_v5 = vpop.eup %4461 }
 0x3cf   :  { %343 = vrot.lane.b32.xlu0 %v4462_v5, %s4819_s15 }
 0x3d5   :  { %v318_v7 = vpop.permute.xlu0 %317 }
 0x3d6   :  { %v5092_v8 = vadd.f32 %v318_v7, %v289_v49 }
 0x3d8   :  { %4463 = vtanh.f32 %v5092_v8 }
 0x3dd   :  { %v322_v17 = vpop.permute.xlu1 %321 }
 0x3de   :  { %v4464_v18 = vpop.eup %4463  ;;  %v5096_v19 = vadd.f32 %v322_v17, %v291_v11 }
 0x3df   :  { %341 = vrot.lane.b32.xlu2 %v4464_v18, %s4819_s15 }
 0x3e0   :  { %4465 = vtanh.f32 %v5096_v19 }
 0x3e3   :  { %v452_v21 = vpop.permute.xlu0 %451 }
 0x3e4   :  { %v5102_v23 = vadd.f32 %v452_v21, %v422_v20 }
 0x3e5   :  { %v324_v27 = vpop.permute.xlu2 %323  ;;  %v456_v28 = vpop.permute.xlu1 %455 }
 0x3e6   :  { %v4466_v29 = vpop.eup %4465  ;;  %4467 = vtanh.f32 %v5102_v23  ;;  %v5108_v31 = vadd.f32 %v324_v27, %v292_v24  ;;  %v5110_v32 = vadd.f32 %v456_v28, %v424_v25 }
 0x3e7   :  { %345 = vrot.lane.b32.xlu0 %v4466_v29, %s4819_s15 }
 0x3e8   :  { %4469 = vtanh.f32 %v5108_v31 }
 0x3e9   :  { %4471 = vtanh.f32 %v5110_v32 }
 0x3eb   :  { %v454_v33 = vpop.permute.xlu0 %453 }
 0x3ec   :  { %v4468_v61 = vpop.eup %4467  ;;  %v5117_v34 = vadd.f32 %v454_v33, %v423_v53 }
 0x3ed   :  { %475 = vrot.lane.b32.xlu2 %v4468_v61, %s4819_s15 }
 0x3ee   :  { %v4470_v36 = vpop.eup %4469  ;;  %4473 = vtanh.f32 %v5117_v34 }
 0x3ef   :  { %v4472_v37 = vpop.eup %4471  ;;  %347 = vrot.lane.b32.xlu1 %v4470_v36, %s4819_s15 }
 0x3f0   :  { %479 = vrot.lane.b32.xlu0 %v4472_v37, %s4819_s15 }
 0x3f4   :  { %v4474_v39 = vpop.eup %4473 }
 0x3f5   :  { %477 = vrot.lane.b32.xlu2 %v4474_v39, %s4819_s15 }
 0x439   :  { %v342_v40 = vpop.permute.xlu2 %341 }
 0x43a   :  { %v353_v57 = vmul.f32 %v342_v40, %v5052_v30  ;;  %v3862_v40 = vld [vmem:[%s6668_s0 + $0x50] sm:$0xff] }
 0x43f   :  { %v474_v45 = vpop.permute.xlu1 %473 }
 0x440   :  { %v485_v48 = vmul.f32 %v474_v45, %v5056_v35 }
 0x441   :  { %v344_v41 = vpop.permute.xlu0 %343 }
 0x442   :  { %v354_v42 = vmul.f32 %v344_v41, %v5048_v26 }
 0x444   :  { %v4111_v44 = vpack.i.bf16 %v354_v42, %v353_v57 }
 0x446   :  { %4112 = vrot.lane.b32.xlu2 %v4111_v44, %s4823_s13 }
 0x447   :  { %v476_v47 = vpop.permute.xlu2 %475 }
 0x448   :  { %v486_v50 = vmul.f32 %v476_v47, %v5064_v43 }
 0x44a   :  { %v4116_v52 = vpack.i.bf16 %v486_v50, %v485_v48 }
 0x44c   :  { %4107 = vrot.lane.b32.xlu1 %v4116_v52, %s4821_s17  ;;  %4117 = vrot.lane.b32.xlu0 %v4116_v52, %s4820_s16 }
 0x44f   :  { %v478_v55 = vpop.permute.xlu2 %477 }
 0x450   :  { %v487_v60 = vmul.f32 %v478_v55, %v5072_v51  ;;  %v3861_v51 = vld [vmem:[%s6668_s0 + $0x48] sm:$0xff] }
 0x459   :  { %v346_v54 = vpop.permute.xlu0 %345 }
 0x45a   :  { %v355_v26 = vmul.f32 %v346_v54, %v5059_v38  ;;  %v3860_v38 = vld [vmem:[%s6668_s0 + $0x40] sm:$0xff] }
 0x461   :  { %v348_v30 = vpop.permute.xlu1 %347 }
 0x462   :  { %v356_v58 = vmul.f32 %v348_v30, %v5076_v56  ;;  %v480_v59 = vpop.permute.xlu0 %479 }
 0x463   :  { %v488_v62 = vmul.f32 %v480_v59, %v5067_v46 }
 0x464   :  { %v4126_v35 = vpack.i.bf16 %v356_v58, %v355_v26 }
 0x465   :  { %v4131_v0 = vpack.i.bf16 %v488_v62, %v487_v60 }
 0x466   :  { %4127 = vrot.lane.b32.xlu2 %v4126_v35, %s4823_s13 }
 0x467   :  { %4132 = vrot.lane.b32.xlu0 %v4131_v0, %s4820_s16  ;;  %4122 = vrot.lane.b32.xlu1 %v4131_v0, %s4821_s17 }
 0x4a0   :  { %v4113_v43 = vpop.permute.xlu2 %4112 }
 0x4a1   :  { %v4115_v7 = vunpack.i.h.bf16 %v4113_v43  ;;  %v4114_v11 = vunpack.i.l.bf16 %v4113_v43 }
 0x4be   :  { %v4108_v1 = vpop.permute.xlu1 %4107  ;;  %v4118_v56 = vpop.permute.xlu0 %4117 }
 0x4bf   :  { %v4110_v46 = vunpack.i.h.bf16 %v4108_v1  ;;  %v4109_v3 = vunpack.i.l.bf16 %v4108_v1  ;;  %v4120_v5 = vunpack.i.h.bf16 %v4118_v56  ;;  %v4119_v49 = vunpack.i.l.bf16 %v4118_v56 }
 0x4c0   :  { %v4128_v33 = vpop.permute.xlu2 %4127 }
 0x4c1   :  { %v654_v17 = vsel %vm36_vm2, %v3861_v51, %v4120_v5  ;;  %v653_v18 = vsel %vm36_vm2, %v3860_v38, %v4119_v49  ;;  %v521_v20 = vsel %vm197_vm6, %v4109_v3, %v4114_v11  ;;  %v522_v21 = vsel %vm197_vm6, %v4110_v46, %v4115_v7 }
 0x4c2   :  { %v657_v24 = vsel %vm41_vm3, %v653_v18, 1.0  ;;  %v658_v25 = vsel %vm41_vm3, %v654_v17, 1.0  ;;  %v525_v27 = vsel %vm202_vm7, %v521_v20, 1.0  ;;  %v526_v28 = vsel %vm202_vm7, %v522_v21, 1.0 }
 0x4c3   :  { %v661_v29 = vpack.c.bf16 %v658_v25, %v657_v24  ;;  %v529_v53 = vpack.c.bf16 %v526_v28, %v525_v27  ;;  %v4130_v61 = vunpack.i.h.bf16 %v4128_v33  ;;  %v4129_v36 = vunpack.i.l.bf16 %v4128_v33 }
 0x4c5   :  { %3864 = vmatmul.msk.bf16.vlgmr.msrb.gmra.mxu0 %vm68_vm4, %v661_v29  ;;  %3858 = vmatmul.msk.bf16.vlgmr.msra.gmra.mxu3 %vm245_vm8, %v529_v53 }
 0x4c6   :  { %1790 = vmatpush.bf16.msrb.mxu0 %v4870_v6  ;;  %1656 = vmatpush.bf16.msra.mxu3 %v4952_v13 }
 0x4ca   :  { %1791 = vmatpush.bf16.msrb.mxu0 %v4882_v9  ;;  %1657 = vmatpush.bf16.msra.mxu3 %v4958_v14  ;;  %v3863_v9 = vld [vmem:[%s6668_s0 + $0x58] sm:$0xff] }
 0x4ce   :  { %1792 = vmatpush.bf16.msrb.mxu0 %v4891_v12  ;;  %1658 = vmatpush.bf16.msra.mxu3 %v4966_v15 }
 0x4d2   :  { %1659 = vmatpush.bf16.msra.mxu3 %v4974_v16 }
 0x4d6   :  { %1660 = vmatpush.bf16.msra.mxu3 %v4987_v22 }
 0x4d9   :  { %v4123_v37 = vpop.permute.xlu1 %4122  ;;  %v4133_v39 = vpop.permute.xlu0 %4132 }
 0x4da   :  { %v4125_v12 = vunpack.i.h.bf16 %v4123_v37  ;;  %v4124_v41 = vunpack.i.l.bf16 %v4123_v37  ;;  %v4135_v57 = vunpack.i.h.bf16 %v4133_v39  ;;  %v4134_v42 = vunpack.i.l.bf16 %v4133_v39 }
 0x4dc   :  { %v523_v44 = vsel %vm197_vm6, %v4124_v41, %v4129_v36  ;;  %v524_v45 = vsel %vm197_vm6, %v4125_v12, %v4130_v61  ;;  %v655_v47 = vsel %vm36_vm2, %v3862_v40, %v4134_v42  ;;  %v656_v48 = vsel %vm36_vm2, %v3863_v9, %v4135_v57 }
 0x4dd   :  { %v527_v50 = vsel %vm202_vm7, %v523_v44, 1.0  ;;  %v528_v52 = vsel %vm202_vm7, %v524_v45, 1.0  ;;  %v659_v54 = vsel %vm41_vm3, %v655_v47, 1.0  ;;  %v660_v55 = vsel %vm41_vm3, %v656_v48, 1.0 }
 0x4de   :  { %v530_v30 = vpack.c.bf16 %v528_v52, %v527_v50  ;;  %v662_v26 = vpack.c.bf16 %v660_v55, %v659_v54 }
 0x4e0   :  { %3859 = vmatmul.msk.bf16.gmra.mxu3 %vm245_vm8, %v530_v30  ;;  %3865 = vmatmul.msk.bf16.gmra.mxu0 %vm68_vm4, %v662_v26 }
 0x542   :  { %v678_v58 = vpop.f32.mrf.mxu0 }
 0x543   :  { %4475 = vtanh.f32 %v678_v58 }
 0x548   :  { %v546_v60 = vpop.f32.mrf.mxu3 }
 0x549   :  { %v4476_v59 = vpop.eup %4475  ;;  %4477 = vtanh.f32 %v546_v60 }
 0x54a   :  { %708 = vrot.lane.b32.xlu0 %v4476_v59, %s4819_s15  ;;  %v680_v62 = vpop.f32.mrf.mxu0  ;;  %v692_v21 = vmul.f32 0.5, %v4476_v59 }
 0x54b   :  { %4479 = vtanh.f32 %v680_v62 }
 0x54c   :  { %v5190_v24 = vadd.f32 0.5, %v692_v21 }
 0x54e   :  { %v700_v58 = vmul.f32 %v5190_v24, %v5082_v63 }
 0x54f   :  { %v4478_v35 = vpop.eup %4477 }
 0x550   :  { %v548_v0 = vpop.f32.mrf.mxu3  ;;  %576 = vrot.lane.b32.xlu1 %v4478_v35, %s4819_s15  ;;  %v560_v28 = vmul.f32 0.5, %v4478_v35 }
 0x551   :  { %4481 = vtanh.f32 %v548_v0  ;;  %v4480_v43 = vpop.eup %4479 }
 0x552   :  { %v5194_v53 = vadd.f32 0.5, %v560_v28  ;;  %v693_v40 = vmul.f32 0.5, %v4480_v43 }
 0x554   :  { %v5202_v12 = vadd.f32 0.5, %v693_v40  ;;  %v568_v63 = vmul.f32 %v5194_v53, %v5092_v8 }
 0x557   :  { %v4482_v1 = vpop.eup %4481 }
 0x558   :  { %578 = vrot.lane.b32.xlu2 %v4482_v1, %s4819_s15  ;;  %710 = vrot.lane.b32.xlu1 %v4480_v43, %s4819_s15  ;;  %v561_v11 = vmul.f32 0.5, %v4482_v1 }
 0x55a   :  { %v5186_v17 = vadd.f32 0.5, %v561_v11 }
 0x55c   :  { %v569_v35 = vmul.f32 %v5186_v17, %v5086_v2 }
 0x55d   :  { %v683_v38 = vpop.f32.mrf.mxu0 }
 0x55e   :  { %4483 = vtanh.f32 %v683_v38 }
 0x563   :  { %v551_v51 = vpop.f32.mrf.mxu3 }
 0x564   :  { %v4484_v56 = vpop.eup %4483  ;;  %4485 = vtanh.f32 %v551_v51 }
 0x565   :  { %712 = vrot.lane.b32.xlu1 %v4484_v56, %s4819_s15  ;;  %v685_v46 = vpop.f32.mrf.mxu0  ;;  %v694_v47 = vmul.f32 0.5, %v4484_v56 }
 0x566   :  { %4487 = vtanh.f32 %v685_v46 }
 0x567   :  { %v5210_v48 = vadd.f32 0.5, %v694_v47 }
 0x56a   :  { %v4486_v3 = vpop.eup %4485 }
 0x56b   :  { %580 = vrot.lane.b32.xlu2 %v4486_v3, %s4819_s15  ;;  %v553_v5 = vpop.f32.mrf.mxu3  ;;  %v562_v29 = vmul.f32 0.5, %v4486_v3  ;;  %v701_v3 = vmul.f32 %v5202_v12, %v5102_v23 }
 0x56c   :  { %4489 = vtanh.f32 %v553_v5  ;;  %v4488_v49 = vpop.eup %4487 }
 0x56d   :  { %v5197_v36 = vadd.f32 0.5, %v562_v29  ;;  %v695_v9 = vmul.f32 0.5, %v4488_v49 }
 0x56f   :  { %v5205_v42 = vadd.f32 0.5, %v695_v9  ;;  %v570_v56 = vmul.f32 %v5197_v36, %v5096_v19 }
 0x571   :  { %v703_v19 = vmul.f32 %v5205_v42, %v5110_v32 }
 0x572   :  { %v4490_v7 = vpop.eup %4489 }
 0x573   :  { %582 = vrot.lane.b32.xlu0 %v4490_v7, %s4819_s15  ;;  %714 = vrot.lane.b32.xlu2 %v4488_v49, %s4819_s15  ;;  %v563_v54 = vmul.f32 0.5, %v4490_v7 }
 0x575   :  { %v5214_v55 = vadd.f32 0.5, %v563_v54 }
 0x577   :  { %v571_v8 = vmul.f32 %v5214_v55, %v5108_v31 }
 0x5b2   :  { %v579_v18 = vpop.permute.xlu2 %578 }
 0x5b3   :  { %v589_v20 = vmul.f32 %v579_v18, %v5186_v17 }
 0x5b5   :  { %598 = vrot.lane.b32.xlu1 %v589_v20, %s4819_s15 }
 0x5bc   :  { %v709_v25 = vpop.permute.xlu0 %708 }
 0x5bd   :  { %v720_v27 = vmul.f32 %v709_v25, %v5190_v24  ;;  %v702_v25 = vmul.f32 %v5210_v48, %v5117_v34 }
 0x5bf   :  { %728 = vrot.lane.b32.xlu2 %v720_v27, %s4819_s15 }
 0x5c2   :  { %v577_v33 = vpop.permute.xlu1 %576 }
 0x5c3   :  { %v588_v61 = vmul.f32 %v577_v33, %v5194_v53 }
 0x5c5   :  { %v581_v37 = vpop.permute.xlu2 %580  ;;  %596 = vrot.lane.b32.xlu0 %v588_v61, %s4819_s15 }
 0x5c6   :  { %v590_v39 = vmul.f32 %v581_v37, %v5197_v36 }
 0x5c8   :  { %600 = vrot.lane.b32.xlu1 %v590_v39, %s4819_s15 }
 0x5ca   :  { %v711_v41 = vpop.permute.xlu1 %710 }
 0x5cb   :  { %v721_v57 = vmul.f32 %v711_v41, %v5202_v12 }
 0x5cd   :  { %v715_v44 = vpop.permute.xlu2 %714  ;;  %730 = vrot.lane.b32.xlu0 %v721_v57, %s4819_s15 }
 0x5ce   :  { %v723_v45 = vmul.f32 %v715_v44, %v5205_v42 }
 0x5d0   :  { %734 = vrot.lane.b32.xlu1 %v723_v45, %s4819_s15 }
 0x5d7   :  { %v713_v50 = vpop.permute.xlu1 %712 }
 0x5d8   :  { %v722_v52 = vmul.f32 %v713_v50, %v5210_v48 }
 0x5da   :  { %732 = vrot.lane.b32.xlu0 %v722_v52, %s4819_s15 }
 0x5e5   :  { %v583_v30 = vpop.permute.xlu0 %582 }
 0x5e6   :  { %v591_v26 = vmul.f32 %v583_v30, %v5214_v55 }
 0x5e8   :  { %602 = vrot.lane.b32.xlu2 %v591_v26, %s4819_s15 }
 0x619   :  { %v729_v59 = vpop.permute.xlu2 %728 }
 0x61a   :  { %v5220_v60 = vadd.f32 %v729_v59, %v700_v58 }
 0x61c   :  { %4491 = vtanh.f32 %v5220_v60 }
 0x622   :  { %v4492_v62 = vpop.eup %4491 }
 0x623   :  { %752 = vrot.lane.b32.xlu1 %v4492_v62, %s4819_s15 }
 0x627   :  { %v599_v0 = vpop.permute.xlu1 %598 }
 0x628   :  { %v5226_v43 = vadd.f32 %v599_v0, %v569_v35 }
 0x62a   :  { %4493 = vtanh.f32 %v5226_v43 }
 0x630   :  { %v4494_v1 = vpop.eup %4493 }
 0x631   :  { %622 = vrot.lane.b32.xlu0 %v4494_v1, %s4819_s15 }
 0x637   :  { %v597_v38 = vpop.permute.xlu0 %596 }
 0x638   :  { %v5232_v51 = vadd.f32 %v597_v38, %v568_v63 }
 0x63a   :  { %v601_v46 = vpop.permute.xlu1 %600  ;;  %4495 = vtanh.f32 %v5232_v51 }
 0x63b   :  { %v5237_v2 = vadd.f32 %v601_v46, %v570_v56 }
 0x63d   :  { %4497 = vtanh.f32 %v5237_v2 }
 0x63f   :  { %v731_v5 = vpop.permute.xlu0 %730 }
 0x640   :  { %v4496_v49 = vpop.eup %4495  ;;  %v5242_v7 = vadd.f32 %v731_v5, %v701_v3 }
 0x641   :  { %620 = vrot.lane.b32.xlu2 %v4496_v49, %s4819_s15 }
 0x642   :  { %v603_v11 = vpop.permute.xlu2 %602  ;;  %v735_v18 = vpop.permute.xlu1 %734  ;;  %4499 = vtanh.f32 %v5242_v7 }
 0x643   :  { %v4498_v20 = vpop.eup %4497  ;;  %v5250_v21 = vadd.f32 %v603_v11, %v571_v8  ;;  %v5252_v23 = vadd.f32 %v735_v18, %v703_v19 }
 0x644   :  { %624 = vrot.lane.b32.xlu0 %v4498_v20, %s4819_s15  ;;  %v4811_v20 = vld [vmem:[%s6667_s1 + $0x8] sm:$0xff] }
 0x645   :  { %4501 = vtanh.f32 %v5250_v21 }
 0x646   :  { %4503 = vtanh.f32 %v5252_v23 }
 0x648   :  { %v4500_v31 = vpop.eup %4499 }
 0x649   :  { %754 = vrot.lane.b32.xlu2 %v4500_v31, %s4819_s15  ;;  %v4812_v31 = vld [vmem:[%s6667_s1] sm:$0xff] }
 0x64b   :  { %v4502_v32 = vpop.eup %4501 }
 0x64c   :  { %v4504_v27 = vpop.eup %4503  ;;  %v733_v28 = vpop.permute.xlu0 %732  ;;  %626 = vrot.lane.b32.xlu1 %v4502_v32, %s4819_s15 }
 0x64d   :  { %v5261_v29 = vadd.f32 %v733_v28, %v702_v25  ;;  %758 = vrot.lane.b32.xlu0 %v4504_v27, %s4819_s15  ;;  %v3870_v28 = vld [vmem:[%s6668_s0 + $0x70] sm:$0xff] }
 0x64f   :  { %4505 = vtanh.f32 %v5261_v29 }
 0x655   :  { %v4506_v33 = vpop.eup %4505 }
 0x656   :  { %756 = vrot.lane.b32.xlu2 %v4506_v33, %s4819_s15 }
 0x695   :  { %v753_v37 = vpop.permute.xlu1 %752 }
 0x696   :  { %v764_v9 = vmul.f32 %v753_v37, %v5190_v24 }
 0x69b   :  { %v621_v61 = vpop.permute.xlu2 %620 }
 0x69c   :  { %v632_v34 = vmul.f32 %v621_v61, %v5194_v53 }
 0x6a3   :  { %v623_v39 = vpop.permute.xlu0 %622  ;;  %v755_v40 = vpop.permute.xlu2 %754 }
 0x6a4   :  { %v633_v41 = vmul.f32 %v623_v39, %v5186_v17  ;;  %v765_v57 = vmul.f32 %v755_v40, %v5202_v12 }
 0x6a6   :  { %v4141_v44 = vpack.i.bf16 %v633_v41, %v632_v34  ;;  %v4146_v45 = vpack.i.bf16 %v765_v57, %v764_v9 }
 0x6a8   :  { %4142 = vrot.lane.b32.xlu2 %v4141_v44, %s4823_s13  ;;  %4137 = vrot.lane.b32.xlu1 %v4146_v45, %s4821_s17 }
 0x6a9   :  { %4147 = vrot.lane.b32.xlu0 %v4146_v45, %s4820_s16 }
 0x6b0   :  { %v757_v50 = vpop.permute.xlu2 %756 }
 0x6b1   :  { %v766_v17 = vmul.f32 %v757_v50, %v5210_v48  ;;  %v3868_v48 = vld [vmem:[%s6668_s0 + $0x60] sm:$0xff] }
 0x6b6   :  { %v625_v47 = vpop.permute.xlu0 %624 }
 0x6b7   :  { %v634_v54 = vmul.f32 %v625_v47, %v5197_v36 }
 0x6be   :  { %v627_v52 = vpop.permute.xlu1 %626 }
 0x6bf   :  { %v635_v24 = vmul.f32 %v627_v52, %v5214_v55  ;;  %v759_v53 = vpop.permute.xlu0 %758 }
 0x6c0   :  { %v767_v12 = vmul.f32 %v759_v53, %v5205_v42  ;;  %v3869_v42 = vld [vmem:[%s6668_s0 + $0x68] sm:$0xff] }
 0x6c1   :  { %v4156_v30 = vpack.i.bf16 %v635_v24, %v634_v54 }
 0x6c2   :  { %v4161_v26 = vpack.i.bf16 %v767_v12, %v766_v17 }
 0x6c3   :  { %4157 = vrot.lane.b32.xlu2 %v4156_v30, %s4823_s13 }
 0x6c4   :  { %4162 = vrot.lane.b32.xlu0 %v4161_v26, %s4820_s16  ;;  %4152 = vrot.lane.b32.xlu1 %v4161_v26, %s4821_s17 }
 0x702   :  { %v4143_v58 = vpop.permute.xlu2 %4142 }
 0x703   :  { %v4145_v62 = vunpack.i.h.bf16 %v4143_v58  ;;  %v4144_v35 = vunpack.i.l.bf16 %v4143_v58 }
 0x71a   :  { %v4138_v59 = vpop.permute.xlu1 %4137 }
 0x71b   :  { %v4140_v36 = vunpack.i.h.bf16 %v4138_v59  ;;  %v4139_v0 = vunpack.i.l.bf16 %v4138_v59  ;;  %v4148_v55 = vpop.permute.xlu0 %4147 }
 0x71c   :  { %v4150_v1 = vunpack.i.h.bf16 %v4148_v55  ;;  %v4149_v63 = vunpack.i.l.bf16 %v4148_v55 }
 0x71d   :  { %v801_v38 = vsel %vm197_vm6, %v4140_v36, %v4145_v62  ;;  %v800_v56 = vsel %vm197_vm6, %v4139_v0, %v4144_v35  ;;  %v4158_v32 = vpop.permute.xlu2 %4157 }
 0x71e   :  { %v933_v46 = vsel %vm36_vm2, %v3869_v42, %v4150_v1  ;;  %v932_v3 = vsel %vm36_vm2, %v3868_v48, %v4149_v63  ;;  %v804_v5 = vsel %vm202_vm7, %v800_v56, 1.0  ;;  %v805_v49 = vsel %vm202_vm7, %v801_v38, 1.0 }
 0x71f   :  { %v808_v8 = vpack.c.bf16 %v805_v49, %v804_v5  ;;  %v936_v19 = vsel %vm41_vm3, %v932_v3, 1.0  ;;  %v937_v11 = vsel %vm41_vm3, %v933_v46, 1.0  ;;  %v4159_v25 = vunpack.i.l.bf16 %v4158_v32 }
 0x720   :  { %v940_v18 = vpack.c.bf16 %v937_v11, %v936_v19 }
 0x721   :  { %3866 = vmatmul.msk.bf16.vlgmr.msrb.gmra.mxu2 %vm245_vm8, %v808_v8 }
 0x722   :  { %3872 = vmatmul.msk.bf16.vlgmr.msrb.gmra.mxu1 %vm68_vm4, %v940_v18  ;;  %1935 = vmatpush.bf16.msrb.mxu2 %v4952_v13 }
 0x723   :  { %2069 = vmatpush.bf16.msrb.mxu1 %v4870_v6  ;;  %v4160_v6 = vunpack.i.h.bf16 %v4158_v32 }
 0x726   :  { %1936 = vmatpush.bf16.msrb.mxu2 %v4958_v14 }
 0x727   :  { %2070 = vmatpush.bf16.msrb.mxu1 %v4811_v20 }
 0x72a   :  { %1937 = vmatpush.bf16.msrb.mxu2 %v4966_v15  ;;  %v3871_v15 = vld [vmem:[%s6668_s0 + $0x78] sm:$0xff] }
 0x72b   :  { %2071 = vmatpush.bf16.msrb.mxu1 %v4812_v31 }
 0x72e   :  { %1938 = vmatpush.bf16.msrb.mxu2 %v4974_v16 }
 0x732   :  { %1939 = vmatpush.bf16.msrb.mxu2 %v4987_v22 }
 0x736   :  { %v4153_v14 = vpop.permute.xlu1 %4152  ;;  %v4163_v27 = vpop.permute.xlu0 %4162 }
 0x737   :  { %v4155_v33 = vunpack.i.h.bf16 %v4153_v14  ;;  %v4154_v61 = vunpack.i.l.bf16 %v4153_v14  ;;  %v4165_v37 = vunpack.i.h.bf16 %v4163_v27  ;;  %v4164_v39 = vunpack.i.l.bf16 %v4163_v27 }
 0x739   :  { %v802_v16 = vsel %vm197_vm6, %v4154_v61, %v4159_v25  ;;  %v803_v22 = vsel %vm197_vm6, %v4155_v33, %v4160_v6  ;;  %v934_v40 = vsel %vm36_vm2, %v3870_v28, %v4164_v39  ;;  %v935_v9 = vsel %vm36_vm2, %v3871_v15, %v4165_v37 }
 0x73a   :  { %v806_v34 = vsel %vm202_vm7, %v802_v16, 1.0  ;;  %v807_v41 = vsel %vm202_vm7, %v803_v22, 1.0  ;;  %v938_v57 = vsel %vm41_vm3, %v934_v40, 1.0  ;;  %v939_v44 = vsel %vm41_vm3, %v935_v9, 1.0 }
 0x73b   :  { %v809_v45 = vpack.c.bf16 %v807_v41, %v806_v34  ;;  %v941_v47 = vpack.c.bf16 %v939_v44, %v938_v57 }
 0x73d   :  { %3867 = vmatmul.msk.bf16.gmra.mxu2 %vm245_vm8, %v809_v45  ;;  %3873 = vmatmul.msk.bf16.gmra.mxu1 %vm68_vm4, %v941_v47 }
 0x79f   :  { %v957_v50 = vpop.f32.mrf.mxu1 }
 0x7a0   :  { %4507 = vtanh.f32 %v957_v50 }
 0x7a4   :  { %v825_v52 = vpop.f32.mrf.mxu2 }
 0x7a5   :  { %4509 = vtanh.f32 %v825_v52 }
 0x7a6   :  { %v4508_v54 = vpop.eup %4507 }
 0x7a7   :  { %987 = vrot.lane.b32.xlu0 %v4508_v54, %s4819_s15  ;;  %v959_v24 = vpop.f32.mrf.mxu1  ;;  %v971_v38 = vmul.f32 0.5, %v4508_v54 }
 0x7a8   :  { %4511 = vtanh.f32 %v959_v24 }
 0x7a9   :  { %v5336_v56 = vadd.f32 0.5, %v971_v38 }
 0x7ab   :  { %v4510_v53 = vpop.eup %4509  ;;  %v979_v41 = vmul.f32 %v5336_v56, %v5220_v60 }
 0x7ac   :  { %v827_v17 = vpop.f32.mrf.mxu2  ;;  %855 = vrot.lane.b32.xlu1 %v4510_v53, %s4819_s15  ;;  %v839_v3 = vmul.f32 0.5, %v4510_v53 }
 0x7ad   :  { %4513 = vtanh.f32 %v827_v17 }
 0x7ae   :  { %v4512_v12 = vpop.eup %4511  ;;  %v5340_v8 = vadd.f32 0.5, %v839_v3 }
 0x7af   :  { %v972_v31 = vmul.f32 0.5, %v4512_v12 }
 0x7b0   :  { %v847_v60 = vmul.f32 %v5340_v8, %v5232_v51 }
 0x7b1   :  { %v5348_v25 = vadd.f32 0.5, %v972_v31 }
 0x7b3   :  { %v4514_v30 = vpop.eup %4513 }
 0x7b4   :  { %857 = vrot.lane.b32.xlu2 %v4514_v30, %s4819_s15  ;;  %989 = vrot.lane.b32.xlu1 %v4512_v12, %s4819_s15  ;;  %v840_v42 = vmul.f32 0.5, %v4514_v30  ;;  %v980_v30 = vmul.f32 %v5348_v25, %v5242_v7 }
 0x7b6   :  { %v5332_v55 = vadd.f32 0.5, %v840_v42 }
 0x7b8   :  { %v848_v47 = vmul.f32 %v5332_v55, %v5226_v43 }
 0x7ba   :  { %v962_v26 = vpop.f32.mrf.mxu1 }
 0x7bb   :  { %4515 = vtanh.f32 %v962_v26 }
 0x7c0   :  { %v830_v58 = vpop.f32.mrf.mxu2 }
 0x7c1   :  { %v4516_v59 = vpop.eup %4515  ;;  %4517 = vtanh.f32 %v830_v58 }
 0x7c2   :  { %991 = vrot.lane.b32.xlu1 %v4516_v59, %s4819_s15  ;;  %v964_v62 = vpop.f32.mrf.mxu1  ;;  %v973_v61 = vmul.f32 0.5, %v4516_v59 }
 0x7c3   :  { %4519 = vtanh.f32 %v964_v62 }
 0x7c4   :  { %v5356_v37 = vadd.f32 0.5, %v973_v61 }
 0x7c7   :  { %v4518_v35 = vpop.eup %4517 }
 0x7c8   :  { %859 = vrot.lane.b32.xlu2 %v4518_v35, %s4819_s15  ;;  %v832_v36 = vpop.f32.mrf.mxu2  ;;  %v841_v49 = vmul.f32 0.5, %v4518_v35 }
 0x7c9   :  { %4521 = vtanh.f32 %v832_v36  ;;  %v4520_v0 = vpop.eup %4519 }
 0x7ca   :  { %v5343_v18 = vadd.f32 0.5, %v841_v49  ;;  %v974_v6 = vmul.f32 0.5, %v4520_v0 }
 0x7cc   :  { %v5351_v28 = vadd.f32 0.5, %v974_v6  ;;  %v849_v17 = vmul.f32 %v5343_v18, %v5237_v2 }
 0x7ce   :  { %v982_v2 = vmul.f32 %v5351_v28, %v5252_v23  ;;  %v981_v23 = vmul.f32 %v5356_v37, %v5261_v29 }
 0x7cf   :  { %v4522_v48 = vpop.eup %4521 }
 0x7d0   :  { %861 = vrot.lane.b32.xlu0 %v4522_v48, %s4819_s15  ;;  %993 = vrot.lane.b32.xlu2 %v4520_v0, %s4819_s15  ;;  %v842_v22 = vmul.f32 0.5, %v4522_v48 }
 0x7d2   :  { %v5360_v40 = vadd.f32 0.5, %v842_v22 }
 0x7d4   :  { %v850_v51 = vmul.f32 %v5360_v40, %v5250_v21 }
 0x80e   :  { %v858_v1 = vpop.permute.xlu2 %857 }
 0x80f   :  { %v868_v63 = vmul.f32 %v858_v1, %v5332_v55 }
 0x811   :  { %877 = vrot.lane.b32.xlu1 %v868_v63, %s4819_s15 }
 0x819   :  { %v988_v46 = vpop.permute.xlu0 %987 }
 0x81a   :  { %v999_v5 = vmul.f32 %v988_v46, %v5336_v56 }
 0x81c   :  { %1007 = vrot.lane.b32.xlu2 %v999_v5, %s4819_s15 }
 0x81e   :  { %v856_v19 = vpop.permute.xlu1 %855 }
 0x81f   :  { %v867_v11 = vmul.f32 %v856_v19, %v5340_v8 }
 0x821   :  { %875 = vrot.lane.b32.xlu0 %v867_v11, %s4819_s15 }
 0x822   :  { %v860_v20 = vpop.permute.xlu2 %859 }
 0x823   :  { %v869_v32 = vmul.f32 %v860_v20, %v5343_v18 }
 0x825   :  { %879 = vrot.lane.b32.xlu1 %v869_v32, %s4819_s15 }
 0x826   :  { %v990_v14 = vpop.permute.xlu1 %989 }
 0x827   :  { %v1000_v27 = vmul.f32 %v990_v14, %v5348_v25 }
 0x829   :  { %1009 = vrot.lane.b32.xlu0 %v1000_v27, %s4819_s15 }
 0x82a   :  { %v994_v15 = vpop.permute.xlu2 %993 }
 0x82b   :  { %v1002_v33 = vmul.f32 %v994_v15, %v5351_v28 }
 0x82d   :  { %1013 = vrot.lane.b32.xlu1 %v1002_v33, %s4819_s15 }
 0x834   :  { %v992_v39 = vpop.permute.xlu1 %991 }
 0x835   :  { %v1001_v16 = vmul.f32 %v992_v39, %v5356_v37 }
 0x837   :  { %1011 = vrot.lane.b32.xlu0 %v1001_v16, %s4819_s15 }
 0x842   :  { %v862_v9 = vpop.permute.xlu0 %861 }
 0x843   :  { %v870_v34 = vmul.f32 %v862_v9, %v5360_v40 }
 0x845   :  { %881 = vrot.lane.b32.xlu2 %v870_v34, %s4819_s15 }
 0x876   :  { %v1008_v57 = vpop.permute.xlu2 %1007 }
 0x877   :  { %v5366_v44 = vadd.f32 %v1008_v57, %v979_v41 }
 0x879   :  { %4523 = vtanh.f32 %v5366_v44 }
 0x87f   :  { %v4524_v45 = vpop.eup %4523 }
 0x880   :  { %1031 = vrot.lane.b32.xlu1 %v4524_v45, %s4819_s15 }
 0x883   :  { %v878_v50 = vpop.permute.xlu1 %877 }
 0x884   :  { %v5372_v52 = vadd.f32 %v878_v50, %v848_v47 }
 0x886   :  { %4525 = vtanh.f32 %v5372_v52 }
 0x88c   :  { %v4526_v54 = vpop.eup %4525 }
 0x88d   :  { %901 = vrot.lane.b32.xlu0 %v4526_v54, %s4819_s15 }
 0x893   :  { %v876_v24 = vpop.permute.xlu0 %875 }
 0x894   :  { %v5378_v53 = vadd.f32 %v876_v24, %v847_v60 }
 0x896   :  { %4527 = vtanh.f32 %v5378_v53 }
 0x897   :  { %v880_v43 = vpop.permute.xlu1 %879 }
 0x898   :  { %v5383_v12 = vadd.f32 %v880_v43, %v849_v17 }
 0x89a   :  { %4529 = vtanh.f32 %v5383_v12 }
 0x89b   :  { %v1010_v26 = vpop.permute.xlu0 %1009 }
 0x89c   :  { %v4528_v58 = vpop.eup %4527  ;;  %v5388_v59 = vadd.f32 %v1010_v26, %v980_v30 }
 0x89d   :  { %899 = vrot.lane.b32.xlu2 %v4528_v58, %s4819_s15  ;;  %v4813_v58 = vld [vmem:[%s6669_s2 + $0x18] sm:$0xff] }
 0x89e   :  { %4531 = vtanh.f32 %v5388_v59 }
 0x89f   :  { %v882_v62 = vpop.permute.xlu2 %881  ;;  %v1014_v35 = vpop.permute.xlu1 %1013 }
 0x8a0   :  { %v4530_v36 = vpop.eup %4529  ;;  %v5396_v0 = vadd.f32 %v882_v62, %v850_v51  ;;  %v5398_v7 = vadd.f32 %v1014_v35, %v982_v2  ;;  %v4814_v51 = vld [vmem:[%s6669_s2 + $0x10] sm:$0xff]  ;;  %v4815_v2 = vld [vmem:[%s6669_s2 + $0x8] sm:$0xff] }
 0x8a1   :  { %903 = vrot.lane.b32.xlu0 %v4530_v36, %s4819_s15 }
 0x8a2   :  { %4533 = vtanh.f32 %v5396_v0 }
 0x8a3   :  { %4535 = vtanh.f32 %v5398_v7 }
 0x8a4   :  { %v4532_v48 = vpop.eup %4531 }
 0x8a5   :  { %1033 = vrot.lane.b32.xlu2 %v4532_v48, %s4819_s15 }
 0x8a8   :  { %v4534_v21 = vpop.eup %4533 }
 0x8a9   :  { %v4536_v42 = vpop.eup %4535  ;;  %v1012_v1 = vpop.permute.xlu0 %1011  ;;  %905 = vrot.lane.b32.xlu1 %v4534_v21, %s4819_s15 }
 0x8aa   :  { %v5407_v63 = vadd.f32 %v1012_v1, %v981_v23  ;;  %1037 = vrot.lane.b32.xlu0 %v4536_v42, %s4819_s15  ;;  %v3878_v23 = vld [vmem:[%s6668_s0 + $0x90] sm:$0xff]  ;;  %v3879_v42 = vld [vmem:[%s6668_s0 + $0x98] sm:$0xff] }
 0x8ac   :  { %4537 = vtanh.f32 %v5407_v63 }
 0x8b2   :  { %v4538_v38 = vpop.eup %4537 }
 0x8b3   :  { %1035 = vrot.lane.b32.xlu2 %v4538_v38, %s4819_s15 }
 0x8f2   :  { %v1032_v3 = vpop.permute.xlu1 %1031 }
 0x8f3   :  { %v1043_v19 = vmul.f32 %v1032_v3, %v5336_v56 }
 0x8f7   :  { %v900_v46 = vpop.permute.xlu2 %899 }
 0x8f8   :  { %v911_v29 = vmul.f32 %v900_v46, %v5340_v8 }
 0x8ff   :  { %v902_v5 = vpop.permute.xlu0 %901  ;;  %v1034_v49 = vpop.permute.xlu2 %1033 }
 0x900   :  { %v912_v11 = vmul.f32 %v902_v5, %v5332_v55  ;;  %v1044_v20 = vmul.f32 %v1034_v49, %v5348_v25 }
 0x902   :  { %v4171_v31 = vpack.i.bf16 %v912_v11, %v911_v29  ;;  %v4176_v32 = vpack.i.bf16 %v1044_v20, %v1043_v19 }
 0x904   :  { %4172 = vrot.lane.b32.xlu2 %v4171_v31, %s4823_s13  ;;  %4167 = vrot.lane.b32.xlu1 %v4176_v32, %s4821_s17 }
 0x905   :  { %4177 = vrot.lane.b32.xlu0 %v4176_v32, %s4820_s16 }
 0x90d   :  { %v1036_v14 = vpop.permute.xlu2 %1035 }
 0x90e   :  { %v1045_v55 = vmul.f32 %v1036_v14, %v5356_v37  ;;  %v3876_v37 = vld [vmem:[%s6668_s0 + $0x80] sm:$0xff] }
 0x913   :  { %v904_v6 = vpop.permute.xlu0 %903 }
 0x914   :  { %v913_v15 = vmul.f32 %v904_v6, %v5343_v18 }
 0x91b   :  { %v906_v27 = vpop.permute.xlu1 %905 }
 0x91c   :  { %v914_v56 = vmul.f32 %v906_v27, %v5360_v40  ;;  %v1038_v8 = vpop.permute.xlu0 %1037 }
 0x91d   :  { %v1046_v25 = vmul.f32 %v1038_v8, %v5351_v28  ;;  %v3877_v28 = vld [vmem:[%s6668_s0 + $0x88] sm:$0xff] }
 0x91e   :  { %v4186_v33 = vpack.i.bf16 %v914_v56, %v913_v15 }
 0x91f   :  { %v4191_v61 = vpack.i.bf16 %v1046_v25, %v1045_v55 }
 0x920   :  { %4187 = vrot.lane.b32.xlu2 %v4186_v33, %s4823_s13 }
 0x921   :  { %4192 = vrot.lane.b32.xlu0 %v4191_v61, %s4820_s16  ;;  %4182 = vrot.lane.b32.xlu1 %v4191_v61, %s4821_s17 }
 0x95e   :  { %v4173_v39 = vpop.permute.xlu2 %4172 }
 0x95f   :  { %v4175_v22 = vunpack.i.h.bf16 %v4173_v39  ;;  %v4174_v9 = vunpack.i.l.bf16 %v4173_v39 }
 0x976   :  { %v4168_v16 = vpop.permute.xlu1 %4167 }
 0x977   :  { %v4170_v18 = vunpack.i.h.bf16 %v4168_v16  ;;  %v4169_v34 = vunpack.i.l.bf16 %v4168_v16  ;;  %v4178_v40 = vpop.permute.xlu0 %4177 }
 0x978   :  { %v4180_v41 = vunpack.i.h.bf16 %v4178_v40  ;;  %v4179_v57 = vunpack.i.l.bf16 %v4178_v40 }
 0x979   :  { %v1080_v45 = vsel %vm197_vm6, %v4170_v18, %v4175_v22  ;;  %v1079_v47 = vsel %vm197_vm6, %v4169_v34, %v4174_v9 }
 0x97a   :  { %v1212_v50 = vsel %vm36_vm2, %v3877_v28, %v4180_v41  ;;  %v1211_v54 = vsel %vm36_vm2, %v3876_v37, %v4179_v57  ;;  %v1083_v17 = vsel %vm202_vm7, %v1079_v47, 1.0  ;;  %v1084_v43 = vsel %vm202_vm7, %v1080_v45, 1.0  ;;  %v4188_v62 = vpop.permute.xlu2 %4187 }
 0x97b   :  { %v1216_v60 = vsel %vm41_vm3, %v1212_v50, 1.0  ;;  %v1215_v24 = vsel %vm41_vm3, %v1211_v54, 1.0  ;;  %v1087_v26 = vpack.c.bf16 %v1084_v43, %v1083_v17  ;;  %v4190_v35 = vunpack.i.h.bf16 %v4188_v62 }
 0x97c   :  { %v1219_v30 = vpack.c.bf16 %v1216_v60, %v1215_v24  ;;  %v4189_v36 = vunpack.i.l.bf16 %v4188_v62 }
 0x97d   :  { %3874 = vmatmul.msk.bf16.vlgmr.msrb.gmra.mxu3 %vm245_vm8, %v1087_v26 }
 0x97e   :  { %3880 = vmatmul.msk.bf16.vlgmr.msra.gmra.mxu0 %vm68_vm4, %v1219_v30  ;;  %2214 = vmatpush.bf16.msrb.mxu3 %v4952_v13  ;;  %v4816_v13 = vld [vmem:[%s6669_s2] sm:$0xff] }
 0x982   :  { %2215 = vmatpush.bf16.msrb.mxu3 %v4813_v58 }
 0x986   :  { %2216 = vmatpush.bf16.msrb.mxu3 %v4814_v51 }
 0x98a   :  { %2217 = vmatpush.bf16.msrb.mxu3 %v4815_v2 }
 0x98e   :  { %2218 = vmatpush.bf16.msrb.mxu3 %v4816_v13 }
 0x993   :  { %v4183_v48 = vpop.permute.xlu1 %4182  ;;  %v4193_v21 = vpop.permute.xlu0 %4192 }
 0x994   :  { %v4185_v1 = vunpack.i.h.bf16 %v4183_v48  ;;  %v4184_v38 = vunpack.i.l.bf16 %v4183_v48  ;;  %v4195_v46 = vunpack.i.h.bf16 %v4193_v21  ;;  %v4194_v3 = vunpack.i.l.bf16 %v4193_v21 }
 0x996   :  { %v1081_v5 = vsel %vm197_vm6, %v4184_v38, %v4189_v36  ;;  %v1082_v49 = vsel %vm197_vm6, %v4185_v1, %v4190_v35  ;;  %v1213_v19 = vsel %vm36_vm2, %v3878_v23, %v4194_v3  ;;  %v1214_v29 = vsel %vm36_vm2, %v3879_v42, %v4195_v46 }
 0x997   :  { %v1085_v11 = vsel %vm202_vm7, %v1081_v5, 1.0  ;;  %v1086_v20 = vsel %vm202_vm7, %v1082_v49, 1.0  ;;  %v1217_v31 = vsel %vm41_vm3, %v1213_v19, 1.0  ;;  %v1218_v32 = vsel %vm41_vm3, %v1214_v29, 1.0 }
 0x998   :  { %v1088_v6 = vpack.c.bf16 %v1086_v20, %v1085_v11  ;;  %v1220_v14 = vpack.c.bf16 %v1218_v32, %v1217_v31 }
 0x99a   :  { %3875 = vmatmul.msk.bf16.gmra.mxu3 %vm245_vm8, %v1088_v6  ;;  %3881 = vmatmul.msk.bf16.gmra.mxu0 %vm68_vm4, %v1220_v14 }
 0x9fb   :  { %v1236_v27 = vpop.f32.mrf.mxu0 }
 0x9fc   :  { %4539 = vtanh.f32 %v1236_v27 }
 0xa00   :  { %v1104_v15 = vpop.f32.mrf.mxu3 }
 0xa01   :  { %4541 = vtanh.f32 %v1104_v15 }
 0xa02   :  { %v4540_v56 = vpop.eup %4539 }
 0xa03   :  { %1266 = vrot.lane.b32.xlu0 %v4540_v56, %s4819_s15  ;;  %v1238_v8 = vpop.f32.mrf.mxu0  ;;  %v1250_v47 = vmul.f32 0.5, %v4540_v56 }
 0xa04   :  { %4543 = vtanh.f32 %v1238_v8 }
 0xa05   :  { %v5483_v50 = vadd.f32 0.5, %v1250_v47 }
 0xa07   :  { %v4542_v55 = vpop.eup %4541  ;;  %v1258_v11 = vmul.f32 %v5483_v50, %v5366_v44 }
 0xa08   :  { %v1106_v25 = vpop.f32.mrf.mxu3  ;;  %1134 = vrot.lane.b32.xlu1 %v4542_v55, %s4819_s15  ;;  %v1118_v24 = vmul.f32 0.5, %v4542_v55 }
 0xa09   :  { %4545 = vtanh.f32 %v1106_v25 }
 0xa0a   :  { %v4544_v33 = vpop.eup %4543  ;;  %v5487_v43 = vadd.f32 0.5, %v1118_v24 }
 0xa0b   :  { %v1251_v2 = vmul.f32 0.5, %v4544_v33 }
 0xa0c   :  { %v1126_v44 = vmul.f32 %v5487_v43, %v5378_v53 }
 0xa0d   :  { %v5495_v35 = vadd.f32 0.5, %v1251_v2 }
 0xa0f   :  { %v4546_v61 = vpop.eup %4545 }
 0xa10   :  { %1136 = vrot.lane.b32.xlu2 %v4546_v61, %s4819_s15  ;;  %1268 = vrot.lane.b32.xlu1 %v4544_v33, %s4819_s15  ;;  %v1119_v40 = vmul.f32 0.5, %v4546_v61  ;;  %v1259_v33 = vmul.f32 %v5495_v35, %v5388_v59 }
 0xa12   :  { %v5479_v41 = vadd.f32 0.5, %v1119_v40 }
 0xa14   :  { %v1127_v6 = vmul.f32 %v5479_v41, %v5372_v52 }
 0xa17   :  { %v1241_v39 = vpop.f32.mrf.mxu0 }
 0xa18   :  { %4547 = vtanh.f32 %v1241_v39 }
 0xa1d   :  { %v1109_v16 = vpop.f32.mrf.mxu3 }
 0xa1e   :  { %v4548_v22 = vpop.eup %4547  ;;  %4549 = vtanh.f32 %v1109_v16 }
 0xa1f   :  { %1270 = vrot.lane.b32.xlu1 %v4548_v22, %s4819_s15  ;;  %v1243_v9 = vpop.f32.mrf.mxu0  ;;  %v1252_v1 = vmul.f32 0.5, %v4548_v22 }
 0xa20   :  { %4551 = vtanh.f32 %v1243_v9 }
 0xa21   :  { %v5503_v38 = vadd.f32 0.5, %v1252_v1 }
 0xa24   :  { %v4550_v18 = vpop.eup %4549 }
 0xa25   :  { %1138 = vrot.lane.b32.xlu2 %v4550_v18, %s4819_s15  ;;  %v1111_v34 = vpop.f32.mrf.mxu3  ;;  %v1120_v17 = vmul.f32 0.5, %v4550_v18 }
 0xa26   :  { %4553 = vtanh.f32 %v1111_v34  ;;  %v4552_v37 = vpop.eup %4551 }
 0xa27   :  { %v5490_v58 = vadd.f32 0.5, %v1120_v17  ;;  %v1253_v13 = vmul.f32 0.5, %v4552_v37 }
 0xa29   :  { %v5498_v21 = vadd.f32 0.5, %v1253_v13  ;;  %v1128_v55 = vmul.f32 %v5490_v58, %v5383_v12 }
 0xa2b   :  { %v1261_v12 = vmul.f32 %v5498_v21, %v5398_v7  ;;  %v1260_v7 = vmul.f32 %v5503_v38, %v5407_v63 }
 0xa2c   :  { %v4554_v28 = vpop.eup %4553 }
 0xa2d   :  { %1140 = vrot.lane.b32.xlu0 %v4554_v28, %s4819_s15  ;;  %1272 = vrot.lane.b32.xlu2 %v4552_v37, %s4819_s15  ;;  %v1121_v5 = vmul.f32 0.5, %v4554_v28 }
 0xa2f   :  { %v5507_v49 = vadd.f32 0.5, %v1121_v5 }
 0xa31   :  { %v1129_v53 = vmul.f32 %v5507_v49, %v5396_v0 }
 0xa6a   :  { %v1137_v57 = vpop.permute.xlu2 %1136 }
 0xa6b   :  { %v1147_v45 = vmul.f32 %v1137_v57, %v5479_v41 }
 0xa6d   :  { %1156 = vrot.lane.b32.xlu1 %v1147_v45, %s4819_s15 }
 0xa75   :  { %v1267_v54 = vpop.permute.xlu0 %1266 }
 0xa76   :  { %v1278_v60 = vmul.f32 %v1267_v54, %v5483_v50 }
 0xa78   :  { %1286 = vrot.lane.b32.xlu2 %v1278_v60, %s4819_s15 }
 0xa7a   :  { %v1135_v30 = vpop.permute.xlu1 %1134 }
 0xa7b   :  { %v1146_v26 = vmul.f32 %v1135_v30, %v5487_v43 }
 0xa7d   :  { %1154 = vrot.lane.b32.xlu0 %v1146_v26, %s4819_s15 }
 0xa7f   :  { %v1139_v51 = vpop.permute.xlu2 %1138 }
 0xa80   :  { %v1148_v62 = vmul.f32 %v1139_v51, %v5490_v58 }
 0xa82   :  { %1158 = vrot.lane.b32.xlu1 %v1148_v62, %s4819_s15  ;;  %v1269_v36 = vpop.permute.xlu1 %1268 }
 0xa83   :  { %v1279_v48 = vmul.f32 %v1269_v36, %v5495_v35 }
 0xa85   :  { %1288 = vrot.lane.b32.xlu0 %v1279_v48, %s4819_s15 }
 0xa87   :  { %v1273_v23 = vpop.permute.xlu2 %1272 }
 0xa88   :  { %v1281_v42 = vmul.f32 %v1273_v23, %v5498_v21 }
 0xa8a   :  { %1292 = vrot.lane.b32.xlu1 %v1281_v42, %s4819_s15 }
 0xa91   :  { %v1271_v46 = vpop.permute.xlu1 %1270 }
 0xa92   :  { %v1280_v3 = vmul.f32 %v1271_v46, %v5503_v38 }
 0xa94   :  { %1290 = vrot.lane.b32.xlu0 %v1280_v3, %s4819_s15 }
 0xa9f   :  { %v1141_v19 = vpop.permute.xlu0 %1140 }
 0xaa0   :  { %v1149_v29 = vmul.f32 %v1141_v19, %v5507_v49 }
 0xaa2   :  { %1160 = vrot.lane.b32.xlu2 %v1149_v29, %s4819_s15 }
 0xad2   :  { %v1287_v20 = vpop.permute.xlu2 %1286 }
 0xad3   :  { %v5513_v31 = vadd.f32 %v1287_v20, %v1258_v11 }
 0xad5   :  { %4555 = vtanh.f32 %v5513_v31 }
 0xadb   :  { %v4556_v32 = vpop.eup %4555 }
 0xadc   :  { %1310 = vrot.lane.b32.xlu1 %v4556_v32, %s4819_s15 }
 0xadf   :  { %v1157_v14 = vpop.permute.xlu1 %1156 }
 0xae0   :  { %v5519_v27 = vadd.f32 %v1157_v14, %v1127_v6 }
 0xae2   :  { %4557 = vtanh.f32 %v5519_v27 }
 0xae8   :  { %v4558_v15 = vpop.eup %4557 }
 0xae9   :  { %1180 = vrot.lane.b32.xlu0 %v4558_v15, %s4819_s15 }
 0xaef   :  { %v1155_v56 = vpop.permute.xlu0 %1154 }
 0xaf0   :  { %v5525_v8 = vadd.f32 %v1155_v56, %v1126_v44 }
 0xaf2   :  { %4559 = vtanh.f32 %v5525_v8 }
 0xaf4   :  { %v1159_v52 = vpop.permute.xlu1 %1158 }
 0xaf5   :  { %v5530_v25 = vadd.f32 %v1159_v52, %v1128_v55 }
 0xaf7   :  { %4561 = vtanh.f32 %v5530_v25  ;;  %v1289_v61 = vpop.permute.xlu0 %1288 }
 0xaf8   :  { %v4560_v39 = vpop.eup %4559  ;;  %v5535_v16 = vadd.f32 %v1289_v61, %v1259_v33 }
 0xaf9   :  { %1178 = vrot.lane.b32.xlu2 %v4560_v39, %s4819_s15 }
 0xafa   :  { %4563 = vtanh.f32 %v5535_v16 }
 0xafc   :  { %v1161_v22 = vpop.permute.xlu2 %1160  ;;  %v1293_v9 = vpop.permute.xlu1 %1292 }
 0xafd   :  { %v4562_v18 = vpop.eup %4561  ;;  %v5543_v34 = vadd.f32 %v1161_v22, %v1129_v53  ;;  %v5545_v59 = vadd.f32 %v1293_v9, %v1261_v12  ;;  %v3886_v9 = vld [vmem:[%s6668_s0 + $0xb0] sm:$0xff] }
 0xafe   :  { %1182 = vrot.lane.b32.xlu0 %v4562_v18, %s4819_s15  ;;  %v3887_v18 = vld [vmem:[%s6668_s0 + $0xb8] sm:$0xff] }
 0xaff   :  { %4565 = vtanh.f32 %v5543_v34 }
 0xb00   :  { %4567 = vtanh.f32 %v5545_v59  ;;  %v4564_v37 = vpop.eup %4563 }
 0xb01   :  { %1312 = vrot.lane.b32.xlu2 %v4564_v37, %s4819_s15 }
 0xb05   :  { %v4566_v0 = vpop.eup %4565 }
 0xb06   :  { %v4568_v28 = vpop.eup %4567  ;;  %v1291_v40 = vpop.permute.xlu0 %1290  ;;  %1184 = vrot.lane.b32.xlu1 %v4566_v0, %s4819_s15 }
 0xb07   :  { %v5554_v57 = vadd.f32 %v1291_v40, %v1260_v7  ;;  %1316 = vrot.lane.b32.xlu0 %v4568_v28, %s4819_s15 }
 0xb09   :  { %4569 = vtanh.f32 %v5554_v57 }
 0xb0f   :  { %v4570_v45 = vpop.eup %4569 }
 0xb10   :  { %1314 = vrot.lane.b32.xlu2 %v4570_v45, %s4819_s15 }
 0xb4e   :  { %v1311_v54 = vpop.permute.xlu1 %1310 }
 0xb4f   :  { %v1322_v17 = vmul.f32 %v1311_v54, %v5483_v50 }
 0xb53   :  { %v1179_v47 = vpop.permute.xlu2 %1178 }
 0xb54   :  { %v1190_v63 = vmul.f32 %v1179_v47, %v5487_v43 }
 0xb5b   :  { %v1181_v60 = vpop.permute.xlu0 %1180  ;;  %v1313_v24 = vpop.permute.xlu2 %1312 }
 0xb5c   :  { %v1191_v30 = vmul.f32 %v1181_v60, %v5479_v41  ;;  %v1323_v26 = vmul.f32 %v1313_v24, %v5495_v35 }
 0xb5e   :  { %v4201_v51 = vpack.i.bf16 %v1191_v30, %v1190_v63  ;;  %v4206_v2 = vpack.i.bf16 %v1323_v26, %v1322_v17 }
 0xb60   :  { %4202 = vrot.lane.b32.xlu2 %v4201_v51, %s4823_s13  ;;  %4197 = vrot.lane.b32.xlu1 %v4206_v2, %s4821_s17 }
 0xb61   :  { %4207 = vrot.lane.b32.xlu0 %v4206_v2, %s4820_s16 }
 0xb6a   :  { %v1315_v13 = vpop.permute.xlu2 %1314 }
 0xb6b   :  { %v1324_v41 = vmul.f32 %v1315_v13, %v5503_v38  ;;  %v3884_v38 = vld [vmem:[%s6668_s0 + $0xa0] sm:$0xff] }
 0xb70   :  { %v1183_v62 = vpop.permute.xlu0 %1182 }
 0xb71   :  { %v1192_v48 = vmul.f32 %v1183_v62, %v5490_v58 }
 0xb78   :  { %v1185_v36 = vpop.permute.xlu1 %1184 }
 0xb79   :  { %v1193_v50 = vmul.f32 %v1185_v36, %v5507_v49  ;;  %v1317_v43 = vpop.permute.xlu0 %1316 }
 0xb7a   :  { %v1325_v35 = vmul.f32 %v1317_v43, %v5498_v21  ;;  %v3885_v21 = vld [vmem:[%s6668_s0 + $0xa8] sm:$0xff] }
 0xb7b   :  { %v4216_v23 = vpack.i.bf16 %v1193_v50, %v1192_v48 }
 0xb7c   :  { %v4221_v42 = vpack.i.bf16 %v1325_v35, %v1324_v41 }
 0xb7d   :  { %4217 = vrot.lane.b32.xlu2 %v4216_v23, %s4823_s13 }
 0xb7e   :  { %4222 = vrot.lane.b32.xlu0 %v4221_v42, %s4820_s16  ;;  %4212 = vrot.lane.b32.xlu1 %v4221_v42, %s4821_s17 }
 0xbba   :  { %v4203_v1 = vpop.permute.xlu2 %4202 }
 0xbbb   :  { %v4205_v3 = vunpack.i.h.bf16 %v4203_v1  ;;  %v4204_v5 = vunpack.i.l.bf16 %v4203_v1 }
 0xbd2   :  { %v4198_v46 = vpop.permute.xlu1 %4197 }
 0xbd3   :  { %v4200_v58 = vunpack.i.h.bf16 %v4198_v46  ;;  %v4199_v19 = vunpack.i.l.bf16 %v4198_v46  ;;  %v4208_v49 = vpop.permute.xlu0 %4207 }
 0xbd4   :  { %v4210_v29 = vunpack.i.h.bf16 %v4208_v49  ;;  %v4209_v11 = vunpack.i.l.bf16 %v4208_v49 }
 0xbd5   :  { %v1359_v20 = vsel %vm197_vm6, %v4200_v58, %v4205_v3  ;;  %v1358_v32 = vsel %vm197_vm6, %v4199_v19, %v4204_v5 }
 0xbd6   :  { %v1363_v6 = vsel %vm202_vm7, %v1359_v20, 1.0  ;;  %v1362_v14 = vsel %vm202_vm7, %v1358_v32, 1.0  ;;  %v1491_v15 = vsel %vm36_vm2, %v3885_v21, %v4210_v29  ;;  %v1490_v44 = vsel %vm36_vm2, %v3884_v38, %v4209_v11 }
 0xbd7   :  { %v1366_v56 = vpack.c.bf16 %v1363_v6, %v1362_v14  ;;  %v1495_v55 = vsel %vm41_vm3, %v1491_v15, 1.0  ;;  %v1494_v52 = vsel %vm41_vm3, %v1490_v44, 1.0  ;;  %v4218_v61 = vpop.permute.xlu2 %4217 }
 0xbd8   :  { %v1498_v33 = vpack.c.bf16 %v1495_v55, %v1494_v52  ;;  %v4220_v39 = vunpack.i.h.bf16 %v4218_v61  ;;  %v4219_v53 = vunpack.i.l.bf16 %v4218_v61 }
 0xbd9   :  { %3882 = vmatmul.msk.bf16.vlgmr.msra.gmra.mxu2 %vm245_vm8, %v1366_v56 }
 0xbda   :  { %3888 = vmatmul.msk.bf16.vlgmr.msra.gmra.mxu1 %vm68_vm4, %v1498_v33 }
 0xbf0   :  { %v4213_v12 = vpop.permute.xlu1 %4212  ;;  %v4223_v22 = vpop.permute.xlu0 %4222 }
 0xbf1   :  { %v4215_v37 = vunpack.i.h.bf16 %v4213_v12  ;;  %v4214_v0 = vunpack.i.l.bf16 %v4213_v12  ;;  %v4225_v7 = vunpack.i.h.bf16 %v4223_v22  ;;  %v4224_v28 = vunpack.i.l.bf16 %v4223_v22 }
 0xbf3   :  { %v1360_v40 = vsel %vm197_vm6, %v4214_v0, %v4219_v53  ;;  %v1361_v45 = vsel %vm197_vm6, %v4215_v37, %v4220_v39  ;;  %v1492_v47 = vsel %vm36_vm2, %v3886_v9, %v4224_v28  ;;  %v1493_v54 = vsel %vm36_vm2, %v3887_v18, %v4225_v7 }
 0xbf4   :  { %v1364_v60 = vsel %vm202_vm7, %v1360_v40, 1.0  ;;  %v1365_v24 = vsel %vm202_vm7, %v1361_v45, 1.0  ;;  %v1496_v17 = vsel %vm41_vm3, %v1492_v47, 1.0  ;;  %v1497_v63 = vsel %vm41_vm3, %v1493_v54, 1.0 }
 0xbf5   :  { %v1367_v30 = vpack.c.bf16 %v1365_v24, %v1364_v60  ;;  %v1499_v26 = vpack.c.bf16 %v1497_v63, %v1496_v17 }
 0xbf7   :  { %3883 = vmatmul.msk.bf16.gmra.mxu2 %vm245_vm8, %v1367_v30  ;;  %3889 = vmatmul.msk.bf16.gmra.mxu1 %vm68_vm4, %v1499_v26 }
 0xc57   :  { %v1515_v51 = vpop.f32.mrf.mxu1 }
 0xc58   :  { %4571 = vtanh.f32 %v1515_v51 }
 0xc5c   :  { %v1383_v2 = vpop.f32.mrf.mxu2 }
 0xc5d   :  { %4573 = vtanh.f32 %v1383_v2 }
 0xc5e   :  { %v4572_v62 = vpop.eup %4571 }
 0xc5f   :  { %1545 = vrot.lane.b32.xlu0 %v4572_v62, %s4819_s15  ;;  %v1517_v13 = vpop.f32.mrf.mxu1  ;;  %v1529_v49 = vmul.f32 0.5, %v4572_v62 }
 0xc60   :  { %4575 = vtanh.f32 %v1517_v13 }
 0xc61   :  { %v5617_v29 = vadd.f32 0.5, %v1529_v49 }
 0xc63   :  { %v4574_v36 = vpop.eup %4573  ;;  %v1537_v60 = vmul.f32 %v5617_v29, %v5513_v31 }
 0xc64   :  { %v1385_v48 = vpop.f32.mrf.mxu2  ;;  %1413 = vrot.lane.b32.xlu1 %v4574_v36, %s4819_s15  ;;  %v1397_v20 = vmul.f32 0.5, %v4574_v36 }
 0xc65   :  { %4577 = vtanh.f32 %v1385_v48 }
 0xc66   :  { %v4576_v50 = vpop.eup %4575  ;;  %v5621_v6 = vadd.f32 0.5, %v1397_v20 }
 0xc67   :  { %v1530_v55 = vmul.f32 0.5, %v4576_v50 }
 0xc68   :  { %v1405_v31 = vmul.f32 %v5621_v6, %v5525_v8 }
 0xc69   :  { %v5629_v61 = vadd.f32 0.5, %v1530_v55 }
 0xc6b   :  { %v4578_v43 = vpop.eup %4577 }
 0xc6c   :  { %1415 = vrot.lane.b32.xlu2 %v4578_v43, %s4819_s15  ;;  %1547 = vrot.lane.b32.xlu1 %v4576_v50, %s4819_s15  ;;  %v1398_v58 = vmul.f32 0.5, %v4578_v43  ;;  %v1538_v50 = vmul.f32 %v5629_v61, %v5535_v16 }
 0xc6e   :  { %v5613_v19 = vadd.f32 0.5, %v1398_v58 }
 0xc70   :  { %v1406_v30 = vmul.f32 %v5613_v19, %v5519_v27 }
 0xc74   :  { %v1520_v41 = vpop.f32.mrf.mxu1 }
 0xc75   :  { %4579 = vtanh.f32 %v1520_v41 }
 0xc7a   :  { %v1388_v35 = vpop.f32.mrf.mxu2 }
 0xc7b   :  { %v4580_v23 = vpop.eup %4579  ;;  %4581 = vtanh.f32 %v1388_v35 }
 0xc7c   :  { %1549 = vrot.lane.b32.xlu1 %v4580_v23, %s4819_s15  ;;  %v1522_v42 = vpop.f32.mrf.mxu1  ;;  %v1531_v37 = vmul.f32 0.5, %v4580_v23 }
 0xc7d   :  { %4583 = vtanh.f32 %v1522_v42 }
 0xc7e   :  { %v5637_v0 = vadd.f32 0.5, %v1531_v37 }
 0xc81   :  { %v4582_v1 = vpop.eup %4581 }
 0xc82   :  { %1417 = vrot.lane.b32.xlu2 %v4582_v1, %s4819_s15  ;;  %v1390_v46 = vpop.f32.mrf.mxu2  ;;  %v1399_v14 = vmul.f32 0.5, %v4582_v1 }
 0xc83   :  { %4585 = vtanh.f32 %v1390_v46  ;;  %v4584_v3 = vpop.eup %4583 }
 0xc84   :  { %v5624_v56 = vadd.f32 0.5, %v1399_v14  ;;  %v1532_v39 = vmul.f32 0.5, %v4584_v3 }
 0xc86   :  { %v5632_v22 = vadd.f32 0.5, %v1532_v39  ;;  %v1407_v36 = vmul.f32 %v5624_v56, %v5530_v25 }
 0xc88   :  { %v1540_v25 = vmul.f32 %v5632_v22, %v5545_v59  ;;  %v1539_v59 = vmul.f32 %v5637_v0, %v5554_v57 }
 0xc89   :  { %v4586_v5 = vpop.eup %4585 }
 0xc8a   :  { %1419 = vrot.lane.b32.xlu0 %v4586_v5, %s4819_s15  ;;  %1551 = vrot.lane.b32.xlu2 %v4584_v3, %s4819_s15  ;;  %v1400_v40 = vmul.f32 0.5, %v4586_v5 }
 0xc8c   :  { %v5641_v45 = vadd.f32 0.5, %v1400_v40 }
 0xc8e   :  { %v1408_v8 = vmul.f32 %v5641_v45, %v5543_v34 }
 0xcc6   :  { %v1416_v38 = vpop.permute.xlu2 %1415 }
 0xcc7   :  { %v1426_v21 = vmul.f32 %v1416_v38, %v5613_v19 }
 0xcc9   :  { %1435 = vrot.lane.b32.xlu1 %v1426_v21, %s4819_s15 }
 0xcd1   :  { %v1546_v11 = vpop.permute.xlu0 %1545 }
 0xcd2   :  { %v1557_v32 = vmul.f32 %v1546_v11, %v5617_v29 }
 0xcd4   :  { %1565 = vrot.lane.b32.xlu2 %v1557_v32, %s4819_s15 }
 0xcd6   :  { %v1414_v15 = vpop.permute.xlu1 %1413 }
 0xcd7   :  { %v1425_v44 = vmul.f32 %v1414_v15, %v5621_v6 }
 0xcd9   :  { %1433 = vrot.lane.b32.xlu0 %v1425_v44, %s4819_s15 }
 0xcdc   :  { %v1418_v52 = vpop.permute.xlu2 %1417 }
 0xcdd   :  { %v1427_v33 = vmul.f32 %v1418_v52, %v5624_v56 }
 0xcde   :  { %v1548_v53 = vpop.permute.xlu1 %1547 }
 0xcdf   :  { %1437 = vrot.lane.b32.xlu1 %v1427_v33, %s4819_s15  ;;  %v1558_v12 = vmul.f32 %v1548_v53, %v5629_v61 }
 0xce1   :  { %1567 = vrot.lane.b32.xlu0 %v1558_v12, %s4819_s15 }
 0xce4   :  { %v1552_v9 = vpop.permute.xlu2 %1551 }
 0xce5   :  { %v1560_v18 = vmul.f32 %v1552_v9, %v5632_v22 }
 0xce7   :  { %1571 = vrot.lane.b32.xlu1 %v1560_v18, %s4819_s15 }
 0xcee   :  { %v1550_v7 = vpop.permute.xlu1 %1549 }
 0xcef   :  { %v1559_v28 = vmul.f32 %v1550_v7, %v5637_v0 }
 0xcf1   :  { %1569 = vrot.lane.b32.xlu0 %v1559_v28, %s4819_s15 }
 0xcfc   :  { %v1420_v47 = vpop.permute.xlu0 %1419 }
 0xcfd   :  { %v1428_v54 = vmul.f32 %v1420_v47, %v5641_v45 }
 0xcff   :  { %1439 = vrot.lane.b32.xlu2 %v1428_v54, %s4819_s15 }
 0xd2e   :  { %v1566_v24 = vpop.permute.xlu2 %1565 }
 0xd2f   :  { %v5647_v17 = vadd.f32 %v1566_v24, %v1537_v60 }
 0xd31   :  { %4587 = vtanh.f32 %v5647_v17 }
 0xd37   :  { %v4588_v63 = vpop.eup %4587 }
 0xd38   :  { %1589 = vrot.lane.b32.xlu1 %v4588_v63, %s4819_s15 }
 0xd3b   :  { %v1436_v26 = vpop.permute.xlu1 %1435 }
 0xd3c   :  { %v5653_v51 = vadd.f32 %v1436_v26, %v1406_v30 }
 0xd3e   :  { %4589 = vtanh.f32 %v5653_v51 }
 0xd44   :  { %v4590_v2 = vpop.eup %4589 }
 0xd45   :  { %1459 = vrot.lane.b32.xlu0 %v4590_v2, %s4819_s15 }
 0xd4b   :  { %v1434_v62 = vpop.permute.xlu0 %1433 }
 0xd4c   :  { %v5659_v13 = vadd.f32 %v1434_v62, %v1405_v31 }
 0xd4e   :  { %4591 = vtanh.f32 %v5659_v13 }
 0xd51   :  { %v1438_v27 = vpop.permute.xlu1 %1437 }
 0xd52   :  { %v5664_v48 = vadd.f32 %v1438_v27, %v1407_v36 }
 0xd53   :  { %v1568_v43 = vpop.permute.xlu0 %1567 }
 0xd54   :  { %4593 = vtanh.f32 %v5664_v48  ;;  %v4592_v41 = vpop.eup %4591  ;;  %v5669_v35 = vadd.f32 %v1568_v43, %v1538_v50 }
 0xd55   :  { %1457 = vrot.lane.b32.xlu2 %v4592_v41, %s4819_s15 }
 0xd56   :  { %4595 = vtanh.f32 %v5669_v35 }
 0xd59   :  { %v1440_v23 = vpop.permute.xlu2 %1439  ;;  %v1572_v42 = vpop.permute.xlu1 %1571 }
 0xd5a   :  { %v4594_v1 = vpop.eup %4593  ;;  %v5677_v46 = vadd.f32 %v1440_v23, %v1408_v8  ;;  %v5679_v16 = vadd.f32 %v1572_v42, %v1540_v25  ;;  %v3894_v42 = vld [vmem:[%s6668_s0 + $0xd0] sm:$0xff] }
 0xd5b   :  { %1461 = vrot.lane.b32.xlu0 %v4594_v1, %s4819_s15  ;;  %v3895_v1 = vld [vmem:[%s6668_s0 + $0xd8] sm:$0xff] }
 0xd5c   :  { %4597 = vtanh.f32 %v5677_v46  ;;  %v4596_v3 = vpop.eup %4595 }
 0xd5d   :  { %4599 = vtanh.f32 %v5679_v16  ;;  %1591 = vrot.lane.b32.xlu2 %v4596_v3, %s4819_s15 }
 0xd62   :  { %v4598_v34 = vpop.eup %4597 }
 0xd63   :  { %v4600_v5 = vpop.eup %4599  ;;  %v1570_v58 = vpop.permute.xlu0 %1569  ;;  %1463 = vrot.lane.b32.xlu1 %v4598_v34, %s4819_s15 }
 0xd64   :  { %v5688_v38 = vadd.f32 %v1570_v58, %v1539_v59  ;;  %1595 = vrot.lane.b32.xlu0 %v4600_v5, %s4819_s15 }
 0xd66   :  { %4601 = vtanh.f32 %v5688_v38 }
 0xd6c   :  { %v4602_v21 = vpop.eup %4601 }
 0xd6d   :  { %1593 = vrot.lane.b32.xlu2 %v4602_v21, %s4819_s15 }
 0xdaa   :  { %v1590_v11 = vpop.permute.xlu1 %1589 }
 0xdab   :  { %v1601_v14 = vmul.f32 %v1590_v11, %v5617_v29 }
 0xdaf   :  { %v1458_v49 = vpop.permute.xlu2 %1457 }
 0xdb0   :  { %v1469_v57 = vmul.f32 %v1458_v49, %v5621_v6 }
 0xdb7   :  { %v1460_v20 = vpop.permute.xlu0 %1459  ;;  %v1592_v32 = vpop.permute.xlu2 %1591 }
 0xdb8   :  { %v1470_v15 = vmul.f32 %v1460_v20, %v5613_v19  ;;  %v1602_v44 = vmul.f32 %v1592_v32, %v5629_v61 }
 0xdba   :  { %v4231_v55 = vpack.i.bf16 %v1470_v15, %v1469_v57  ;;  %v4236_v52 = vpack.i.bf16 %v1602_v44, %v1601_v14 }
 0xdbc   :  { %4232 = vrot.lane.b32.xlu2 %v4231_v55, %s4823_s13  ;;  %4227 = vrot.lane.b32.xlu1 %v4236_v52, %s4821_s17 }
 0xdbd   :  { %4237 = vrot.lane.b32.xlu0 %v4236_v52, %s4820_s16 }
 0xdc7   :  { %v1594_v39 = vpop.permute.xlu2 %1593 }
 0xdc8   :  { %v1603_v19 = vmul.f32 %v1594_v39, %v5637_v0  ;;  %v3892_v0 = vld [vmem:[%s6668_s0 + $0xc0] sm:$0xff] }
 0xdcd   :  { %v1462_v33 = vpop.permute.xlu0 %1461 }
 0xdce   :  { %v1471_v12 = vmul.f32 %v1462_v33, %v5624_v56 }
 0xdd5   :  { %v1464_v53 = vpop.permute.xlu1 %1463 }
 0xdd6   :  { %v1472_v29 = vmul.f32 %v1464_v53, %v5641_v45  ;;  %v1596_v6 = vpop.permute.xlu0 %1595 }
 0xdd7   :  { %v1604_v61 = vmul.f32 %v1596_v6, %v5632_v22  ;;  %v3893_v22 = vld [vmem:[%s6668_s0 + $0xc8] sm:$0xff] }
 0xdd8   :  { %v4246_v9 = vpack.i.bf16 %v1472_v29, %v1471_v12 }
 0xdd9   :  { %v4251_v18 = vpack.i.bf16 %v1604_v61, %v1603_v19 }
 0xdda   :  { %4247 = vrot.lane.b32.xlu2 %v4246_v9, %s4823_s13 }
 0xddb   :  { %4252 = vrot.lane.b32.xlu0 %v4251_v18, %s4820_s16  ;;  %4242 = vrot.lane.b32.xlu1 %v4251_v18, %s4821_s17 }
 0xe16   :  { %v4233_v37 = vpop.permute.xlu2 %4232 }
 0xe17   :  { %v4235_v28 = vunpack.i.h.bf16 %v4233_v37  ;;  %v4234_v40 = vunpack.i.l.bf16 %v4233_v37 }
 0xe2e   :  { %v4228_v7 = vpop.permute.xlu1 %4227 }
 0xe2f   :  { %v4230_v56 = vunpack.i.h.bf16 %v4228_v7  ;;  %v4229_v47 = vunpack.i.l.bf16 %v4228_v7  ;;  %v4238_v45 = vpop.permute.xlu0 %4237 }
 0xe30   :  { %v4240_v54 = vunpack.i.h.bf16 %v4238_v45  ;;  %v4239_v60 = vunpack.i.l.bf16 %v4238_v45 }
 0xe31   :  { %v1638_v24 = vsel %vm197_vm6, %v4230_v56, %v4235_v28  ;;  %v1637_v63 = vsel %vm197_vm6, %v4229_v47, %v4234_v40 }
 0xe32   :  { %v1642_v30 = vsel %vm202_vm7, %v1638_v24, 1.0  ;;  %v1641_v26 = vsel %vm202_vm7, %v1637_v63, 1.0  ;;  %v1770_v2 = vsel %vm36_vm2, %v3893_v22, %v4240_v54  ;;  %v1769_v31 = vsel %vm36_vm2, %v3892_v0, %v4239_v60 }
 0xe33   :  { %v1645_v62 = vpack.c.bf16 %v1642_v30, %v1641_v26  ;;  %v1774_v36 = vsel %vm41_vm3, %v1770_v2, 1.0  ;;  %v1773_v27 = vsel %vm41_vm3, %v1769_v31, 1.0 }
 0xe34   :  { %v1777_v50 = vpack.c.bf16 %v1774_v36, %v1773_v27  ;;  %v4248_v43 = vpop.permute.xlu2 %4247 }
 0xe35   :  { %3890 = vmatmul.msk.bf16.vlgmr.msra.gmra.mxu3 %vm245_vm8, %v1645_v62  ;;  %v4250_v41 = vunpack.i.h.bf16 %v4248_v43  ;;  %v4249_v8 = vunpack.i.l.bf16 %v4248_v43 }
 0xe36   :  { %3896 = vmatmul.msk.bf16.vlgmr.msrb.gmra.mxu0 %vm68_vm4, %v1777_v50 }
 0xe4d   :  { %v4243_v25 = vpop.permute.xlu1 %4242  ;;  %v4253_v23 = vpop.permute.xlu0 %4252 }
 0xe4e   :  { %v4245_v3 = vunpack.i.h.bf16 %v4243_v25  ;;  %v4244_v34 = vunpack.i.l.bf16 %v4243_v25  ;;  %v4255_v59 = vunpack.i.h.bf16 %v4253_v23  ;;  %v4254_v5 = vunpack.i.l.bf16 %v4253_v23 }
 0xe50   :  { %v1639_v58 = vsel %vm197_vm6, %v4244_v34, %v4249_v8  ;;  %v1640_v21 = vsel %vm197_vm6, %v4245_v3, %v4250_v41  ;;  %v1771_v49 = vsel %vm36_vm2, %v3894_v42, %v4254_v5  ;;  %v1772_v11 = vsel %vm36_vm2, %v3895_v1, %v4255_v59 }
 0xe51   :  { %v1643_v20 = vsel %vm202_vm7, %v1639_v58, 1.0  ;;  %v1644_v32 = vsel %vm202_vm7, %v1640_v21, 1.0  ;;  %v1775_v14 = vsel %vm41_vm3, %v1771_v49, 1.0  ;;  %v1776_v57 = vsel %vm41_vm3, %v1772_v11, 1.0 }
 0xe52   :  { %v1646_v15 = vpack.c.bf16 %v1644_v32, %v1643_v20  ;;  %v1778_v44 = vpack.c.bf16 %v1776_v57, %v1775_v14 }
 0xe54   :  { %3891 = vmatmul.msk.bf16.gmra.mxu3 %vm245_vm8, %v1646_v15  ;;  %3897 = vmatmul.msk.bf16.gmra.mxu0 %vm68_vm4, %v1778_v44 }
 0xeb3   :  { %v1794_v55 = vpop.f32.mrf.mxu0 }
 0xeb4   :  { %4603 = vtanh.f32 %v1794_v55 }
 0xeb8   :  { %v1662_v52 = vpop.f32.mrf.mxu3 }
 0xeb9   :  { %4605 = vtanh.f32 %v1662_v52 }
 0xeba   :  { %v4604_v33 = vpop.eup %4603 }
 0xebb   :  { %1824 = vrot.lane.b32.xlu0 %v4604_v33, %s4819_s15  ;;  %v1796_v39 = vpop.f32.mrf.mxu0  ;;  %v1808_v45 = vmul.f32 0.5, %v4604_v33 }
 0xebc   :  { %4607 = vtanh.f32 %v1796_v39 }
 0xebd   :  { %v5751_v54 = vadd.f32 0.5, %v1808_v45 }
 0xebf   :  { %v4606_v53 = vpop.eup %4605  ;;  %v1816_v20 = vmul.f32 %v5751_v54, %v5647_v17 }
 0xec0   :  { %v1664_v12 = vpop.f32.mrf.mxu3  ;;  %1692 = vrot.lane.b32.xlu1 %v4606_v53, %s4819_s15  ;;  %v1676_v24 = vmul.f32 0.5, %v4606_v53 }
 0xec1   :  { %4609 = vtanh.f32 %v1664_v12 }
 0xec2   :  { %v4608_v29 = vpop.eup %4607  ;;  %v5755_v30 = vadd.f32 0.5, %v1676_v24 }
 0xec3   :  { %v1809_v62 = vmul.f32 0.5, %v4608_v29 }
 0xec4   :  { %v1684_v17 = vmul.f32 %v5755_v30, %v5659_v13 }
 0xec5   :  { %v5762_v43 = vadd.f32 0.5, %v1809_v62 }
 0xec7   :  { %v4610_v6 = vpop.eup %4609 }
 0xec8   :  { %1694 = vrot.lane.b32.xlu2 %v4610_v6, %s4819_s15  ;;  %1826 = vrot.lane.b32.xlu1 %v4608_v29, %s4819_s15  ;;  %v1677_v56 = vmul.f32 0.5, %v4610_v6  ;;  %v1817_v29 = vmul.f32 %v5762_v43, %v5669_v35 }
 0xeca   :  { %v5747_v47 = vadd.f32 0.5, %v1677_v56 }
 0xecc   :  { %v1685_v15 = vmul.f32 %v5747_v47, %v5653_v51 }
 0xed1   :  { %v1799_v19 = vpop.f32.mrf.mxu0 }
 0xed2   :  { %4611 = vtanh.f32 %v1799_v19 }
 0xed7   :  { %v1667_v61 = vpop.f32.mrf.mxu3 }
 0xed8   :  { %v4612_v9 = vpop.eup %4611  ;;  %4613 = vtanh.f32 %v1667_v61 }
 0xed9   :  { %1828 = vrot.lane.b32.xlu1 %v4612_v9, %s4819_s15  ;;  %v1801_v18 = vpop.f32.mrf.mxu0  ;;  %v1810_v3 = vmul.f32 0.5, %v4612_v9 }
 0xeda   :  { %4615 = vtanh.f32 %v1801_v18 }
 0xedb   :  { %v5771_v34 = vadd.f32 0.5, %v1810_v3 }
 0xede   :  { %v4614_v37 = vpop.eup %4613 }
 0xedf   :  { %1696 = vrot.lane.b32.xlu2 %v4614_v37, %s4819_s15  ;;  %v1669_v7 = vpop.f32.mrf.mxu3  ;;  %v1678_v2 = vmul.f32 0.5, %v4614_v37 }
 0xee0   :  { %4617 = vtanh.f32 %v1669_v7  ;;  %v4616_v28 = vpop.eup %4615 }
 0xee1   :  { %v5759_v36 = vadd.f32 0.5, %v1678_v2  ;;  %v1811_v8 = vmul.f32 0.5, %v4616_v28 }
 0xee3   :  { %v5767_v23 = vadd.f32 0.5, %v1811_v8  ;;  %v1686_v53 = vmul.f32 %v5759_v36, %v5664_v48 }
 0xee5   :  { %v1819_v48 = vmul.f32 %v5767_v23, %v5679_v16  ;;  %v1818_v16 = vmul.f32 %v5771_v34, %v5688_v38 }
 0xee6   :  { %v4618_v40 = vpop.eup %4617 }
 0xee7   :  { %1698 = vrot.lane.b32.xlu0 %v4618_v40, %s4819_s15  ;;  %1830 = vrot.lane.b32.xlu2 %v4616_v28, %s4819_s15  ;;  %v1679_v58 = vmul.f32 0.5, %v4618_v40 }
 0xee9   :  { %v5775_v21 = vadd.f32 0.5, %v1679_v58 }
 0xeeb   :  { %v1687_v13 = vmul.f32 %v5775_v21, %v5677_v46 }
 0xf22   :  { %v1695_v0 = vpop.permute.xlu2 %1694 }
 0xf23   :  { %v1705_v22 = vmul.f32 %v1695_v0, %v5747_v47 }
 0xf25   :  { %1714 = vrot.lane.b32.xlu1 %v1705_v22, %s4819_s15 }
 0xf2d   :  { %v1825_v60 = vpop.permute.xlu0 %1824 }
 0xf2e   :  { %v1836_v63 = vmul.f32 %v1825_v60, %v5751_v54 }
 0xf30   :  { %1844 = vrot.lane.b32.xlu2 %v1836_v63, %s4819_s15 }
 0xf32   :  { %v1693_v26 = vpop.permute.xlu1 %1692 }
 0xf33   :  { %v1704_v31 = vmul.f32 %v1693_v26, %v5755_v30 }
 0xf35   :  { %1712 = vrot.lane.b32.xlu0 %v1704_v31, %s4819_s15 }
 0xf39   :  { %v1697_v27 = vpop.permute.xlu2 %1696 }
 0xf3a   :  { %v1706_v50 = vmul.f32 %v1697_v27, %v5759_v36  ;;  %v1827_v41 = vpop.permute.xlu1 %1826 }
 0xf3b   :  { %v1837_v25 = vmul.f32 %v1827_v41, %v5762_v43 }
 0xf3c   :  { %1716 = vrot.lane.b32.xlu1 %v1706_v50, %s4819_s15 }
 0xf3d   :  { %1846 = vrot.lane.b32.xlu0 %v1837_v25, %s4819_s15 }
 0xf41   :  { %v1831_v42 = vpop.permute.xlu2 %1830 }
 0xf42   :  { %v1839_v1 = vmul.f32 %v1831_v42, %v5767_v23 }
 0xf44   :  { %1850 = vrot.lane.b32.xlu1 %v1839_v1, %s4819_s15 }
 0xf4b   :  { %v1829_v59 = vpop.permute.xlu1 %1828 }
 0xf4c   :  { %v1838_v5 = vmul.f32 %v1829_v59, %v5771_v34 }
 0xf4e   :  { %1848 = vrot.lane.b32.xlu0 %v1838_v5, %s4819_s15 }
 0xf59   :  { %v1699_v49 = vpop.permute.xlu0 %1698 }
 0xf5a   :  { %v1707_v11 = vmul.f32 %v1699_v49, %v5775_v21 }
 0xf5c   :  { %1718 = vrot.lane.b32.xlu2 %v1707_v11, %s4819_s15 }
 0xf8a   :  { %v1845_v32 = vpop.permute.xlu2 %1844 }
 0xf8b   :  { %v5781_v14 = vadd.f32 %v1845_v32, %v1816_v20 }
 0xf8d   :  { %4619 = vtanh.f32 %v5781_v14 }
 0xf93   :  { %v4620_v57 = vpop.eup %4619 }
 0xf94   :  { %1868 = vrot.lane.b32.xlu1 %v4620_v57, %s4819_s15 }
 0xf97   :  { %v1715_v44 = vpop.permute.xlu1 %1714 }
 0xf98   :  { %v5787_v55 = vadd.f32 %v1715_v44, %v1685_v15 }
 0xf9a   :  { %4621 = vtanh.f32 %v5787_v55 }
 0xfa0   :  { %v4622_v52 = vpop.eup %4621 }
 0xfa1   :  { %1738 = vrot.lane.b32.xlu0 %v4622_v52, %s4819_s15 }
 0xfa7   :  { %v1713_v33 = vpop.permute.xlu0 %1712 }
 0xfa8   :  { %v5793_v39 = vadd.f32 %v1713_v33, %v1684_v17 }
 0xfaa   :  { %4623 = vtanh.f32 %v5793_v39 }
 0xfae   :  { %v1717_v51 = vpop.permute.xlu1 %1716 }
 0xfaf   :  { %v5798_v12 = vadd.f32 %v1717_v51, %v1686_v53  ;;  %v1847_v6 = vpop.permute.xlu0 %1846 }
 0xfb0   :  { %v4624_v19 = vpop.eup %4623  ;;  %v5803_v61 = vadd.f32 %v1847_v6, %v1817_v29 }
 0xfb1   :  { %4625 = vtanh.f32 %v5798_v12  ;;  %1736 = vrot.lane.b32.xlu2 %v4624_v19, %s4819_s15 }
 0xfb2   :  { %4627 = vtanh.f32 %v5803_v61 }
 0xfb6   :  { %v1719_v9 = vpop.permute.xlu2 %1718  ;;  %v1851_v18 = vpop.permute.xlu1 %1850 }
 0xfb7   :  { %v4626_v37 = vpop.eup %4625  ;;  %v5811_v35 = vadd.f32 %v1719_v9, %v1687_v13  ;;  %v5813_v7 = vadd.f32 %v1851_v18, %v1819_v48  ;;  %v3902_v18 = vld [vmem:[%s6668_s0 + $0xf0] sm:$0xff] }
 0xfb8   :  { %1740 = vrot.lane.b32.xlu0 %v4626_v37, %s4819_s15  ;;  %v4628_v28 = vpop.eup %4627  ;;  %v3903_v37 = vld [vmem:[%s6668_s0 + $0xf8] sm:$0xff] }
 0xfb9   :  { %4629 = vtanh.f32 %v5811_v35  ;;  %1870 = vrot.lane.b32.xlu2 %v4628_v28, %s4819_s15 }
 0xfba   :  { %4631 = vtanh.f32 %v5813_v7 }
 0xfbf   :  { %v4630_v46 = vpop.eup %4629 }
 0xfc0   :  { %v4632_v40 = vpop.eup %4631  ;;  %v1849_v56 = vpop.permute.xlu0 %1848  ;;  %1742 = vrot.lane.b32.xlu1 %v4630_v46, %s4819_s15 }
 0xfc1   :  { %v5822_v0 = vadd.f32 %v1849_v56, %v1818_v16  ;;  %1874 = vrot.lane.b32.xlu0 %v4632_v40, %s4819_s15 }
 0xfc3   :  { %4633 = vtanh.f32 %v5822_v0 }
 0xfc9   :  { %v4634_v22 = vpop.eup %4633 }
 0xfca   :  { %1872 = vrot.lane.b32.xlu2 %v4634_v22, %s4819_s15 }
0x1006   :  { %v1869_v60 = vpop.permute.xlu1 %1868 }
0x1007   :  { %v1880_v26 = vmul.f32 %v1869_v60, %v5751_v54 }
0x100b   :  { %v1737_v45 = vpop.permute.xlu2 %1736 }
0x100c   :  { %v1748_v38 = vmul.f32 %v1737_v45, %v5755_v30 }
0x1013   :  { %v1739_v24 = vpop.permute.xlu0 %1738  ;;  %v1871_v63 = vpop.permute.xlu2 %1870 }
0x1014   :  { %v1749_v2 = vmul.f32 %v1739_v24, %v5747_v47  ;;  %v1881_v31 = vmul.f32 %v1871_v63, %v5762_v43 }
0x1016   :  { %v4261_v62 = vpack.i.bf16 %v1749_v2, %v1748_v38  ;;  %v4266_v27 = vpack.i.bf16 %v1881_v31, %v1880_v26 }
0x1018   :  { %4262 = vrot.lane.b32.xlu2 %v4261_v62, %s4823_s13  ;;  %4257 = vrot.lane.b32.xlu1 %v4266_v27, %s4821_s17 }
0x1019   :  { %4267 = vrot.lane.b32.xlu0 %v4266_v27, %s4820_s16 }
0x1024   :  { %v1873_v41 = vpop.permute.xlu2 %1872 }
0x1025   :  { %v1882_v47 = vmul.f32 %v1873_v41, %v5771_v34  ;;  %v3900_v34 = vld [vmem:[%s6668_s0 + $0xe0] sm:$0xff] }
0x102a   :  { %v1741_v50 = vpop.permute.xlu0 %1740 }
0x102b   :  { %v1750_v25 = vmul.f32 %v1741_v50, %v5759_v36 }
0x1032   :  { %v1743_v8 = vpop.permute.xlu1 %1742 }
0x1033   :  { %v1751_v54 = vmul.f32 %v1743_v8, %v5775_v21  ;;  %v1875_v30 = vpop.permute.xlu0 %1874 }
0x1034   :  { %v1883_v43 = vmul.f32 %v1875_v30, %v5767_v23  ;;  %v3901_v23 = vld [vmem:[%s6668_s0 + $0xe8] sm:$0xff] }
0x1035   :  { %v4276_v42 = vpack.i.bf16 %v1751_v54, %v1750_v25 }
0x1036   :  { %v4281_v1 = vpack.i.bf16 %v1883_v43, %v1882_v47 }
0x1037   :  { %4277 = vrot.lane.b32.xlu2 %v4276_v42, %s4823_s13 }
0x1038   :  { %4282 = vrot.lane.b32.xlu0 %v4281_v1, %s4820_s16  ;;  %4272 = vrot.lane.b32.xlu1 %v4281_v1, %s4821_s17 }
0x1072   :  { %v4263_v3 = vpop.permute.xlu2 %4262 }
0x1073   :  { %v4265_v5 = vunpack.i.h.bf16 %v4263_v3  ;;  %v4264_v58 = vunpack.i.l.bf16 %v4263_v3 }
0x108a   :  { %v4258_v59 = vpop.permute.xlu1 %4257 }
0x108b   :  { %v4260_v36 = vunpack.i.h.bf16 %v4258_v59  ;;  %v4259_v49 = vunpack.i.l.bf16 %v4258_v59  ;;  %v4268_v21 = vpop.permute.xlu0 %4267 }
0x108c   :  { %v4270_v11 = vunpack.i.h.bf16 %v4268_v21  ;;  %v4269_v20 = vunpack.i.l.bf16 %v4268_v21 }
0x108d   :  { %v1917_v32 = vsel %vm197_vm6, %v4260_v36, %v4265_v5  ;;  %v1916_v57 = vsel %vm197_vm6, %v4259_v49, %v4264_v58 }
0x108e   :  { %v1921_v15 = vsel %vm202_vm7, %v1917_v32, 1.0  ;;  %v1920_v44 = vsel %vm202_vm7, %v1916_v57, 1.0  ;;  %v2049_v52 = vsel %vm36_vm2, %v3901_v23, %v4270_v11  ;;  %v2048_v17 = vsel %vm36_vm2, %v3900_v34, %v4269_v20 }
0x108f   :  { %v1924_v33 = vpack.c.bf16 %v1921_v15, %v1920_v44  ;;  %v2053_v53 = vsel %vm41_vm3, %v2049_v52, 1.0  ;;  %v2052_v51 = vsel %vm41_vm3, %v2048_v17, 1.0 }
0x1090   :  { %v2056_v29 = vpack.c.bf16 %v2053_v53, %v2052_v51 }
0x1091   :  { %3898 = vmatmul.msk.bf16.vlgmr.msrb.gmra.mxu2 %vm245_vm8, %v1924_v33  ;;  %v4278_v6 = vpop.permute.xlu2 %4277 }
0x1092   :  { %3904 = vmatmul.msk.bf16.vlgmr.msrb.gmra.mxu1 %vm68_vm4, %v2056_v29  ;;  %v4280_v19 = vunpack.i.h.bf16 %v4278_v6  ;;  %v4279_v13 = vunpack.i.l.bf16 %v4278_v6 }
0x10aa   :  { %v4273_v48 = vpop.permute.xlu1 %4272  ;;  %v4283_v9 = vpop.permute.xlu0 %4282 }
0x10ab   :  { %v4275_v28 = vunpack.i.h.bf16 %v4273_v48  ;;  %v4274_v46 = vunpack.i.l.bf16 %v4273_v48  ;;  %v4285_v16 = vunpack.i.h.bf16 %v4283_v9  ;;  %v4284_v40 = vunpack.i.l.bf16 %v4283_v9 }
0x10ad   :  { %v1918_v56 = vsel %vm197_vm6, %v4274_v46, %v4279_v13  ;;  %v1919_v22 = vsel %vm197_vm6, %v4275_v28, %v4280_v19  ;;  %v2050_v45 = vsel %vm36_vm2, %v3902_v18, %v4284_v40  ;;  %v2051_v60 = vsel %vm36_vm2, %v3903_v37, %v4285_v16 }
0x10ae   :  { %v1922_v24 = vsel %vm202_vm7, %v1918_v56, 1.0  ;;  %v1923_v63 = vsel %vm202_vm7, %v1919_v22, 1.0  ;;  %v2054_v26 = vsel %vm41_vm3, %v2050_v45, 1.0  ;;  %v2055_v38 = vsel %vm41_vm3, %v2051_v60, 1.0 }
0x10af   :  { %v1925_v2 = vpack.c.bf16 %v1923_v63, %v1922_v24  ;;  %v2057_v31 = vpack.c.bf16 %v2055_v38, %v2054_v26 }
0x10b1   :  { %3899 = vmatmul.msk.bf16.gmra.mxu2 %vm245_vm8, %v1925_v2  ;;  %3905 = vmatmul.msk.bf16.gmra.mxu1 %vm68_vm4, %v2057_v31 }
0x110f   :  { %v2073_v62 = vpop.f32.mrf.mxu1 }
0x1110   :  { %4635 = vtanh.f32 %v2073_v62 }
0x1114   :  { %v1941_v27 = vpop.f32.mrf.mxu2 }
0x1115   :  { %4637 = vtanh.f32 %v1941_v27 }
0x1116   :  { %v4636_v50 = vpop.eup %4635 }
0x1117   :  { %2103 = vrot.lane.b32.xlu0 %v4636_v50, %s4819_s15  ;;  %v2075_v41 = vpop.f32.mrf.mxu1  ;;  %v2087_v21 = vmul.f32 0.5, %v4636_v50 }
0x1118   :  { %4639 = vtanh.f32 %v2075_v41 }
0x1119   :  { %v5885_v11 = vadd.f32 0.5, %v2087_v21 }
0x111b   :  { %v4638_v8 = vpop.eup %4637  ;;  %v2095_v24 = vmul.f32 %v5885_v11, %v5781_v14 }
0x111c   :  { %v1943_v25 = vpop.f32.mrf.mxu2  ;;  %1971 = vrot.lane.b32.xlu1 %v4638_v8, %s4819_s15  ;;  %v1955_v32 = vmul.f32 0.5, %v4638_v8 }
0x111d   :  { %4641 = vtanh.f32 %v1943_v25 }
0x111e   :  { %v4640_v54 = vpop.eup %4639  ;;  %v5889_v15 = vadd.f32 0.5, %v1955_v32 }
0x111f   :  { %v2088_v33 = vmul.f32 0.5, %v4640_v54 }
0x1120   :  { %v1963_v14 = vmul.f32 %v5889_v15, %v5793_v39 }
0x1121   :  { %v5896_v6 = vadd.f32 0.5, %v2088_v33 }
0x1123   :  { %v4642_v30 = vpop.eup %4641 }
0x1124   :  { %1973 = vrot.lane.b32.xlu2 %v4642_v30, %s4819_s15  ;;  %2105 = vrot.lane.b32.xlu1 %v4640_v54, %s4819_s15  ;;  %v1956_v36 = vmul.f32 0.5, %v4642_v30  ;;  %v2096_v54 = vmul.f32 %v5896_v6, %v5803_v61 }
0x1126   :  { %v5881_v49 = vadd.f32 0.5, %v1956_v36 }
0x1128   :  { %v1964_v2 = vmul.f32 %v5881_v49, %v5787_v55 }
0x112e   :  { %v2078_v47 = vpop.f32.mrf.mxu1 }
0x112f   :  { %4643 = vtanh.f32 %v2078_v47 }
0x1134   :  { %v1946_v43 = vpop.f32.mrf.mxu2 }
0x1135   :  { %v4644_v42 = vpop.eup %4643  ;;  %4645 = vtanh.f32 %v1946_v43 }
0x1136   :  { %2107 = vrot.lane.b32.xlu1 %v4644_v42, %s4819_s15  ;;  %v2080_v1 = vpop.f32.mrf.mxu1  ;;  %v2089_v28 = vmul.f32 0.5, %v4644_v42 }
0x1137   :  { %4647 = vtanh.f32 %v2080_v1 }
0x1138   :  { %v5905_v46 = vadd.f32 0.5, %v2089_v28  ;;  %v2336_v28 = vld [vmem:[%s6670_s3 + $0x10] sm:$0x7] }
0x113b   :  { %v4646_v3 = vpop.eup %4645 }
0x113c   :  { %1975 = vrot.lane.b32.xlu2 %v4646_v3, %s4819_s15  ;;  %v1948_v59 = vpop.f32.mrf.mxu2  ;;  %v1957_v17 = vmul.f32 0.5, %v4646_v3 }
0x113d   :  { %4649 = vtanh.f32 %v1948_v59  ;;  %v4648_v5 = vpop.eup %4647 }
0x113e   :  { %v5893_v53 = vadd.f32 0.5, %v1957_v17  ;;  %v2090_v48 = vmul.f32 0.5, %v4648_v5 }
0x1140   :  { %v5901_v9 = vadd.f32 0.5, %v2090_v48  ;;  %v1965_v8 = vmul.f32 %v5893_v53, %v5798_v12 }
0x1142   :  { %v2098_v12 = vmul.f32 %v5901_v9, %v5813_v7  ;;  %v2097_v7 = vmul.f32 %v5905_v46, %v5822_v0 }
0x1143   :  { %v4650_v58 = vpop.eup %4649 }
0x1144   :  { %1977 = vrot.lane.b32.xlu0 %v4650_v58, %s4819_s15  ;;  %2109 = vrot.lane.b32.xlu2 %v4648_v5, %s4819_s15  ;;  %v1958_v56 = vmul.f32 0.5, %v4650_v58 }
0x1146   :  { %v5909_v22 = vadd.f32 0.5, %v1958_v56 }
0x1148   :  { %v1966_v39 = vmul.f32 %v5909_v22, %v5811_v35 }
0x117e   :  { %v1974_v34 = vpop.permute.xlu2 %1973 }
0x117f   :  { %v1984_v23 = vmul.f32 %v1974_v34, %v5881_v49 }
0x1181   :  { %1993 = vrot.lane.b32.xlu1 %v1984_v23, %s4819_s15 }
0x1189   :  { %v2104_v20 = vpop.permute.xlu0 %2103 }
0x118a   :  { %v2115_v57 = vmul.f32 %v2104_v20, %v5885_v11 }
0x118c   :  { %2123 = vrot.lane.b32.xlu2 %v2115_v57, %s4819_s15 }
0x118e   :  { %v1972_v44 = vpop.permute.xlu1 %1971 }
0x118f   :  { %v1983_v52 = vmul.f32 %v1972_v44, %v5889_v15 }
0x1191   :  { %1991 = vrot.lane.b32.xlu0 %v1983_v52, %s4819_s15 }
0x1196   :  { %v1976_v51 = vpop.permute.xlu2 %1975  ;;  %v2106_v19 = vpop.permute.xlu1 %2105 }
0x1197   :  { %v1985_v29 = vmul.f32 %v1976_v51, %v5893_v53  ;;  %v2116_v13 = vmul.f32 %v2106_v19, %v5896_v6 }
0x1199   :  { %1995 = vrot.lane.b32.xlu1 %v1985_v29, %s4819_s15  ;;  %2125 = vrot.lane.b32.xlu0 %v2116_v13, %s4819_s15 }
0x119e   :  { %v2110_v18 = vpop.permute.xlu2 %2109 }
0x119f   :  { %v2118_v37 = vmul.f32 %v2110_v18, %v5901_v9 }
0x11a1   :  { %2129 = vrot.lane.b32.xlu1 %v2118_v37, %s4819_s15 }
0x11a8   :  { %v2108_v16 = vpop.permute.xlu1 %2107 }
0x11a9   :  { %v2117_v40 = vmul.f32 %v2108_v16, %v5905_v46 }
0x11ab   :  { %2127 = vrot.lane.b32.xlu0 %v2117_v40, %s4819_s15 }
0x11b6   :  { %v1978_v45 = vpop.permute.xlu0 %1977 }
0x11b7   :  { %v1986_v60 = vmul.f32 %v1978_v45, %v5909_v22 }
0x11b9   :  { %1997 = vrot.lane.b32.xlu2 %v1986_v60, %s4819_s15 }
0x11e6   :  { %v2124_v63 = vpop.permute.xlu2 %2123 }
0x11e7   :  { %v5915_v26 = vadd.f32 %v2124_v63, %v2095_v24 }
0x11e9   :  { %4651 = vtanh.f32 %v5915_v26 }
0x11ef   :  { %v4652_v38 = vpop.eup %4651 }
0x11f0   :  { %2147 = vrot.lane.b32.xlu1 %v4652_v38, %s4819_s15 }
0x11f3   :  { %v1994_v31 = vpop.permute.xlu1 %1993 }
0x11f4   :  { %v5921_v62 = vadd.f32 %v1994_v31, %v1964_v2 }
0x11f6   :  { %4653 = vtanh.f32 %v5921_v62 }
0x11fc   :  { %v4654_v27 = vpop.eup %4653 }
0x11fd   :  { %2017 = vrot.lane.b32.xlu0 %v4654_v27, %s4819_s15 }
0x1203   :  { %v1992_v50 = vpop.permute.xlu0 %1991 }
0x1204   :  { %v5927_v41 = vadd.f32 %v1992_v50, %v1963_v14 }
0x1206   :  { %4655 = vtanh.f32 %v5927_v41 }
0x120b   :  { %v1996_v55 = vpop.permute.xlu1 %1995  ;;  %v2126_v30 = vpop.permute.xlu0 %2125 }
0x120c   :  { %v5932_v25 = vadd.f32 %v1996_v55, %v1965_v8  ;;  %v4656_v47 = vpop.eup %4655  ;;  %v5937_v43 = vadd.f32 %v2126_v30, %v2096_v54 }
0x120d   :  { %2015 = vrot.lane.b32.xlu2 %v4656_v47, %s4819_s15 }
0x120e   :  { %4657 = vtanh.f32 %v5932_v25 }
0x120f   :  { %4659 = vtanh.f32 %v5937_v43 }
0x1213   :  { %v1998_v42 = vpop.permute.xlu2 %1997  ;;  %v2130_v1 = vpop.permute.xlu1 %2129 }
0x1214   :  { %v4658_v3 = vpop.eup %4657  ;;  %v5945_v61 = vadd.f32 %v1998_v42, %v1966_v39  ;;  %v5947_v59 = vadd.f32 %v2130_v1, %v2098_v12 }
0x1215   :  { %2019 = vrot.lane.b32.xlu0 %v4658_v3, %s4819_s15  ;;  %v4660_v5 = vpop.eup %4659 }
0x1216   :  { %4661 = vtanh.f32 %v5945_v61  ;;  %2149 = vrot.lane.b32.xlu2 %v4660_v5, %s4819_s15 }
0x1217   :  { %4663 = vtanh.f32 %v5947_v59 }
0x121c   :  { %v4662_v35 = vpop.eup %4661 }
0x121d   :  { %v4664_v58 = vpop.eup %4663  ;;  %v2128_v36 = vpop.permute.xlu0 %2127  ;;  %2021 = vrot.lane.b32.xlu1 %v4662_v35, %s4819_s15 }
0x121e   :  { %v5956_v34 = vadd.f32 %v2128_v36, %v2097_v7  ;;  %2153 = vrot.lane.b32.xlu0 %v4664_v58, %s4819_s15 }
0x1220   :  { %4665 = vtanh.f32 %v5956_v34 }
0x1226   :  { %v4666_v23 = vpop.eup %4665 }
0x1227   :  { %2151 = vrot.lane.b32.xlu2 %v4666_v23, %s4819_s15 }
0x1262   :  { %v2148_v20 = vpop.permute.xlu1 %2147 }
0x1263   :  { %v2159_v44 = vmul.f32 %v2148_v20, %v5885_v11 }
0x1267   :  { %v2016_v21 = vpop.permute.xlu2 %2015 }
0x1268   :  { %v2027_v0 = vmul.f32 %v2016_v21, %v5889_v15 }
0x126f   :  { %v2018_v32 = vpop.permute.xlu0 %2017 }
0x1270   :  { %v2150_v57 = vpop.permute.xlu2 %2149  ;;  %v2028_v52 = vmul.f32 %v2018_v32, %v5881_v49 }
0x1271   :  { %v2160_v17 = vmul.f32 %v2150_v57, %v5896_v6 }
0x1272   :  { %v4291_v33 = vpack.i.bf16 %v2028_v52, %v2027_v0 }
0x1273   :  { %v4296_v51 = vpack.i.bf16 %v2160_v17, %v2159_v44 }
0x1274   :  { %4292 = vrot.lane.b32.xlu2 %v4291_v33, %s4823_s13 }
0x1275   :  { %4287 = vrot.lane.b32.xlu1 %v4296_v51, %s4821_s17  ;;  %4297 = vrot.lane.b32.xlu0 %v4296_v51, %s4820_s16 }
0x1281   :  { %v2152_v19 = vpop.permute.xlu2 %2151 }
0x1282   :  { %v2161_v49 = vmul.f32 %v2152_v19, %v5905_v46  ;;  %v4056_v46 = vld [vmem:[%s6670_s3] sm:$0xff] }
0x1287   :  { %v2020_v29 = vpop.permute.xlu0 %2019 }
0x1288   :  { %v2029_v48 = vmul.f32 %v2020_v29, %v5893_v53  ;;  %v2346_v53 = vunpack.c.l.b16 %v2336_v28 }
0x128a   :  { %v2349_v16 = vpack.c.b16 %v2346_v53, %v2346_v53 }
0x128c   :  { %v2359_v40 = vand.u32 %v2349_v16, %v4867_v4 }
0x128e   :  { %2366 = vmatpush.bf16.msra.mxu0 %v2359_v40 }
0x128f   :  { %v2022_v13 = vpop.permute.xlu1 %2021 }
0x1290   :  { %v2030_v11 = vmul.f32 %v2022_v13, %v5909_v22  ;;  %v2154_v15 = vpop.permute.xlu0 %2153 }
0x1291   :  { %v2162_v6 = vmul.f32 %v2154_v15, %v5901_v9  ;;  %v4057_v9 = vld [vmem:[%s6670_s3 + $0x8] sm:$0xff] }
0x1292   :  { %v4306_v18 = vpack.i.bf16 %v2030_v11, %v2029_v48  ;;  %2367 = vmatpush.bf16.msra.mxu0 %v4057_v9 }
0x1293   :  { %v4311_v37 = vpack.i.bf16 %v2162_v6, %v2161_v49 }
0x1294   :  { %4307 = vrot.lane.b32.xlu2 %v4306_v18, %s4823_s13 }
0x1295   :  { %4312 = vrot.lane.b32.xlu0 %v4311_v37, %s4820_s16  ;;  %4302 = vrot.lane.b32.xlu1 %v4311_v37, %s4821_s17 }
0x1296   :  { %2368 = vmatpush.bf16.msra.mxu0 %v4056_v46 }
0x12ce   :  { %v4293_v56 = vpop.permute.xlu2 %4292 }
0x12cf   :  { %v4295_v45 = vunpack.i.h.bf16 %v4293_v56  ;;  %v4294_v60 = vunpack.i.l.bf16 %v4293_v56 }
0x12e7   :  { %v4288_v22 = vpop.permute.xlu1 %4287  ;;  %v4298_v38 = vpop.permute.xlu0 %4297 }
0x12e8   :  { %v4290_v24 = vunpack.i.h.bf16 %v4288_v22  ;;  %v4289_v63 = vunpack.i.l.bf16 %v4288_v22  ;;  %v4300_v2 = vunpack.i.h.bf16 %v4298_v38  ;;  %v4299_v31 = vunpack.i.l.bf16 %v4298_v38 }
0x12ea   :  { %v2196_v27 = vsel %vm197_vm6, %v4290_v24, %v4295_v45  ;;  %v2195_v14 = vsel %vm197_vm6, %v4289_v63, %v4294_v60  ;;  %v2323_v55 = vsel %vm36_vm2, 0.0, %v4300_v2  ;;  %v2322_v54 = vsel %vm36_vm2, 0.0, %v4299_v31 }
0x12eb   :  { %v2200_v50 = vsel %vm202_vm7, %v2196_v27, 1.0  ;;  %v2199_v8 = vsel %vm202_vm7, %v2195_v14, 1.0  ;;  %v2327_v47 = vsel %vm41_vm3, %v2323_v55, 1.0  ;;  %v2326_v39 = vsel %vm41_vm3, %v2322_v54, 1.0 }
0x12ec   :  { %v2203_v30 = vpack.c.bf16 %v2200_v50, %v2199_v8  ;;  %v2330_v12 = vpack.c.bf16 %v2327_v47, %v2326_v39 }
0x12ee   :  { %3906 = vmatmul.msk.bf16.vlgmr.msrb.gmra.mxu3 %vm245_vm8, %v2203_v30  ;;  %3916 = vmatmul.msk.bf16.vlgmr.msra.gmra.mxu0 %vm68_vm4, %v2330_v12  ;;  %v4308_v42 = vpop.permute.xlu2 %4307 }
0x12ef   :  { %v4310_v1 = vunpack.i.h.bf16 %v4308_v42  ;;  %v4309_v3 = vunpack.i.l.bf16 %v4308_v42 }
0x1307   :  { %v4303_v5 = vpop.permute.xlu1 %4302  ;;  %v4313_v35 = vpop.permute.xlu0 %4312 }
0x1308   :  { %v4305_v7 = vunpack.i.h.bf16 %v4303_v5  ;;  %v4304_v58 = vunpack.i.l.bf16 %v4303_v5  ;;  %v4315_v36 = vunpack.i.h.bf16 %v4313_v35  ;;  %v4314_v23 = vunpack.i.l.bf16 %v4313_v35 }
0x130a   :  { %v2325_v21 = vsel %vm36_vm2, 0.0, %v4315_v36  ;;  %v2324_v20 = vsel %vm36_vm2, 0.0, %v4314_v23  ;;  %v2197_v32 = vsel %vm197_vm6, %v4304_v58, %v4309_v3  ;;  %v2198_v57 = vsel %vm197_vm6, %v4305_v7, %v4310_v1 }
0x130b   :  { %v2329_v44 = vsel %vm41_vm3, %v2325_v21, 1.0  ;;  %v2328_v0 = vsel %vm41_vm3, %v2324_v20, 1.0  ;;  %v2201_v52 = vsel %vm202_vm7, %v2197_v32, 1.0  ;;  %v2202_v17 = vsel %vm202_vm7, %v2198_v57, 1.0 }
0x130c   :  { %v2204_v33 = vpack.c.bf16 %v2202_v17, %v2201_v52  ;;  %v2331_v51 = vpack.c.bf16 %v2329_v44, %v2328_v0 }
0x130e   :  { %3907 = vmatmul.msk.bf16.gmra.mxu3 %vm245_vm8, %v2204_v33  ;;  %3917 = vmatmul.msk.bf16.gmra.mxu0 %vm68_vm4, %v2331_v51 }
0x136b   :  { %v2370_v29 = vpop.f32.mrf.mxu0 }
0x136c   :  { %4667 = vtanh.f32 %v2370_v29 }
0x1371   :  { %v2220_v19 = vpop.f32.mrf.mxu3 }
0x1372   :  { %4669 = vtanh.f32 %v2220_v19  ;;  %v4668_v13 = vpop.eup %4667 }
0x1373   :  { %2400 = vrot.lane.b32.xlu0 %v4668_v13, %s4819_s15  ;;  %v2372_v48 = vpop.f32.mrf.mxu0  ;;  %v2384_v24 = vmul.f32 0.5, %v4668_v13 }
0x1374   :  { %4671 = vtanh.f32 %v2372_v48 }
0x1375   :  { %v6017_v63 = vadd.f32 0.5, %v2384_v24 }
0x1377   :  { %v2392_v44 = vmul.f32 %v6017_v63, %v5915_v26 }
0x1378   :  { %v4670_v11 = vpop.eup %4669 }
0x1379   :  { %v2222_v15 = vpop.f32.mrf.mxu3  ;;  %2250 = vrot.lane.b32.xlu1 %v4670_v11, %s4819_s15  ;;  %v2234_v2 = vmul.f32 0.5, %v4670_v11 }
0x137a   :  { %4673 = vtanh.f32 %v2222_v15  ;;  %v4672_v49 = vpop.eup %4671 }
0x137b   :  { %v6021_v27 = vadd.f32 0.5, %v2234_v2  ;;  %v2385_v55 = vmul.f32 0.5, %v4672_v49 }
0x137d   :  { %v6027_v47 = vadd.f32 0.5, %v2385_v55  ;;  %v2242_v26 = vmul.f32 %v6021_v27, %v5927_v41 }
0x137f   :  { %v2393_v15 = vmul.f32 %v6027_v47, %v5937_v43 }
0x1380   :  { %v4674_v6 = vpop.eup %4673 }
0x1381   :  { %2252 = vrot.lane.b32.xlu2 %v4674_v6, %s4819_s15  ;;  %2402 = vrot.lane.b32.xlu1 %v4672_v49, %s4819_s15  ;;  %v2235_v56 = vmul.f32 0.5, %v4674_v6 }
0x1383   :  { %v6013_v22 = vadd.f32 0.5, %v2235_v56 }
0x1385   :  { %v2243_v33 = vmul.f32 %v6013_v22, %v5921_v62 }
0x138b   :  { %v2375_v18 = vpop.f32.mrf.mxu0 }
0x138c   :  { %4675 = vtanh.f32 %v2375_v18 }
0x1391   :  { %v2225_v37 = vpop.f32.mrf.mxu3 }
0x1392   :  { %v4676_v28 = vpop.eup %4675  ;;  %4677 = vtanh.f32 %v2225_v37 }
0x1393   :  { %2404 = vrot.lane.b32.xlu1 %v4676_v28, %s4819_s15  ;;  %v2377_v53 = vpop.f32.mrf.mxu0  ;;  %v2386_v7 = vmul.f32 0.5, %v4676_v28 }
0x1394   :  { %4679 = vtanh.f32 %v2377_v53 }
0x1395   :  { %v6037_v58 = vadd.f32 0.5, %v2386_v7 }
0x1398   :  { %v4678_v16 = vpop.eup %4677 }
0x1399   :  { %2254 = vrot.lane.b32.xlu2 %v4678_v16, %s4819_s15  ;;  %v2227_v40 = vpop.f32.mrf.mxu3  ;;  %v2236_v8 = vmul.f32 0.5, %v4678_v16 }
0x139a   :  { %4681 = vtanh.f32 %v2227_v40  ;;  %v4680_v9 = vpop.eup %4679 }
0x139b   :  { %v6025_v54 = vadd.f32 0.5, %v2236_v8  ;;  %v2387_v1 = vmul.f32 0.5, %v4680_v9 }
0x139d   :  { %v6033_v3 = vadd.f32 0.5, %v2387_v1  ;;  %v2244_v11 = vmul.f32 %v6025_v54, %v5932_v25 }
0x139f   :  { %v2395_v25 = vmul.f32 %v6033_v3, %v5947_v59  ;;  %v2394_v59 = vmul.f32 %v6037_v58, %v5956_v34 }
0x13a0   :  { %v4682_v46 = vpop.eup %4681 }
0x13a1   :  { %2256 = vrot.lane.b32.xlu0 %v4682_v46, %s4819_s15  ;;  %2406 = vrot.lane.b32.xlu2 %v4680_v9, %s4819_s15  ;;  %v2237_v21 = vmul.f32 0.5, %v4682_v46 }
0x13a3   :  { %v6041_v20 = vadd.f32 0.5, %v2237_v21 }
0x13a5   :  { %v2245_v41 = vmul.f32 %v6041_v20, %v5945_v61 }
0x13db   :  { %v2253_v45 = vpop.permute.xlu2 %2252 }
0x13dc   :  { %v2263_v60 = vmul.f32 %v2253_v45, %v6013_v22 }
0x13de   :  { %2272 = vrot.lane.b32.xlu1 %v2263_v60, %s4819_s15 }
0x13e5   :  { %v2401_v38 = vpop.permute.xlu0 %2400 }
0x13e6   :  { %v2412_v31 = vmul.f32 %v2401_v38, %v6017_v63 }
0x13e8   :  { %2420 = vrot.lane.b32.xlu2 %v2412_v31, %s4819_s15 }
0x13eb   :  { %v2251_v14 = vpop.permute.xlu1 %2250 }
0x13ec   :  { %v2262_v50 = vmul.f32 %v2251_v14, %v6021_v27 }
0x13ee   :  { %2270 = vrot.lane.b32.xlu0 %v2262_v50, %s4819_s15 }
0x13f3   :  { %v2255_v30 = vpop.permute.xlu2 %2254  ;;  %v2403_v12 = vpop.permute.xlu1 %2402 }
0x13f4   :  { %v2264_v39 = vmul.f32 %v2255_v30, %v6025_v54  ;;  %v2413_v42 = vmul.f32 %v2403_v12, %v6027_v47 }
0x13f6   :  { %2274 = vrot.lane.b32.xlu1 %v2264_v39, %s4819_s15  ;;  %2422 = vrot.lane.b32.xlu0 %v2413_v42, %s4819_s15  ;;  %v2510_v39 = vld [vmem:[%s6671_s4 + $0x20] sm:$0x1] }
0x13f7   :  { %v2528_v12 = vunpack.c.l.b16 %v2510_v39 }
0x13fb   :  { %v2407_v5 = vpop.permute.xlu2 %2406 }
0x13fc   :  { %v2415_v35 = vmul.f32 %v2407_v5, %v6033_v3 }
0x13fe   :  { %2426 = vrot.lane.b32.xlu1 %v2415_v35, %s4819_s15 }
0x1405   :  { %v2405_v36 = vpop.permute.xlu1 %2404 }
0x1406   :  { %v2414_v23 = vmul.f32 %v2405_v36, %v6037_v58 }
0x1408   :  { %2424 = vrot.lane.b32.xlu0 %v2414_v23, %s4819_s15 }
0x1413   :  { %v2257_v32 = vpop.permute.xlu0 %2256 }
0x1414   :  { %v2265_v57 = vmul.f32 %v2257_v32, %v6041_v20  ;;  %v4061_v32 = vld [vmem:[%s6671_s4 + $0x18] sm:$0xff] }
0x1416   :  { %2276 = vrot.lane.b32.xlu2 %v2265_v57, %s4819_s15 }
0x1442   :  { %v2421_v0 = vpop.permute.xlu2 %2420 }
0x1443   :  { %v6047_v52 = vadd.f32 %v2421_v0, %v2392_v44 }
0x1445   :  { %4683 = vtanh.f32 %v6047_v52 }
0x144b   :  { %v4684_v17 = vpop.eup %4683 }
0x144c   :  { %2444 = vrot.lane.b32.xlu1 %v4684_v17, %s4819_s15 }
0x1450   :  { %v2273_v51 = vpop.permute.xlu1 %2272 }
0x1451   :  { %v6053_v29 = vadd.f32 %v2273_v51, %v2243_v33 }
0x1453   :  { %4685 = vtanh.f32 %v6053_v29 }
0x1459   :  { %v4686_v19 = vpop.eup %4685 }
0x145a   :  { %2296 = vrot.lane.b32.xlu0 %v4686_v19, %s4819_s15 }
0x1460   :  { %v2271_v13 = vpop.permute.xlu0 %2270 }
0x1461   :  { %v6059_v48 = vadd.f32 %v2271_v13, %v2242_v26 }
0x1463   :  { %4687 = vtanh.f32 %v6059_v48 }
0x1468   :  { %v2275_v62 = vpop.permute.xlu1 %2274  ;;  %v2423_v6 = vpop.permute.xlu0 %2422 }
0x1469   :  { %v6066_v49 = vadd.f32 %v2275_v62, %v2244_v11  ;;  %v4688_v18 = vpop.eup %4687  ;;  %v6068_v37 = vadd.f32 %v2423_v6, %v2393_v15 }
0x146a   :  { %2294 = vrot.lane.b32.xlu2 %v4688_v18, %s4819_s15 }
0x146b   :  { %4689 = vtanh.f32 %v6066_v49 }
0x146c   :  { %4691 = vtanh.f32 %v6068_v37 }
0x1470   :  { %v2277_v28 = vpop.permute.xlu2 %2276  ;;  %v2427_v43 = vpop.permute.xlu1 %2426 }
0x1471   :  { %v4690_v53 = vpop.eup %4689  ;;  %v6077_v16 = vadd.f32 %v2277_v28, %v2245_v41  ;;  %v6079_v40 = vadd.f32 %v2427_v43, %v2395_v25 }
0x1472   :  { %v4692_v9 = vpop.eup %4691  ;;  %2298 = vrot.lane.b32.xlu0 %v4690_v53, %s4819_s15 }
0x1473   :  { %4693 = vtanh.f32 %v6077_v16  ;;  %2446 = vrot.lane.b32.xlu2 %v4692_v9, %s4819_s15 }
0x1474   :  { %4695 = vtanh.f32 %v6079_v40 }
0x1479   :  { %v4694_v61 = vpop.eup %4693 }
0x147a   :  { %v4696_v46 = vpop.eup %4695  ;;  %v2425_v56 = vpop.permute.xlu0 %2424  ;;  %2300 = vrot.lane.b32.xlu1 %v4694_v61, %s4819_s15 }
0x147b   :  { %v6088_v45 = vadd.f32 %v2425_v56, %v2394_v59  ;;  %2450 = vrot.lane.b32.xlu0 %v4696_v46, %s4819_s15 }
0x147d   :  { %4697 = vtanh.f32 %v6088_v45 }
0x1483   :  { %v4698_v60 = vpop.eup %4697 }
0x1484   :  { %2448 = vrot.lane.b32.xlu2 %v4698_v60, %s4819_s15 }
0x14be   :  { %v2445_v38 = vpop.permute.xlu1 %2444 }
0x14bf   :  { %v2456_v14 = vmul.f32 %v2445_v38, %v6017_v63  ;;  %v2533_v63 = vpack.c.b16 %v2528_v12, %v2528_v12 }
0x14c4   :  { %v2295_v24 = vpop.permute.xlu2 %2294 }
0x14c5   :  { %v2306_v34 = vmul.f32 %v2295_v24, %v6021_v27  ;;  %v2545_v27 = vand.u32 %v2533_v63, %v4949_v10 }
0x14c7   :  { %2550 = vmatpush.bf16.msra.mxu2 %v2545_v27 }
0x14cb   :  { %2551 = vmatpush.bf16.msra.mxu2 %v4061_v32 }
0x14cc   :  { %v2297_v2 = vpop.permute.xlu0 %2296 }
0x14cd   :  { %v2447_v31 = vpop.permute.xlu2 %2446  ;;  %v2307_v50 = vmul.f32 %v2297_v2, %v6013_v22 }
0x14ce   :  { %v2457_v8 = vmul.f32 %v2447_v31, %v6027_v47 }
0x14cf   :  { %v4321_v55 = vpack.i.bf16 %v2307_v50, %v2306_v34 }
0x14d0   :  { %v6097_v30 = vpack.i.bf16 %v2457_v8, %v2456_v14 }
0x14d1   :  { %4322 = vrot.lane.b32.xlu2 %v4321_v55, %s4823_s13 }
0x14d2   :  { %4317 = vrot.lane.b32.xlu1 %v6097_v30, %s4821_s17 }
0x14de   :  { %v2449_v42 = vpop.permute.xlu2 %2448 }
0x14df   :  { %v2458_v7 = vmul.f32 %v2449_v42, %v6037_v58  ;;  %v4058_v58 = vld [vmem:[%s6671_s4] sm:$0xff] }
0x14e4   :  { %v2299_v22 = vpop.permute.xlu0 %2298 }
0x14e5   :  { %v2308_v1 = vmul.f32 %v2299_v22, %v6025_v54  ;;  %v4060_v54 = vld [vmem:[%s6671_s4 + $0x10] sm:$0xff] }
0x14e6   :  { %2552 = vmatpush.bf16.msra.mxu2 %v4060_v54 }
0x14ec   :  { %v2301_v47 = vpop.permute.xlu1 %2300 }
0x14ed   :  { %v2309_v5 = vmul.f32 %v2301_v47, %v6041_v20  ;;  %v2451_v35 = vpop.permute.xlu0 %2450 }
0x14ee   :  { %v2459_v36 = vmul.f32 %v2451_v35, %v6033_v3  ;;  %v4059_v3 = vld [vmem:[%s6671_s4 + $0x8] sm:$0xff] }
0x14ef   :  { %v4331_v23 = vpack.i.bf16 %v2309_v5, %v2308_v1  ;;  %2553 = vmatpush.bf16.msra.mxu2 %v4059_v3 }
0x14f0   :  { %v6110_v21 = vpack.i.bf16 %v2459_v36, %v2458_v7 }
0x14f1   :  { %4332 = vrot.lane.b32.xlu1 %v4331_v23, %s4823_s13 }
0x14f2   :  { %4327 = vrot.lane.b32.xlu0 %v6110_v21, %s4821_s17 }
0x14f3   :  { %2554 = vmatpush.bf16.msra.mxu2 %v4058_v58 }
0x152b   :  { %v4323_v20 = vpop.permute.xlu2 %4322 }
0x152c   :  { %v4325_v44 = vunpack.i.h.bf16 %v4323_v20  ;;  %v4324_v0 = vunpack.i.l.bf16 %v4323_v20 }
0x1544   :  { %v4318_v57 = vpop.permute.xlu1 %4317 }
0x1545   :  { %v4320_v17 = vunpack.i.h.bf16 %v4318_v57  ;;  %v4319_v33 = vunpack.i.l.bf16 %v4318_v57 }
0x1547   :  { %v2493_v51 = vsel %vm197_vm6, %v4320_v17, %v4325_v44  ;;  %v2492_v19 = vsel %vm197_vm6, %v4319_v33, %v4324_v0 }
0x1548   :  { %v2497_v26 = vsel %vm202_vm7, %v2493_v51, 1.0  ;;  %v2496_v13 = vsel %vm202_vm7, %v2492_v19, 1.0 }
0x1549   :  { %v2500_v11 = vpack.c.bf16 %v2497_v26, %v2496_v13 }
0x154b   :  { %3934 = vmatmul.msk.bf16.vlgmr.msra.gmra.mxu2 %vm245_vm8, %v2500_v11 }
0x1563   :  { %v4333_v62 = vpop.permute.xlu1 %4332 }
0x1564   :  { %v4335_v15 = vunpack.i.h.bf16 %v4333_v62  ;;  %v4334_v6 = vunpack.i.l.bf16 %v4333_v62  ;;  %v4328_v18 = vpop.permute.xlu0 %4327 }
0x1565   :  { %v4330_v41 = vunpack.i.h.bf16 %v4328_v18  ;;  %v4329_v25 = vunpack.i.l.bf16 %v4328_v18 }
0x1567   :  { %v2494_v28 = vsel %vm197_vm6, %v4329_v25, %v4334_v6  ;;  %v2495_v43 = vsel %vm197_vm6, %v4330_v41, %v4335_v15  ;;  %v6179_v15 = vld [vmem:[%s6672_s5 + $0x8] sm:$0xff] }
0x1568   :  { %v2498_v53 = vsel %vm202_vm7, %v2494_v28, 1.0  ;;  %v2499_v9 = vsel %vm202_vm7, %v2495_v43, 1.0  ;;  %2681 = vmatpush.bf16.msra.mxu1 %v6179_v15  ;;  %3054 = vmatpush.bf16.msrb.mxu2 %v6179_v15 }
0x1569   :  { %v2501_v61 = vpack.c.bf16 %v2499_v9, %v2498_v53 }
0x156b   :  { %3935 = vmatmul.msk.bf16.gmra.mxu2 %vm245_vm8, %v2501_v61 }
0x15ce   :  { %v2556_v59 = vpop.f32.mrf.mxu2 }
0x15cf   :  { %4699 = vtanh.f32 %v2556_v59 }
0x15d5   :  { %v4700_v46 = vpop.eup %4699 }
0x15d6   :  { %2586 = vrot.lane.b32.xlu2 %v4700_v46, %s4819_s15  ;;  %v2558_v56 = vpop.f32.mrf.mxu2  ;;  %v2570_v14 = vmul.f32 0.5, %v4700_v46  ;;  %v4063_v46 = vld [vmem:[%s6670_s3 + $0x8] sm:$0xff] }
0x15d7   :  { %4701 = vtanh.f32 %v2558_v56 }
0x15d8   :  { %v2574_v34 = vadd.f32 0.5, %v2570_v14 }
0x15da   :  { %v2578_v36 = vmul.f32 %v2574_v34, %v6059_v48 }
0x15dd   :  { %v4702_v60 = vpop.eup %4701 }
0x15de   :  { %2588 = vrot.lane.b32.xlu0 %v4702_v60, %s4819_s15  ;;  %v2571_v55 = vmul.f32 0.5, %v4702_v60  ;;  %v4062_v60 = vld [vmem:[%s6670_s3] sm:$0xff] }
0x15e0   :  { %v2575_v39 = vadd.f32 0.5, %v2571_v55 }
0x15e2   :  { %v2579_v58 = vmul.f32 %v2575_v39, %v6053_v29 }
0x15ee   :  { %v2561_v24 = vpop.f32.mrf.mxu2 }
0x15ef   :  { %4703 = vtanh.f32 %v2561_v24  ;;  %v6216_v24 = vld [vmem:[%s6673_s6] ss:$0 sm:$0xff] }
0x15f5   :  { %v4704_v38 = vpop.eup %4703 }
0x15f6   :  { %2590 = vrot.lane.b32.xlu1 %v4704_v38, %s4819_s15  ;;  %v2563_v2 = vpop.f32.mrf.mxu2  ;;  %v2572_v1 = vmul.f32 0.5, %v4704_v38 }
0x15f7   :  { %4705 = vtanh.f32 %v2563_v2 }
0x15f8   :  { %v2576_v5 = vadd.f32 0.5, %v2572_v1 }
0x15fa   :  { %v2580_v3 = vmul.f32 %v2576_v5, %v6066_v49 }
0x15fd   :  { %v4706_v31 = vpop.eup %4705 }
0x15fe   :  { %2592 = vrot.lane.b32.xlu2 %v4706_v31, %s4819_s15  ;;  %v2573_v27 = vmul.f32 0.5, %v4706_v31 }
0x1600   :  { %v2577_v22 = vadd.f32 0.5, %v2573_v27 }
0x1602   :  { %v2581_v48 = vmul.f32 %v2577_v22, %v6077_v16 }
0x1630   :  { %v2587_v50 = vpop.permute.xlu2 %2586 }
0x1631   :  { %v2598_v8 = vmul.f32 %v2587_v50, %v2574_v34 }
0x1633   :  { %2606 = vrot.lane.b32.xlu0 %v2598_v8, %s4819_s15 }
0x1650   :  { %v2589_v12 = vpop.permute.xlu0 %2588 }
0x1651   :  { %v2599_v63 = vmul.f32 %v2589_v12, %v2575_v39 }
0x1653   :  { %2608 = vrot.lane.b32.xlu1 %v2599_v63, %s4819_s15 }
0x1658   :  { %v2593_v42 = vpop.permute.xlu2 %2592 }
0x1659   :  { %v2601_v47 = vmul.f32 %v2593_v42, %v2577_v22 }
0x165b   :  { %2612 = vrot.lane.b32.xlu0 %v2601_v47, %s4819_s15 }
0x1668   :  { %v2591_v35 = vpop.permute.xlu1 %2590 }
0x1669   :  { %v2600_v7 = vmul.f32 %v2591_v35, %v2576_v5 }
0x166b   :  { %2610 = vrot.lane.b32.xlu2 %v2600_v7, %s4819_s15 }
0x16a5   :  { %v2607_v23 = vpop.permute.xlu0 %2606 }
0x16a6   :  { %v6146_v32 = vadd.f32 %v2607_v23, %v2578_v36 }
0x16a8   :  { %4707 = vtanh.f32 %v6146_v32 }
0x16ae   :  { %v4708_v54 = vpop.eup %4707 }
0x16af   :  { %2630 = vrot.lane.b32.xlu1 %v4708_v54, %s4819_s15 }
0x16c5   :  { %v2611_v20 = vpop.permute.xlu2 %2610  ;;  %v2609_v57 = vpop.permute.xlu1 %2608 }
0x16c6   :  { %v6152_v44 = vadd.f32 %v2611_v20, %v2580_v3  ;;  %v6154_v0 = vadd.f32 %v2609_v57, %v2579_v58 }
0x16c8   :  { %4709 = vtanh.f32 %v6152_v44 }
0x16c9   :  { %4711 = vtanh.f32 %v6154_v0 }
0x16cd   :  { %v2613_v17 = vpop.permute.xlu0 %2612 }
0x16ce   :  { %v4710_v33 = vpop.eup %4709  ;;  %v6159_v51 = vadd.f32 %v2613_v17, %v2581_v48 }
0x16cf   :  { %v4712_v19 = vpop.eup %4711  ;;  %2634 = vrot.lane.b32.xlu0 %v4710_v33, %s4819_s15 }
0x16d0   :  { %4713 = vtanh.f32 %v6159_v51  ;;  %2632 = vrot.lane.b32.xlu2 %v4712_v19, %s4819_s15 }
0x16d6   :  { %v4714_v29 = vpop.eup %4713 }
0x16d7   :  { %2636 = vrot.lane.b32.xlu1 %v4714_v29, %s4819_s15 }
0x16df   :  { %4337 = vrot.lane.b32.xlu1 %v6097_v30, %s4820_s16  ;;  %v6185_v30 = vld [vmem:[%s6672_s5] sm:$0xff] }
0x16e0   :  { %2682 = vmatpush.bf16.msra.mxu1 %v6185_v30  ;;  %3055 = vmatpush.bf16.msrb.mxu2 %v6185_v30 }
0x1721   :  { %v2631_v49 = vpop.permute.xlu1 %2630 }
0x1722   :  { %v6167_v16 = vmul.f32 %v2631_v49, %v2574_v34 }
0x172a   :  { %v2633_v26 = vpop.permute.xlu2 %2632 }
0x172b   :  { %v6169_v13 = vmul.f32 %v2633_v26, %v2575_v39 }
0x172d   :  { %v4351_v11 = vpack.i.bf16 %v6169_v13, %v6167_v16  ;;  %v2646_v62 = vpack.c.bf16 %v6169_v13, %v6167_v16 }
0x172f   :  { %2653 = vrot.lane.b32.xlu2 %v2646_v62, %s4821_s17 }
0x1737   :  { %4342 = vrot.lane.b32.xlu2 %v6110_v21, %s4820_s16  ;;  %v2724_v21 = vld [vmem:[%s6670_s3 + $0x10] sm:$0x7] }
0x1738   :  { %v2734_v9 = vunpack.c.l.b16 %v2724_v21 }
0x173a   :  { %v2737_v61 = vpack.c.b16 %v2734_v9, %v2734_v9 }
0x173c   :  { %v2747_v59 = vand.u32 %v2737_v61, %v4867_v4 }
0x173e   :  { %2754 = vmatpush.bf16.msra.mxu3 %v2747_v59 }
0x1741   :  { %v2635_v6 = vpop.permute.xlu0 %2634 }
0x1742   :  { %v6192_v41 = vmul.f32 %v2635_v6, %v2576_v5  ;;  %2755 = vmatpush.bf16.msra.mxu3 %v4063_v46 }
0x1746   :  { %2756 = vmatpush.bf16.msra.mxu3 %v4062_v60 }
0x1749   :  { %v2637_v18 = vpop.permute.xlu1 %2636 }
0x174a   :  { %v6194_v25 = vmul.f32 %v2637_v18, %v2577_v22 }
0x174c   :  { %v4361_v28 = vpack.i.bf16 %v6194_v25, %v6192_v41  ;;  %v2647_v43 = vpack.c.bf16 %v6194_v25, %v6192_v41  ;;  %v4065_v41 = vld [vmem:[%s6671_s4 + $0x8] sm:$0xff] }
0x174e   :  { %2655 = vrot.lane.b32.xlu0 %v2647_v43, %s4821_s17 }
0x1751   :  { %v4338_v31 = vpop.permute.xlu1 %4337 }
0x1752   :  { %v4339_v14 = vunpack.i.l.bf16 %v4338_v31  ;;  %v4340_v50 = vunpack.i.h.bf16 %v4338_v31 }
0x1789   :  { %v2654_v53 = vpop.permute.xlu2 %2653 }
0x178a   :  { %3944 = vmatmul.msk.bf16.vlgmr.msra.gmra.mxu1 %vm197_vm6, %v2654_v53 }
0x1791   :  { %v4343_v47 = vpop.permute.xlu2 %4342 }
0x1792   :  { %v4344_v1 = vunpack.i.l.bf16 %v4343_v47  ;;  %v4345_v35 = vunpack.i.h.bf16 %v4343_v47 }
0x17c0   :  { %v2656_v56 = vpop.permute.xlu0 %2655 }
0x17c1   :  { %3945 = vmatmul.msk.bf16.gmra.mxu1 %vm197_vm6, %v2656_v56 }
0x1807   :  { %v2684_v38 = vpop.f32.mrf.mxu1 }
0x1808   :  { %v2685_v2 = vadd.f32 %v6216_v24, %v2684_v38 }
0x180a   :  { %2694 = vst.msk [vmem:[%s6674_s7] sm:$0xff] %vm36_vm2, %v2685_v2  ;;  %v2710_v8 = vsel %vm36_vm2, %v2685_v2, %v4339_v14 }
0x180b   :  { %v2714_v12 = vsel %vm41_vm3, %v2710_v8, 1.0 }
0x180f   :  { %v2686_v34 = vpop.f32.mrf.mxu1 }
0x1810   :  { %v2687_v55 = vadd.f32 %v6216_v24, %v2686_v34 }
0x1812   :  { %2695 = vst.msk [vmem:[%s6674_s7 + $0x8] sm:$0xff] %vm36_vm2, %v2687_v55  ;;  %v2711_v39 = vsel %vm36_vm2, %v2687_v55, %v4340_v50 }
0x1813   :  { %v2715_v63 = vsel %vm41_vm3, %v2711_v39, 1.0 }
0x1814   :  { %v2718_v27 = vpack.c.bf16 %v2715_v63, %v2714_v12 }
0x1816   :  { %3954 = vmatmul.msk.bf16.vlgmr.msra.gmra.mxu3 %vm68_vm4, %v2718_v27 }
0x183e   :  { %v2689_v22 = vpop.f32.mrf.mxu1 }
0x183f   :  { %v2690_v42 = vadd.f32 %v6216_v24, %v2689_v22 }
0x1841   :  { %2696 = vst.msk [vmem:[%s6674_s7 + $0x10] sm:$0xff] %vm36_vm2, %v2690_v42  ;;  %v2712_v7 = vsel %vm36_vm2, %v2690_v42, %v4344_v1 }
0x1842   :  { %v2716_v54 = vsel %vm41_vm3, %v2712_v7, 1.0 }
0x1846   :  { %v2691_v5 = vpop.f32.mrf.mxu1 }
0x1847   :  { %v2692_v36 = vadd.f32 %v6216_v24, %v2691_v5 }
0x1849   :  { %2697 = vst.msk [vmem:[%s6674_s7 + $0x18] sm:$0xff] %vm36_vm2, %v2692_v36  ;;  %v2713_v23 = vsel %vm36_vm2, %v2692_v36, %v4345_v35 }
0x184a   :  { %v2717_v3 = vsel %vm41_vm3, %v2713_v23, 1.0 }
0x184b   :  { %v2719_v58 = vpack.c.bf16 %v2717_v3, %v2716_v54  ;;  %v4067_v54 = vld [vmem:[%s6671_s4 + $0x18] sm:$0xff]  ;;  %v4066_v3 = vld [vmem:[%s6671_s4 + $0x10] sm:$0xff] }
0x184d   :  { %3955 = vmatmul.msk.bf16.gmra.mxu3 %vm68_vm4, %v2719_v58 }
0x1899   :  { %v2758_v20 = vpop.f32.mrf.mxu3 }
0x189a   :  { %4715 = vtanh.f32 %v2758_v20 }
0x18a0   :  { %v4716_v57 = vpop.eup %4715 }
0x18a1   :  { %2788 = vrot.lane.b32.xlu0 %v4716_v57, %s4819_s15  ;;  %v2760_v48 = vpop.f32.mrf.mxu3  ;;  %v2772_v26 = vmul.f32 0.5, %v4716_v57 }
0x18a2   :  { %4717 = vtanh.f32 %v2760_v48  ;;  %v4064_v48 = vld [vmem:[%s6671_s4] sm:$0xff] }
0x18a3   :  { %v2776_v62 = vadd.f32 0.5, %v2772_v26 }
0x18a5   :  { %v2780_v55 = vmul.f32 %v2776_v62, %v6047_v52 }
0x18a8   :  { %v4718_v17 = vpop.eup %4717 }
0x18a9   :  { %2790 = vrot.lane.b32.xlu1 %v4718_v17, %s4819_s15  ;;  %v2773_v43 = vmul.f32 0.5, %v4718_v17 }
0x18ab   :  { %v2777_v53 = vadd.f32 0.5, %v2773_v43 }
0x18ad   :  { %v2781_v14 = vmul.f32 %v2777_v53, %v6068_v37 }
0x18d0   :  { %v2763_v33 = vpop.f32.mrf.mxu3 }
0x18d1   :  { %4719 = vtanh.f32 %v2763_v33 }
0x18d7   :  { %v4720_v19 = vpop.eup %4719 }
0x18d8   :  { %2792 = vrot.lane.b32.xlu2 %v4720_v19, %s4819_s15  ;;  %v2765_v29 = vpop.f32.mrf.mxu3  ;;  %v2774_v61 = vmul.f32 0.5, %v4720_v19 }
0x18d9   :  { %4721 = vtanh.f32 %v2765_v29 }
0x18da   :  { %v2778_v59 = vadd.f32 0.5, %v2774_v61 }
0x18dc   :  { %v2782_v37 = vmul.f32 %v2778_v59, %v6088_v45 }
0x18df   :  { %v4722_v49 = vpop.eup %4721 }
0x18e0   :  { %2794 = vrot.lane.b32.xlu0 %v4722_v49, %s4819_s15  ;;  %v2775_v60 = vmul.f32 0.5, %v4722_v49 }
0x18e2   :  { %v2779_v38 = vadd.f32 0.5, %v2775_v60 }
0x18e4   :  { %v2783_v52 = vmul.f32 %v2779_v38, %v6079_v40  ;;  %v2898_v40 = vld [vmem:[%s6671_s4 + $0x20] sm:$0x1] }
0x18e5   :  { %v2916_v16 = vunpack.c.l.b16 %v2898_v40 }
0x18e7   :  { %v2921_v13 = vpack.c.b16 %v2916_v16, %v2916_v16 }
0x1913   :  { %v2789_v6 = vpop.permute.xlu0 %2788 }
0x1914   :  { %v2800_v18 = vmul.f32 %v2789_v6, %v2776_v62 }
0x1916   :  { %2808 = vrot.lane.b32.xlu1 %v2800_v18, %s4819_s15 }
0x191b   :  { %v2791_v21 = vpop.permute.xlu1 %2790 }
0x191c   :  { %v2801_v9 = vmul.f32 %v2791_v21, %v2777_v53 }
0x191e   :  { %2810 = vrot.lane.b32.xlu2 %v2801_v9, %s4819_s15 }
0x1932   :  { %v2793_v46 = vpop.permute.xlu2 %2792 }
0x1933   :  { %v2802_v56 = vmul.f32 %v2793_v46, %v2778_v59 }
0x1935   :  { %2812 = vrot.lane.b32.xlu0 %v2802_v56, %s4819_s15 }
0x1952   :  { %v2795_v2 = vpop.permute.xlu0 %2794 }
0x1953   :  { %v2803_v31 = vmul.f32 %v2795_v2, %v2779_v38 }
0x1955   :  { %2814 = vrot.lane.b32.xlu1 %v2803_v31, %s4819_s15 }
0x1978   :  { %v2811_v34 = vpop.permute.xlu2 %2810 }
0x1979   :  { %v6257_v50 = vadd.f32 %v2811_v34, %v2781_v14 }
0x197b   :  { %4723 = vtanh.f32 %v6257_v50 }
0x1981   :  { %v4724_v8 = vpop.eup %4723 }
0x1982   :  { %2834 = vrot.lane.b32.xlu0 %v4724_v8, %s4819_s15 }
0x1988   :  { %v2809_v39 = vpop.permute.xlu1 %2808 }
0x1989   :  { %v6262_v12 = vadd.f32 %v2809_v39, %v2780_v55 }
0x198b   :  { %4725 = vtanh.f32 %v6262_v12 }
0x1991   :  { %v4726_v63 = vpop.eup %4725 }
0x1992   :  { %2832 = vrot.lane.b32.xlu2 %v4726_v63, %s4819_s15 }
0x19a7   :  { %v2813_v27 = vpop.permute.xlu0 %2812 }
0x19a8   :  { %v6267_v22 = vadd.f32 %v2813_v27, %v2782_v37 }
0x19aa   :  { %4727 = vtanh.f32 %v6267_v22 }
0x19b0   :  { %v4728_v42 = vpop.eup %4727 }
0x19b1   :  { %2836 = vrot.lane.b32.xlu1 %v4728_v42, %s4819_s15 }
0x19b9   :  { %4352 = vrot.lane.b32.xlu1 %v4351_v11, %s4823_s13  ;;  %v2933_v11 = vand.u32 %v2921_v13, %v4949_v10 }
0x19bb   :  { %2938 = vmatpush.bf16.msrb.mxu0 %v2933_v11 }
0x19bf   :  { %2939 = vmatpush.bf16.msrb.mxu0 %v4067_v54 }
0x19c3   :  { %2940 = vmatpush.bf16.msrb.mxu0 %v4066_v3 }
0x19c7   :  { %v2815_v47 = vpop.permute.xlu1 %2814  ;;  %2941 = vmatpush.bf16.msrb.mxu0 %v4065_v41 }
0x19c8   :  { %v6276_v1 = vadd.f32 %v2815_v47, %v2783_v52 }
0x19ca   :  { %4729 = vtanh.f32 %v6276_v1 }
0x19cb   :  { %2942 = vmatpush.bf16.msrb.mxu0 %v4064_v48 }
0x19cf   :  { %3428 = vmatpush.bf16.msra.mxu0 %v6179_v15 }
0x19d0   :  { %v4730_v45 = vpop.eup %4729 }
0x19d1   :  { %2838 = vrot.lane.b32.xlu2 %v4730_v45, %s4819_s15 }
0x19d3   :  { %3429 = vmatpush.bf16.msra.mxu0 %v6185_v30 }
0x19ec   :  { %v2833_v5 = vpop.permute.xlu2 %2832 }
0x19ed   :  { %v2844_v7 = vmul.f32 %v2833_v5, %v2776_v62 }
0x19f4   :  { %v2835_v35 = vpop.permute.xlu0 %2834 }
0x19f5   :  { %v2845_v36 = vmul.f32 %v2835_v35, %v2777_v53 }
0x19f7   :  { %v6280_v23 = vpack.i.bf16 %v2845_v36, %v2844_v7 }
0x19f9   :  { %4347 = vrot.lane.b32.xlu0 %v6280_v23, %s4821_s17 }
0x1a01   :  { %4362 = vrot.lane.b32.xlu0 %v4361_v28, %s4823_s13 }
0x1a23   :  { %v2837_v25 = vpop.permute.xlu1 %2836 }
0x1a24   :  { %v2846_v58 = vmul.f32 %v2837_v25, %v2778_v59 }
0x1a2b   :  { %v2839_v28 = vpop.permute.xlu2 %2838  ;;  %v4353_v17 = vpop.permute.xlu1 %4352 }
0x1a2c   :  { %v2847_v20 = vmul.f32 %v2839_v28, %v2779_v38  ;;  %v4355_v19 = vunpack.i.h.bf16 %v4353_v17  ;;  %v4354_v29 = vunpack.i.l.bf16 %v4353_v17 }
0x1a2e   :  { %v6301_v57 = vpack.i.bf16 %v2847_v20, %v2846_v58 }
0x1a30   :  { %4357 = vrot.lane.b32.xlu2 %v6301_v57, %s4821_s17 }
0x1a6b   :  { %v4348_v33 = vpop.permute.xlu0 %4347 }
0x1a6c   :  { %v4350_v49 = vunpack.i.h.bf16 %v4348_v33  ;;  %v4349_v26 = vunpack.i.l.bf16 %v4348_v33 }
0x1a6e   :  { %v2880_v62 = vsel %vm197_vm6, %v4349_v26, %v4354_v29  ;;  %v2881_v6 = vsel %vm197_vm6, %v4350_v49, %v4355_v19 }
0x1a6f   :  { %v2884_v18 = vsel %vm202_vm7, %v2880_v62, 1.0  ;;  %v2885_v43 = vsel %vm202_vm7, %v2881_v6, 1.0 }
0x1a70   :  { %v2888_v53 = vpack.c.bf16 %v2885_v43, %v2884_v18 }
0x1a72   :  { %3972 = vmatmul.msk.bf16.vlgmr.msrb.gmra.mxu0 %vm245_vm8, %v2888_v53 }
0x1a73   :  { %v4363_v21 = vpop.permute.xlu0 %4362 }
0x1a74   :  { %v4365_v61 = vunpack.i.h.bf16 %v4363_v21  ;;  %v4364_v59 = vunpack.i.l.bf16 %v4363_v21 }
0x1a8a   :  { %v4358_v9 = vpop.permute.xlu2 %4357 }
0x1a8b   :  { %v4360_v46 = vunpack.i.h.bf16 %v4358_v9  ;;  %v4359_v56 = vunpack.i.l.bf16 %v4358_v9 }
0x1a8d   :  { %v2882_v60 = vsel %vm197_vm6, %v4359_v56, %v4364_v59  ;;  %v2883_v38 = vsel %vm197_vm6, %v4360_v46, %v4365_v61 }
0x1a8e   :  { %v2886_v2 = vsel %vm202_vm7, %v2882_v60, 1.0  ;;  %v2887_v31 = vsel %vm202_vm7, %v2883_v38, 1.0 }
0x1a8f   :  { %v2889_v14 = vpack.c.bf16 %v2887_v31, %v2886_v2  ;;  %v3098_v31 = vld [vmem:[%s6670_s3 + $0x10] sm:$0x7] }
0x1a91   :  { %3973 = vmatmul.msk.bf16.gmra.mxu0 %vm245_vm8, %v2889_v14  ;;  %v3108_v14 = vunpack.c.l.b16 %v3098_v31 }
0x1aef   :  { %v2944_v34 = vpop.f32.mrf.mxu0 }
0x1af0   :  { %4731 = vtanh.f32 %v2944_v34 }
0x1af6   :  { %v4732_v8 = vpop.eup %4731 }
0x1af7   :  { %2974 = vrot.lane.b32.xlu1 %v4732_v8, %s4819_s15  ;;  %v2946_v55 = vpop.f32.mrf.mxu0  ;;  %v2958_v35 = vmul.f32 0.5, %v4732_v8  ;;  %v4069_v8 = vld [vmem:[%s6670_s3 + $0x8] sm:$0xff] }
0x1af8   :  { %4733 = vtanh.f32 %v2946_v55 }
0x1af9   :  { %v2962_v7 = vadd.f32 0.5, %v2958_v35 }
0x1afb   :  { %v2966_v58 = vmul.f32 %v2962_v7, %v6146_v32 }
0x1afe   :  { %v4734_v39 = vpop.eup %4733 }
0x1aff   :  { %2976 = vrot.lane.b32.xlu2 %v4734_v39, %s4819_s15  ;;  %v2959_v52 = vmul.f32 0.5, %v4734_v39 }
0x1b01   :  { %v2963_v47 = vadd.f32 0.5, %v2959_v52 }
0x1b03   :  { %v2967_v17 = vmul.f32 %v2963_v47, %v6154_v0 }
0x1b0e   :  { %v2949_v63 = vpop.f32.mrf.mxu0 }
0x1b0f   :  { %4735 = vtanh.f32 %v2949_v63  ;;  %v4068_v63 = vld [vmem:[%s6670_s3] sm:$0xff] }
0x1b15   :  { %v4736_v37 = vpop.eup %4735 }
0x1b16   :  { %2978 = vrot.lane.b32.xlu0 %v4736_v37, %s4819_s15  ;;  %v2951_v27 = vpop.f32.mrf.mxu0  ;;  %v2960_v16 = vmul.f32 0.5, %v4736_v37 }
0x1b17   :  { %4737 = vtanh.f32 %v2951_v27 }
0x1b18   :  { %v2964_v13 = vadd.f32 0.5, %v2960_v16 }
0x1b1a   :  { %v2968_v0 = vmul.f32 %v2964_v13, %v6152_v44 }
0x1b1d   :  { %v4738_v42 = vpop.eup %4737 }
0x1b1e   :  { %2980 = vrot.lane.b32.xlu1 %v4738_v42, %s4819_s15  ;;  %v2961_v3 = vmul.f32 0.5, %v4738_v42 }
0x1b20   :  { %v2965_v41 = vadd.f32 0.5, %v2961_v3 }
0x1b22   :  { %v2969_v32 = vmul.f32 %v2965_v41, %v6159_v51 }
0x1b59   :  { %v2977_v45 = vpop.permute.xlu2 %2976 }
0x1b5a   :  { %v2987_v5 = vmul.f32 %v2977_v45, %v2963_v47 }
0x1b5c   :  { %2996 = vrot.lane.b32.xlu0 %v2987_v5, %s4819_s15 }
0x1b69   :  { %v2975_v36 = vpop.permute.xlu1 %2974 }
0x1b6a   :  { %v2986_v40 = vmul.f32 %v2975_v36, %v2962_v7 }
0x1b6c   :  { %2994 = vrot.lane.b32.xlu2 %v2986_v40, %s4819_s15 }
0x1b88   :  { %v2979_v11 = vpop.permute.xlu0 %2978 }
0x1b89   :  { %v2988_v54 = vmul.f32 %v2979_v11, %v2964_v13 }
0x1b8b   :  { %2998 = vrot.lane.b32.xlu1 %v2988_v54, %s4819_s15 }
0x1b90   :  { %v2981_v25 = vpop.permute.xlu1 %2980 }
0x1b91   :  { %v2989_v28 = vmul.f32 %v2981_v25, %v2965_v41 }
0x1b93   :  { %3000 = vrot.lane.b32.xlu2 %v2989_v28, %s4819_s15 }
0x1bc6   :  { %v2995_v20 = vpop.permute.xlu2 %2994 }
0x1bc7   :  { %v6329_v48 = vadd.f32 %v2995_v20, %v2966_v58 }
0x1bc9   :  { %4739 = vtanh.f32 %v6329_v48 }
0x1bce   :  { %v2997_v33 = vpop.permute.xlu0 %2996 }
0x1bcf   :  { %v4740_v19 = vpop.eup %4739  ;;  %v6333_v29 = vadd.f32 %v2997_v33, %v2967_v17 }
0x1bd0   :  { %3018 = vrot.lane.b32.xlu0 %v4740_v19, %s4819_s15 }
0x1bd1   :  { %4741 = vtanh.f32 %v6333_v29 }
0x1bd7   :  { %v4742_v49 = vpop.eup %4741 }
0x1bd8   :  { %3020 = vrot.lane.b32.xlu1 %v4742_v49, %s4819_s15 }
0x1bed   :  { %v3001_v26 = vpop.permute.xlu2 %3000 }
0x1bee   :  { %v6339_v62 = vadd.f32 %v3001_v26, %v2969_v32 }
0x1bf0   :  { %4743 = vtanh.f32 %v6339_v62 }
0x1bf6   :  { %v4744_v6 = vpop.eup %4743 }
0x1bf7   :  { %3024 = vrot.lane.b32.xlu0 %v4744_v6, %s4819_s15 }
0x1bfd   :  { %v2999_v18 = vpop.permute.xlu1 %2998 }
0x1bfe   :  { %v6344_v43 = vadd.f32 %v2999_v18, %v2968_v0 }
0x1bff   :  { %4367 = vrot.lane.b32.xlu0 %v6280_v23, %s4820_s16 }
0x1c00   :  { %4745 = vtanh.f32 %v6344_v43 }
0x1c06   :  { %v4746_v53 = vpop.eup %4745 }
0x1c07   :  { %3022 = vrot.lane.b32.xlu2 %v4746_v53, %s4819_s15 }
0x1c42   :  { %v3019_v51 = vpop.permute.xlu0 %3018 }
0x1c43   :  { %v6350_v9 = vmul.f32 %v3019_v51, %v2962_v7 }
0x1c4a   :  { %v3021_v21 = vpop.permute.xlu1 %3020 }
0x1c4b   :  { %v6352_v61 = vmul.f32 %v3021_v21, %v2963_v47 }
0x1c4d   :  { %v4381_v44 = vpack.i.bf16 %v6352_v61, %v6350_v9  ;;  %v3034_v59 = vpack.c.bf16 %v6352_v61, %v6350_v9  ;;  %v4073_v9 = vld [vmem:[%s6671_s4 + $0x18] sm:$0xff] }
0x1c4f   :  { %3038 = vrot.lane.b32.xlu1 %v3034_v59, %s4821_s17 }
0x1c57   :  { %4372 = vrot.lane.b32.xlu1 %v6301_v57, %s4820_s16  ;;  %v3111_v57 = vpack.c.b16 %v3108_v14, %v3108_v14 }
0x1c59   :  { %v3121_v34 = vand.u32 %v3111_v57, %v4867_v4 }
0x1c5b   :  { %3128 = vmatpush.bf16.msrb.mxu1 %v3121_v34 }
0x1c5f   :  { %3129 = vmatpush.bf16.msrb.mxu1 %v4069_v8 }
0x1c61   :  { %v3023_v23 = vpop.permute.xlu2 %3022 }
0x1c62   :  { %v6361_v56 = vmul.f32 %v3023_v23, %v2964_v13 }
0x1c63   :  { %3130 = vmatpush.bf16.msrb.mxu1 %v4068_v63 }
0x1c69   :  { %v3025_v46 = vpop.permute.xlu0 %3024 }
0x1c6a   :  { %v6363_v60 = vmul.f32 %v3025_v46, %v2965_v41 }
0x1c6c   :  { %v4391_v38 = vpack.i.bf16 %v6363_v60, %v6361_v56  ;;  %v3035_v2 = vpack.c.bf16 %v6363_v60, %v6361_v56 }
0x1c6e   :  { %3040 = vrot.lane.b32.xlu2 %v3035_v2, %s4821_s17 }
0x1c71   :  { %v4368_v42 = vpop.permute.xlu0 %4367 }
0x1c72   :  { %v4369_v52 = vunpack.i.l.bf16 %v4368_v42  ;;  %v4370_v45 = vunpack.i.h.bf16 %v4368_v42 }
0x1cc1   :  { %v3039_v55 = vpop.permute.xlu1 %3038 }
0x1cc2   :  { %3974 = vmatmul.msk.bf16.vlgmr.msrb.gmra.mxu2 %vm197_vm6, %v3039_v55 }
0x1cc8   :  { %v3041_v39 = vpop.permute.xlu2 %3040 }
0x1cc9   :  { %v4373_v54 = vpop.permute.xlu1 %4372 }
0x1cca   :  { %v4374_v3 = vunpack.i.l.bf16 %v4373_v54  ;;  %v4375_v25 = vunpack.i.h.bf16 %v4373_v54 }
0x1cd2   :  { %3975 = vmatmul.msk.bf16.gmra.mxu2 %vm197_vm6, %v3041_v39 }
0x1d45   :  { %v3057_v37 = vpop.f32.mrf.mxu2 }
0x1d46   :  { %v3058_v27 = vadd.f32 %v6216_v24, %v3057_v37 }
0x1d48   :  { %3976 = vst.msk [vmem:[%s6674_s7 + $0x20] sm:$0xff] %vm36_vm2, %v3058_v27  ;;  %v3084_v5 = vsel %vm36_vm2, %v3058_v27, %v4369_v52 }
0x1d49   :  { %v3088_v36 = vsel %vm41_vm3, %v3084_v5, 1.0 }
0x1d4d   :  { %v3059_v47 = vpop.f32.mrf.mxu2 }
0x1d4e   :  { %v3060_v35 = vadd.f32 %v6216_v24, %v3059_v47 }
0x1d50   :  { %3977 = vst.msk [vmem:[%s6674_s7 + $0x28] sm:$0xff] %vm36_vm2, %v3060_v35  ;;  %v3085_v7 = vsel %vm36_vm2, %v3060_v35, %v4370_v45 }
0x1d51   :  { %v3089_v40 = vsel %vm41_vm3, %v3085_v7, 1.0 }
0x1d52   :  { %v3092_v16 = vpack.c.bf16 %v3089_v40, %v3088_v36 }
0x1d54   :  { %3988 = vmatmul.msk.bf16.vlgmr.msrb.gmra.mxu1 %vm68_vm4, %v3092_v16 }
0x1d55   :  { %v3062_v13 = vpop.f32.mrf.mxu2 }
0x1d56   :  { %v3063_v11 = vadd.f32 %v6216_v24, %v3062_v13 }
0x1d58   :  { %3978 = vst.msk [vmem:[%s6674_s7 + $0x30] sm:$0xff] %vm36_vm2, %v3063_v11  ;;  %v3086_v28 = vsel %vm36_vm2, %v3063_v11, %v4374_v3 }
0x1d59   :  { %v3090_v17 = vsel %vm41_vm3, %v3086_v28, 1.0 }
0x1d5d   :  { %v3064_v41 = vpop.f32.mrf.mxu2 }
0x1d5e   :  { %v3065_v58 = vadd.f32 %v6216_v24, %v3064_v41 }
0x1d60   :  { %3979 = vst.msk [vmem:[%s6674_s7 + $0x38] sm:$0xff] %vm36_vm2, %v3065_v58  ;;  %v3087_v20 = vsel %vm36_vm2, %v3065_v58, %v4375_v25  ;;  %v4072_v58 = vld [vmem:[%s6671_s4 + $0x10] sm:$0xff] }
0x1d61   :  { %v3091_v33 = vsel %vm41_vm3, %v3087_v20, 1.0 }
0x1d62   :  { %v3093_v19 = vpack.c.bf16 %v3091_v33, %v3090_v17 }
0x1d64   :  { %3989 = vmatmul.msk.bf16.gmra.mxu1 %vm68_vm4, %v3093_v19  ;;  %v4071_v19 = vld [vmem:[%s6671_s4 + $0x8] sm:$0xff] }
0x1dd1   :  { %v3132_v49 = vpop.f32.mrf.mxu1 }
0x1dd2   :  { %4747 = vtanh.f32 %v3132_v49 }
0x1dd8   :  { %v4748_v32 = vpop.eup %4747 }
0x1dd9   :  { %3162 = vrot.lane.b32.xlu2 %v4748_v32, %s4819_s15  ;;  %v3134_v26 = vpop.f32.mrf.mxu1  ;;  %v3146_v21 = vmul.f32 0.5, %v4748_v32 }
0x1dda   :  { %4749 = vtanh.f32 %v3134_v26 }
0x1ddb   :  { %v3150_v59 = vadd.f32 0.5, %v3146_v21 }
0x1ddd   :  { %v3154_v52 = vmul.f32 %v3150_v59, %v6262_v12 }
0x1de0   :  { %v4750_v6 = vpop.eup %4749 }
0x1de1   :  { %3164 = vrot.lane.b32.xlu0 %v4750_v6, %s4819_s15  ;;  %v3137_v0 = vpop.f32.mrf.mxu1  ;;  %v3147_v34 = vmul.f32 0.5, %v4750_v6 }
0x1de2   :  { %4751 = vtanh.f32 %v3137_v0 }
0x1de3   :  { %v3151_v8 = vadd.f32 0.5, %v3147_v34 }
0x1de5   :  { %v3155_v11 = vmul.f32 %v3151_v8, %v6257_v50  ;;  %v3272_v50 = vld [vmem:[%s6671_s4 + $0x20] sm:$0x1] }
0x1de6   :  { %v3290_v41 = vunpack.c.l.b16 %v3272_v50 }
0x1de8   :  { %v4752_v18 = vpop.eup %4751  ;;  %v3295_v25 = vpack.c.b16 %v3290_v41, %v3290_v41 }
0x1de9   :  { %3166 = vrot.lane.b32.xlu1 %v4752_v18, %s4819_s15  ;;  %v3139_v53 = vpop.f32.mrf.mxu1  ;;  %v3148_v63 = vmul.f32 0.5, %v4752_v18  ;;  %v4070_v18 = vld [vmem:[%s6671_s4] sm:$0xff] }
0x1dea   :  { %4753 = vtanh.f32 %v3139_v53  ;;  %v3307_v28 = vand.u32 %v3295_v25, %v4949_v10 }
0x1deb   :  { %v3152_v37 = vadd.f32 0.5, %v3148_v63 }
0x1dec   :  { %3312 = vmatpush.bf16.msrb.mxu3 %v3307_v28 }
0x1ded   :  { %v3156_v35 = vmul.f32 %v3152_v37, %v6267_v22 }
0x1df0   :  { %v4754_v51 = vpop.eup %4753  ;;  %3313 = vmatpush.bf16.msrb.mxu3 %v4073_v9 }
0x1df1   :  { %3168 = vrot.lane.b32.xlu2 %v4754_v51, %s4819_s15  ;;  %v3149_v2 = vmul.f32 0.5, %v4754_v51 }
0x1df3   :  { %v3153_v31 = vadd.f32 0.5, %v3149_v2 }
0x1df4   :  { %3314 = vmatpush.bf16.msrb.mxu3 %v4072_v58 }
0x1df5   :  { %v3157_v40 = vmul.f32 %v3153_v31, %v6276_v1 }
0x1df8   :  { %3315 = vmatpush.bf16.msrb.mxu3 %v4071_v19 }
0x1dfc   :  { %3316 = vmatpush.bf16.msrb.mxu3 %v4070_v18 }
0x1e00   :  { %3802 = vmatpush.bf16.msra.mxu3 %v6179_v15 }
0x1e04   :  { %3803 = vmatpush.bf16.msra.mxu3 %v6185_v30 }
0x1e33   :  { %v3163_v23 = vpop.permute.xlu2 %3162 }
0x1e34   :  { %v3174_v46 = vmul.f32 %v3163_v23, %v3150_v59 }
0x1e36   :  { %3182 = vrot.lane.b32.xlu0 %v3174_v46, %s4819_s15 }
0x1e4b   :  { %v3169_v14 = vpop.permute.xlu2 %3168 }
0x1e4c   :  { %v3177_v57 = vmul.f32 %v3169_v14, %v3153_v31 }
0x1e4e   :  { %3188 = vrot.lane.b32.xlu0 %v3177_v57, %s4819_s15 }
0x1e53   :  { %v3165_v55 = vpop.permute.xlu0 %3164 }
0x1e54   :  { %v3175_v39 = vmul.f32 %v3165_v55, %v3151_v8 }
0x1e56   :  { %3184 = vrot.lane.b32.xlu1 %v3175_v39, %s4819_s15 }
0x1e5b   :  { %v3167_v27 = vpop.permute.xlu1 %3166 }
0x1e5c   :  { %v3176_v42 = vmul.f32 %v3167_v27, %v3152_v37 }
0x1e5e   :  { %3186 = vrot.lane.b32.xlu2 %v3176_v42, %s4819_s15 }
0x1ea8   :  { %v3183_v47 = vpop.permute.xlu0 %3182 }
0x1ea9   :  { %v6421_v45 = vadd.f32 %v3183_v47, %v3154_v52 }
0x1eab   :  { %4755 = vtanh.f32 %v6421_v45 }
0x1eb1   :  { %v4756_v5 = vpop.eup %4755 }
0x1eb2   :  { %3206 = vrot.lane.b32.xlu1 %v4756_v5, %s4819_s15 }
0x1eb8   :  { %v3187_v7 = vpop.permute.xlu2 %3186 }
0x1eb9   :  { %v6426_v36 = vadd.f32 %v3187_v7, %v3156_v35 }
0x1ebb   :  { %4757 = vtanh.f32 %v6426_v36 }
0x1ec0   :  { %v3189_v16 = vpop.permute.xlu0 %3188 }
0x1ec1   :  { %v4758_v13 = vpop.eup %4757  ;;  %v6430_v12 = vadd.f32 %v3189_v16, %v3157_v40 }
0x1ec2   :  { %3210 = vrot.lane.b32.xlu0 %v4758_v13, %s4819_s15 }
0x1ec3   :  { %4759 = vtanh.f32 %v6430_v12 }
0x1ec8   :  { %v3185_v54 = vpop.permute.xlu1 %3184 }
0x1ec9   :  { %v4760_v3 = vpop.eup %4759  ;;  %v6435_v22 = vadd.f32 %v3185_v54, %v3155_v11 }
0x1eca   :  { %4382 = vrot.lane.b32.xlu0 %v4381_v44, %s4823_s13  ;;  %3212 = vrot.lane.b32.xlu1 %v4760_v3, %s4819_s15 }
0x1ecb   :  { %4761 = vtanh.f32 %v6435_v22 }
0x1ed1   :  { %v4762_v1 = vpop.eup %4761 }
0x1ed2   :  { %3208 = vrot.lane.b32.xlu2 %v4762_v1, %s4819_s15 }
0x1f24   :  { %v3207_v61 = vpop.permute.xlu1 %3206 }
0x1f25   :  { %v3218_v20 = vmul.f32 %v3207_v61, %v3150_v59 }
0x1f2c   :  { %v3209_v44 = vpop.permute.xlu2 %3208 }
0x1f2d   :  { %v3219_v17 = vmul.f32 %v3209_v44, %v3151_v8 }
0x1f2f   :  { %v6454_v33 = vpack.i.bf16 %v3219_v17, %v3218_v20 }
0x1f31   :  { %4377 = vrot.lane.b32.xlu2 %v6454_v33, %s4821_s17 }
0x1f34   :  { %v3211_v49 = vpop.permute.xlu0 %3210 }
0x1f35   :  { %v3220_v26 = vmul.f32 %v3211_v49, %v3152_v37 }
0x1f39   :  { %4392 = vrot.lane.b32.xlu2 %v4391_v38, %s4823_s13 }
0x1f3c   :  { %v3213_v32 = vpop.permute.xlu1 %3212  ;;  %v4383_v56 = vpop.permute.xlu0 %4382 }
0x1f3d   :  { %v3221_v6 = vmul.f32 %v3213_v32, %v3153_v31  ;;  %v4385_v38 = vunpack.i.h.bf16 %v4383_v56  ;;  %v4384_v53 = vunpack.i.l.bf16 %v4383_v56 }
0x1f3f   :  { %v6465_v0 = vpack.i.bf16 %v3221_v6, %v3220_v26 }
0x1f41   :  { %4387 = vrot.lane.b32.xlu1 %v6465_v0, %s4821_s17 }
0x1f8b   :  { %v4378_v60 = vpop.permute.xlu2 %4377 }
0x1f8c   :  { %v4380_v51 = vunpack.i.h.bf16 %v4378_v60  ;;  %v4379_v21 = vunpack.i.l.bf16 %v4378_v60 }
0x1f8e   :  { %v3254_v59 = vsel %vm197_vm6, %v4379_v21, %v4384_v53  ;;  %v3255_v23 = vsel %vm197_vm6, %v4380_v51, %v4385_v38 }
0x1f8f   :  { %v3258_v46 = vsel %vm202_vm7, %v3254_v59, 1.0  ;;  %v3259_v2 = vsel %vm202_vm7, %v3255_v23, 1.0 }
0x1f90   :  { %v3262_v31 = vpack.c.bf16 %v3259_v2, %v3258_v46 }
0x1f92   :  { %4006 = vmatmul.msk.bf16.vlgmr.msrb.gmra.mxu3 %vm245_vm8, %v3262_v31 }
0x1f93   :  { %v4393_v15 = vpop.permute.xlu2 %4392 }
0x1f94   :  { %v4395_v30 = vunpack.i.h.bf16 %v4393_v15  ;;  %v4394_v57 = vunpack.i.l.bf16 %v4393_v15 }
0x1fb3   :  { %v4388_v14 = vpop.permute.xlu1 %4387 }
0x1fb4   :  { %v4390_v34 = vunpack.i.h.bf16 %v4388_v14  ;;  %v4389_v8 = vunpack.i.l.bf16 %v4388_v14 }
0x1fb6   :  { %v3256_v55 = vsel %vm197_vm6, %v4389_v8, %v4394_v57  ;;  %v3257_v39 = vsel %vm197_vm6, %v4390_v34, %v4395_v30 }
0x1fb7   :  { %v3260_v63 = vsel %vm202_vm7, %v3256_v55, 1.0  ;;  %v3261_v37 = vsel %vm202_vm7, %v3257_v39, 1.0 }
0x1fb8   :  { %v3263_v27 = vpack.c.bf16 %v3261_v37, %v3260_v63 }
0x1fba   :  { %4007 = vmatmul.msk.bf16.gmra.mxu3 %vm245_vm8, %v3263_v27 }
0x2015   :  { %v3318_v42 = vpop.f32.mrf.mxu3 }
0x2016   :  { %4763 = vtanh.f32 %v3318_v42 }
0x201c   :  { %v4764_v52 = vpop.eup %4763 }
0x201d   :  { %3348 = vrot.lane.b32.xlu0 %v4764_v52, %s4819_s15  ;;  %v3320_v47 = vpop.f32.mrf.mxu3  ;;  %v3332_v13 = vmul.f32 0.5, %v4764_v52  ;;  %v4075_v52 = vld [vmem:[%s6670_s3 + $0x8] sm:$0xff] }
0x201e   :  { %4765 = vtanh.f32 %v3320_v47  ;;  %v4074_v47 = vld [vmem:[%s6670_s3] sm:$0xff] }
0x201f   :  { %v3336_v11 = vadd.f32 0.5, %v3332_v13 }
0x2021   :  { %v3340_v18 = vmul.f32 %v3336_v11, %v6329_v48 }
0x2024   :  { %v4766_v5 = vpop.eup %4765 }
0x2025   :  { %3350 = vrot.lane.b32.xlu1 %v4766_v5, %s4819_s15  ;;  %v3333_v1 = vmul.f32 0.5, %v4766_v5 }
0x2027   :  { %v3337_v50 = vadd.f32 0.5, %v3333_v1 }
0x2029   :  { %v3341_v49 = vmul.f32 %v3337_v50, %v6333_v29 }
0x203d   :  { %v3323_v35 = vpop.f32.mrf.mxu3 }
0x203e   :  { %4767 = vtanh.f32 %v3323_v35 }
0x2044   :  { %v4768_v7 = vpop.eup %4767 }
0x2045   :  { %3352 = vrot.lane.b32.xlu2 %v4768_v7, %s4819_s15  ;;  %v3325_v40 = vpop.f32.mrf.mxu3  ;;  %v3334_v28 = vmul.f32 0.5, %v4768_v7 }
0x2046   :  { %4769 = vtanh.f32 %v3325_v40 }
0x2047   :  { %v3338_v9 = vadd.f32 0.5, %v3334_v28 }
0x2049   :  { %v3342_v29 = vmul.f32 %v3338_v9, %v6344_v43 }
0x204c   :  { %v4770_v16 = vpop.eup %4769 }
0x204d   :  { %3354 = vrot.lane.b32.xlu0 %v4770_v16, %s4819_s15  ;;  %v3335_v58 = vmul.f32 0.5, %v4770_v16 }
0x204f   :  { %v3339_v20 = vadd.f32 0.5, %v3335_v58 }
0x2051   :  { %v3343_v48 = vmul.f32 %v3339_v20, %v6339_v62 }
0x208f   :  { %v3349_v54 = vpop.permute.xlu0 %3348 }
0x2090   :  { %v3360_v3 = vmul.f32 %v3349_v54, %v3336_v11 }
0x2092   :  { %3368 = vrot.lane.b32.xlu1 %v3360_v3, %s4819_s15 }
0x2097   :  { %v3351_v41 = vpop.permute.xlu1 %3350 }
0x2098   :  { %v3361_v25 = vmul.f32 %v3351_v41, %v3337_v50 }
0x209a   :  { %3370 = vrot.lane.b32.xlu2 %v3361_v25, %s4819_s15 }
0x209f   :  { %v3353_v61 = vpop.permute.xlu2 %3352 }
0x20a0   :  { %v3362_v44 = vmul.f32 %v3353_v61, %v3338_v9 }
0x20a2   :  { %3372 = vrot.lane.b32.xlu0 %v3362_v44, %s4819_s15 }
0x20bf   :  { %v3355_v17 = vpop.permute.xlu0 %3354 }
0x20c0   :  { %v3363_v19 = vmul.f32 %v3355_v17, %v3339_v20 }
0x20c2   :  { %3374 = vrot.lane.b32.xlu1 %v3363_v19, %s4819_s15 }
0x20f4   :  { %v3371_v32 = vpop.permute.xlu2 %3370 }
0x20f5   :  { %v6493_v26 = vadd.f32 %v3371_v32, %v3341_v49 }
0x20f7   :  { %4771 = vtanh.f32 %v6493_v26 }
0x20fd   :  { %v4772_v6 = vpop.eup %4771 }
0x20fe   :  { %3394 = vrot.lane.b32.xlu0 %v4772_v6, %s4819_s15 }
0x2104   :  { %v3369_v56 = vpop.permute.xlu1 %3368 }
0x2105   :  { %v6498_v60 = vadd.f32 %v3369_v56, %v3340_v18 }
0x2107   :  { %4773 = vtanh.f32 %v6498_v60 }
0x210d   :  { %v4774_v38 = vpop.eup %4773 }
0x210e   :  { %3392 = vrot.lane.b32.xlu2 %v4774_v38, %s4819_s15 }
0x2114   :  { %v3373_v53 = vpop.permute.xlu0 %3372 }
0x2115   :  { %v6503_v51 = vadd.f32 %v3373_v53, %v3342_v29 }
0x2117   :  { %4775 = vtanh.f32 %v6503_v51 }
0x211d   :  { %v4776_v21 = vpop.eup %4775 }
0x211e   :  { %3396 = vrot.lane.b32.xlu1 %v4776_v21, %s4819_s15 }
0x2134   :  { %v3375_v59 = vpop.permute.xlu1 %3374 }
0x2135   :  { %v6508_v23 = vadd.f32 %v3375_v59, %v3343_v48 }
0x2137   :  { %4777 = vtanh.f32 %v6508_v23 }
0x213d   :  { %v4778_v46 = vpop.eup %4777 }
0x213e   :  { %3398 = vrot.lane.b32.xlu2 %v4778_v46, %s4819_s15 }
0x2146   :  { %4397 = vrot.lane.b32.xlu2 %v6454_v33, %s4820_s16 }
0x2168   :  { %v3393_v43 = vpop.permute.xlu2 %3392 }
0x2169   :  { %v6514_v31 = vmul.f32 %v3393_v43, %v3336_v11 }
0x2170   :  { %v3395_v2 = vpop.permute.xlu0 %3394 }
0x2171   :  { %v6516_v15 = vmul.f32 %v3395_v2, %v3337_v50 }
0x2173   :  { %v4411_v62 = vpack.i.bf16 %v6516_v15, %v6514_v31  ;;  %v3408_v14 = vpack.c.bf16 %v6516_v15, %v6514_v31  ;;  %v4079_v15 = vld [vmem:[%s6671_s4 + $0x18] sm:$0xff] }
0x2175   :  { %3412 = vrot.lane.b32.xlu0 %v3408_v14, %s4821_s17 }
0x217d   :  { %4402 = vrot.lane.b32.xlu0 %v6465_v0, %s4820_s16  ;;  %v3472_v0 = vld [vmem:[%s6670_s3 + $0x10] sm:$0x7] }
0x217e   :  { %v3482_v37 = vunpack.c.l.b16 %v3472_v0 }
0x2180   :  { %v3485_v27 = vpack.c.b16 %v3482_v37, %v3482_v37 }
0x2182   :  { %v3495_v42 = vand.u32 %v3485_v27, %v4867_v4 }
0x2184   :  { %3502 = vmatpush.bf16.msra.mxu2 %v3495_v42 }
0x2188   :  { %3503 = vmatpush.bf16.msra.mxu2 %v4075_v52 }
0x218c   :  { %3504 = vmatpush.bf16.msra.mxu2 %v4074_v47 }
0x2190   :  { %v3397_v30 = vpop.permute.xlu1 %3396 }
0x2191   :  { %v6525_v33 = vmul.f32 %v3397_v30, %v3338_v9 }
0x2198   :  { %v3399_v57 = vpop.permute.xlu2 %3398 }
0x2199   :  { %v6527_v34 = vmul.f32 %v3399_v57, %v3339_v20 }
0x219b   :  { %v4421_v8 = vpack.i.bf16 %v6527_v34, %v6525_v33  ;;  %v3409_v55 = vpack.c.bf16 %v6527_v34, %v6525_v33  ;;  %v4077_v33 = vld [vmem:[%s6671_s4 + $0x8] sm:$0xff] }
0x219d   :  { %3414 = vrot.lane.b32.xlu1 %v3409_v55, %s4821_s17 }
0x21a0   :  { %v4398_v4 = vpop.permute.xlu2 %4397 }
0x21a1   :  { %v4399_v7 = vunpack.i.l.bf16 %v4398_v4  ;;  %v4400_v16 = vunpack.i.h.bf16 %v4398_v4 }
0x21e7   :  { %v3413_v39 = vpop.permute.xlu0 %3412 }
0x21e8   :  { %4008 = vmatmul.msk.bf16.vlgmr.msra.gmra.mxu0 %vm197_vm6, %v3413_v39 }
0x21ef   :  { %v4403_v28 = vpop.permute.xlu0 %4402 }
0x21f0   :  { %v4404_v9 = vunpack.i.l.bf16 %v4403_v28  ;;  %v4405_v44 = vunpack.i.h.bf16 %v4403_v28 }
0x220f   :  { %v3415_v63 = vpop.permute.xlu1 %3414 }
0x2210   :  { %4009 = vmatmul.msk.bf16.gmra.mxu0 %vm197_vm6, %v3415_v63 }
0x2265   :  { %v3431_v5 = vpop.f32.mrf.mxu0 }
0x2266   :  { %v3432_v35 = vadd.f32 %v6216_v24, %v3431_v5 }
0x2268   :  { %4010 = vst.msk [vmem:[%s6674_s7 + $0x40] sm:$0xff] %vm36_vm2, %v3432_v35  ;;  %v3458_v13 = vsel %vm36_vm2, %v3432_v35, %v4399_v7 }
0x2269   :  { %v3462_v3 = vsel %vm41_vm3, %v3458_v13, 1.0 }
0x226d   :  { %v3433_v40 = vpop.f32.mrf.mxu0 }
0x226e   :  { %v3434_v11 = vadd.f32 %v6216_v24, %v3433_v40 }
0x2270   :  { %4011 = vst.msk [vmem:[%s6674_s7 + $0x48] sm:$0xff] %vm36_vm2, %v3434_v11  ;;  %v3459_v54 = vsel %vm36_vm2, %v3434_v11, %v4400_v16 }
0x2271   :  { %v3463_v1 = vsel %vm41_vm3, %v3459_v54, 1.0 }
0x2272   :  { %v3466_v50 = vpack.c.bf16 %v3463_v1, %v3462_v3 }
0x2274   :  { %4022 = vmatmul.msk.bf16.vlgmr.msra.gmra.mxu2 %vm68_vm4, %v3466_v50 }
0x228d   :  { %v3436_v41 = vpop.f32.mrf.mxu0 }
0x228e   :  { %v3437_v25 = vadd.f32 %v6216_v24, %v3436_v41 }
0x2290   :  { %4012 = vst.msk [vmem:[%s6674_s7 + $0x50] sm:$0xff] %vm36_vm2, %v3437_v25  ;;  %v3460_v58 = vsel %vm36_vm2, %v3437_v25, %v4404_v9 }
0x2291   :  { %v3464_v19 = vsel %vm41_vm3, %v3460_v58, 1.0 }
0x2295   :  { %v3438_v61 = vpop.f32.mrf.mxu0 }
0x2296   :  { %v3439_v20 = vadd.f32 %v6216_v24, %v3438_v61 }
0x2298   :  { %4013 = vst.msk [vmem:[%s6674_s7 + $0x58] sm:$0xff] %vm36_vm2, %v3439_v20  ;;  %v3461_v17 = vsel %vm36_vm2, %v3439_v20, %v4405_v44 }
0x2299   :  { %v3465_v49 = vsel %vm41_vm3, %v3461_v17, 1.0 }
0x229a   :  { %v3467_v32 = vpack.c.bf16 %v3465_v49, %v3464_v19  ;;  %v4076_v19 = vld [vmem:[%s6671_s4] sm:$0xff] }
0x229c   :  { %4023 = vmatmul.msk.bf16.gmra.mxu2 %vm68_vm4, %v3467_v32 }
0x22f7   :  { %v3506_v6 = vpop.f32.mrf.mxu2 }
0x22f8   :  { %4779 = vtanh.f32 %v3506_v6 }
0x22fe   :  { %v4780_v18 = vpop.eup %4779 }
0x22ff   :  { %3536 = vrot.lane.b32.xlu1 %v4780_v18, %s4819_s15  ;;  %v3508_v24 = vpop.f32.mrf.mxu2  ;;  %v3520_v2 = vmul.f32 0.5, %v4780_v18 }
0x2300   :  { %4781 = vtanh.f32 %v3508_v24 }
0x2301   :  { %v3524_v14 = vadd.f32 0.5, %v3520_v2 }
0x2303   :  { %v3528_v47 = vmul.f32 %v3524_v14, %v6421_v45 }
0x2306   :  { %v4782_v56 = vpop.eup %4781 }
0x2307   :  { %3538 = vrot.lane.b32.xlu2 %v4782_v56, %s4819_s15  ;;  %v3521_v48 = vmul.f32 0.5, %v4782_v56 }
0x2309   :  { %v3525_v59 = vadd.f32 0.5, %v3521_v48 }
0x230b   :  { %v3529_v4 = vmul.f32 %v3525_v59, %v6435_v22 }
0x231f   :  { %v3511_v38 = vpop.f32.mrf.mxu2 }
0x2320   :  { %4783 = vtanh.f32 %v3511_v38 }
0x2326   :  { %v4784_v29 = vpop.eup %4783 }
0x2327   :  { %3540 = vrot.lane.b32.xlu0 %v4784_v29, %s4819_s15  ;;  %v3513_v53 = vpop.f32.mrf.mxu2  ;;  %v3522_v55 = vmul.f32 0.5, %v4784_v29 }
0x2328   :  { %4785 = vtanh.f32 %v3513_v53 }
0x2329   :  { %v3526_v39 = vadd.f32 0.5, %v3522_v55 }
0x232b   :  { %v3530_v1 = vmul.f32 %v3526_v39, %v6426_v36  ;;  %v3646_v36 = vld [vmem:[%s6671_s4 + $0x20] sm:$0x1] }
0x232c   :  { %v3664_v44 = vunpack.c.l.b16 %v3646_v36 }
0x232e   :  { %v4786_v21 = vpop.eup %4785  ;;  %v3669_v58 = vpack.c.b16 %v3664_v44, %v3664_v44 }
0x232f   :  { %3542 = vrot.lane.b32.xlu1 %v4786_v21, %s4819_s15  ;;  %v3523_v37 = vmul.f32 0.5, %v4786_v21 }
0x2330   :  { %v3681_v31 = vand.u32 %v3669_v58, %v4949_v10 }
0x2331   :  { %v3527_v27 = vadd.f32 0.5, %v3523_v37 }
0x2332   :  { %3686 = vmatpush.bf16.msra.mxu1 %v3681_v31 }
0x2333   :  { %v3531_v11 = vmul.f32 %v3527_v27, %v6430_v12 }
0x2336   :  { %3687 = vmatpush.bf16.msra.mxu1 %v4079_v15 }
0x2361   :  { %v3539_v46 = vpop.permute.xlu2 %3538 }
0x2362   :  { %v3549_v43 = vmul.f32 %v3539_v46, %v3525_v59 }
0x2364   :  { %3558 = vrot.lane.b32.xlu0 %v3549_v43, %s4819_s15 }
0x2371   :  { %v3537_v30 = vpop.permute.xlu1 %3536 }
0x2372   :  { %v3548_v57 = vmul.f32 %v3537_v30, %v3524_v14 }
0x2374   :  { %3556 = vrot.lane.b32.xlu2 %v3548_v57, %s4819_s15 }
0x2399   :  { %v3541_v63 = vpop.permute.xlu0 %3540 }
0x239a   :  { %v3550_v0 = vmul.f32 %v3541_v63, %v3526_v39 }
0x239c   :  { %3560 = vrot.lane.b32.xlu1 %v3550_v0, %s4819_s15 }
0x23a1   :  { %v3543_v42 = vpop.permute.xlu1 %3542 }
0x23a2   :  { %v3551_v52 = vmul.f32 %v3543_v42, %v3527_v27 }
0x23a4   :  { %3562 = vrot.lane.b32.xlu2 %v3551_v52, %s4819_s15 }
0x23ce   :  { %v3557_v5 = vpop.permute.xlu2 %3556 }
0x23cf   :  { %v3568_v35 = vadd.f32 %v3557_v5, %v3528_v47 }
0x23d1   :  { %4787 = vtanh.f32 %v3568_v35 }
0x23d6   :  { %v3559_v7 = vpop.permute.xlu0 %3558 }
0x23d7   :  { %v4788_v40 = vpop.eup %4787  ;;  %v3569_v16 = vadd.f32 %v3559_v7, %v3529_v4 }
0x23d8   :  { %3580 = vrot.lane.b32.xlu0 %v4788_v40, %s4819_s15 }
0x23d9   :  { %4789 = vtanh.f32 %v3569_v16 }
0x23df   :  { %v4790_v13 = vpop.eup %4789 }
0x23e0   :  { %3582 = vrot.lane.b32.xlu1 %v4790_v13, %s4819_s15 }
0x23fe   :  { %v3563_v54 = vpop.permute.xlu2 %3562 }
0x23ff   :  { %v3571_v3 = vadd.f32 %v3563_v54, %v3531_v11 }
0x2401   :  { %4791 = vtanh.f32 %v3571_v3 }
0x2407   :  { %v4792_v45 = vpop.eup %4791 }
0x2408   :  { %3586 = vrot.lane.b32.xlu0 %v4792_v45, %s4819_s15 }
0x240e   :  { %v3561_v22 = vpop.permute.xlu1 %3560 }
0x240f   :  { %v3570_v50 = vadd.f32 %v3561_v22, %v3530_v1 }
0x2411   :  { %4793 = vtanh.f32 %v3570_v50 }
0x2417   :  { %v4794_v41 = vpop.eup %4793 }
0x2418   :  { %3584 = vrot.lane.b32.xlu2 %v4794_v41, %s4819_s15 }
0x2420   :  { %4412 = vrot.lane.b32.xlu2 %v4411_v62, %s4823_s13  ;;  %v4078_v62 = vld [vmem:[%s6671_s4 + $0x10] sm:$0xff] }
0x2421   :  { %3688 = vmatpush.bf16.msra.mxu1 %v4078_v62 }
0x2425   :  { %3689 = vmatpush.bf16.msra.mxu1 %v4077_v33 }
0x2429   :  { %3690 = vmatpush.bf16.msra.mxu1 %v4076_v19 }
0x244a   :  { %v3581_v12 = vpop.permute.xlu0 %3580 }
0x244b   :  { %v3592_v28 = vmul.f32 %v3581_v12, %v3524_v14 }
0x2452   :  { %v3583_v25 = vpop.permute.xlu1 %3582 }
0x2453   :  { %v3593_v9 = vmul.f32 %v3583_v25, %v3525_v59 }
0x2455   :  { %v4406_v61 = vpack.i.bf16 %v3593_v9, %v3592_v28 }
0x2457   :  { %4407 = vrot.lane.b32.xlu1 %v4406_v61, %s4821_s17 }
0x245f   :  { %4422 = vrot.lane.b32.xlu1 %v4421_v8, %s4823_s13 }
0x2472   :  { %v3585_v34 = vpop.permute.xlu2 %3584 }
0x2473   :  { %v3594_v20 = vmul.f32 %v3585_v34, %v3526_v39 }
0x247a   :  { %v3587_v8 = vpop.permute.xlu0 %3586  ;;  %v4413_v49 = vpop.permute.xlu2 %4412 }
0x247b   :  { %v3595_v10 = vmul.f32 %v3587_v8, %v3527_v27  ;;  %v4415_v6 = vunpack.i.h.bf16 %v4413_v49  ;;  %v4414_v18 = vunpack.i.l.bf16 %v4413_v49 }
0x247d   :  { %v4416_v17 = vpack.i.bf16 %v3595_v10, %v3594_v20 }
0x247f   :  { %4417 = vrot.lane.b32.xlu0 %v4416_v17, %s4821_s17 }
0x24c9   :  { %v4408_v32 = vpop.permute.xlu1 %4407 }
0x24ca   :  { %v4410_v24 = vunpack.i.h.bf16 %v4408_v32  ;;  %v4409_v56 = vunpack.i.l.bf16 %v4408_v32 }
0x24cc   :  { %v3628_v38 = vsel %vm197_vm6, %v4409_v56, %v4414_v18  ;;  %v3629_v29 = vsel %vm197_vm6, %v4410_v24, %v4415_v6 }
0x24cd   :  { %v3632_v53 = vsel %vm202_vm7, %v3628_v38, 1.0  ;;  %v3633_v21 = vsel %vm202_vm7, %v3629_v29, 1.0 }
0x24ce   :  { %v3636_v48 = vpack.c.bf16 %v3633_v21, %v3632_v53 }
0x24d0   :  { %4040 = vmatmul.msk.bf16.vlgmr.msra.gmra.mxu1 %vm245_vm8, %v3636_v48 }
0x24d1   :  { %v4423_v59 = vpop.permute.xlu1 %4422 }
0x24d2   :  { %v4425_v43 = vunpack.i.h.bf16 %v4423_v59  ;;  %v4424_v2 = vunpack.i.l.bf16 %v4423_v59  ;;  %v4817_v59 = vld [vmem:[%s6673_s6] ss:$0 sm:$0xff] }
0x24f1   :  { %v4418_v46 = vpop.permute.xlu0 %4417 }
0x24f2   :  { %v4420_v14 = vunpack.i.h.bf16 %v4418_v46  ;;  %v4419_v30 = vunpack.i.l.bf16 %v4418_v46 }
0x24f4   :  { %v3631_v57 = vsel %vm197_vm6, %v4420_v14, %v4425_v43  ;;  %v3630_v55 = vsel %vm197_vm6, %v4419_v30, %v4424_v2 }
0x24f5   :  { %v3635_v39 = vsel %vm202_vm7, %v3631_v57, 1.0  ;;  %v3634_v63 = vsel %vm202_vm7, %v3630_v55, 1.0 }
0x24f6   :  { %v3637_v0 = vpack.c.bf16 %v3635_v39, %v3634_v63 }
0x24f8   :  { %4041 = vmatmul.msk.bf16.gmra.mxu1 %vm245_vm8, %v3637_v0 }
0x254d   :  { %v3692_v37 = vpop.f32.mrf.mxu1 }
0x254e   :  { %4795 = vtanh.f32 %v3692_v37 }
0x2554   :  { %v4796_v27 = vpop.eup %4795 }
0x2555   :  { %3722 = vrot.lane.b32.xlu2 %v4796_v27, %s4819_s15  ;;  %v3694_v42 = vpop.f32.mrf.mxu1  ;;  %v3706_v7 = vmul.f32 0.5, %v4796_v27 }
0x2556   :  { %4797 = vtanh.f32 %v3694_v42 }
0x2557   :  { %v3710_v40 = vadd.f32 0.5, %v3706_v7 }
0x2559   :  { %v3714_v61 = vmul.f32 %v3710_v40, %v6498_v60 }
0x255c   :  { %v4798_v52 = vpop.eup %4797 }
0x255d   :  { %3724 = vrot.lane.b32.xlu0 %v4798_v52, %s4819_s15  ;;  %v3707_v11 = vmul.f32 0.5, %v4798_v52 }
0x255f   :  { %v3711_v54 = vadd.f32 0.5, %v3707_v11 }
0x2561   :  { %v3715_v31 = vmul.f32 %v3711_v54, %v6493_v26 }
0x2575   :  { %v3697_v47 = vpop.f32.mrf.mxu1 }
0x2576   :  { %4799 = vtanh.f32 %v3697_v47 }
0x257c   :  { %v4800_v5 = vpop.eup %4799 }
0x257d   :  { %3726 = vrot.lane.b32.xlu1 %v4800_v5, %s4819_s15  ;;  %v3699_v35 = vpop.f32.mrf.mxu1  ;;  %v3708_v12 = vmul.f32 0.5, %v4800_v5 }
0x257e   :  { %4801 = vtanh.f32 %v3699_v35 }
0x257f   :  { %v3712_v25 = vadd.f32 0.5, %v3708_v12 }
0x2581   :  { %v3716_v33 = vmul.f32 %v3712_v25, %v6503_v51 }
0x2584   :  { %v4802_v4 = vpop.eup %4801 }
0x2585   :  { %3728 = vrot.lane.b32.xlu2 %v4802_v4, %s4819_s15  ;;  %v3709_v1 = vmul.f32 0.5, %v4802_v4 }
0x2587   :  { %v3713_v22 = vadd.f32 0.5, %v3709_v1 }
0x2589   :  { %v3717_v60 = vmul.f32 %v3713_v22, %v6508_v23 }
0x25af   :  { %v3723_v16 = vpop.permute.xlu2 %3722 }
0x25b0   :  { %v3734_v13 = vmul.f32 %v3723_v16, %v3710_v40 }
0x25b2   :  { %3742 = vrot.lane.b32.xlu0 %v3734_v13, %s4819_s15 }
0x25cf   :  { %v3725_v3 = vpop.permute.xlu0 %3724 }
0x25d0   :  { %v3735_v45 = vmul.f32 %v3725_v3, %v3711_v54 }
0x25d2   :  { %3744 = vrot.lane.b32.xlu1 %v3735_v45, %s4819_s15 }
0x25df   :  { %v3729_v50 = vpop.permute.xlu2 %3728 }
0x25e0   :  { %v3737_v41 = vmul.f32 %v3729_v50, %v3713_v22 }
0x25e2   :  { %3748 = vrot.lane.b32.xlu0 %v3737_v41, %s4819_s15 }
0x25ef   :  { %v3727_v28 = vpop.permute.xlu1 %3726 }
0x25f0   :  { %v3736_v9 = vmul.f32 %v3727_v28, %v3712_v25 }
0x25f2   :  { %3746 = vrot.lane.b32.xlu2 %v3736_v9, %s4819_s15 }
0x2624   :  { %v3743_v36 = vpop.permute.xlu0 %3742 }
0x2625   :  { %v3754_v44 = vadd.f32 %v3743_v36, %v3714_v61 }
0x2627   :  { %4803 = vtanh.f32 %v3754_v44 }
0x262d   :  { %v4804_v58 = vpop.eup %4803 }
0x262e   :  { %3766 = vrot.lane.b32.xlu1 %v4804_v58, %s4819_s15 }
0x2644   :  { %v3745_v15 = vpop.permute.xlu1 %3744 }
0x2645   :  { %v3755_v62 = vadd.f32 %v3745_v15, %v3715_v31 }
0x2647   :  { %4805 = vtanh.f32 %v3755_v62 }
0x264c   :  { %v3747_v34 = vpop.permute.xlu2 %3746 }
0x264d   :  { %v4806_v8 = vpop.eup %4805  ;;  %v3756_v20 = vadd.f32 %v3747_v34, %v3716_v33 }
0x264e   :  { %3768 = vrot.lane.b32.xlu2 %v4806_v8, %s4819_s15 }
0x264f   :  { %4807 = vtanh.f32 %v3756_v20 }
0x2654   :  { %v3749_v10 = vpop.permute.xlu0 %3748 }
0x2655   :  { %v4808_v17 = vpop.eup %4807  ;;  %v3757_v19 = vadd.f32 %v3749_v10, %v3717_v60 }
0x2656   :  { %3770 = vrot.lane.b32.xlu0 %v4808_v17, %s4819_s15 }
0x2657   :  { %4809 = vtanh.f32 %v3757_v19 }
0x265d   :  { %v4810_v26 = vpop.eup %4809 }
0x265e   :  { %3772 = vrot.lane.b32.xlu1 %v4810_v26, %s4819_s15 }
0x26a0   :  { %v3767_v49 = vpop.permute.xlu1 %3766 }
0x26a1   :  { %v3778_v51 = vmul.f32 %v3767_v49, %v3710_v40 }
0x26a8   :  { %v3769_v32 = vpop.permute.xlu2 %3768 }
0x26a9   :  { %v3779_v6 = vmul.f32 %v3769_v32, %v3711_v54 }
0x26ab   :  { %v3782_v18 = vpack.c.bf16 %v3779_v6, %v3778_v51 }
0x26ad   :  { %3786 = vrot.lane.b32.xlu2 %v3782_v18, %s4821_s17 }
0x26c8   :  { %v3771_v24 = vpop.permute.xlu0 %3770 }
0x26c9   :  { %v3780_v38 = vmul.f32 %v3771_v24, %v3712_v25 }
0x26d0   :  { %v3773_v56 = vpop.permute.xlu1 %3772 }
0x26d1   :  { %v3781_v23 = vmul.f32 %v3773_v56, %v3713_v22 }
0x26d3   :  { %v3783_v29 = vpack.c.bf16 %v3781_v23, %v3780_v38 }
0x26d5   :  { %3788 = vrot.lane.b32.xlu0 %v3783_v29, %s4821_s17 }
0x2707   :  { %v3787_v53 = vpop.permute.xlu2 %3786 }
0x2708   :  { %4042 = vmatmul.msk.bf16.vlgmr.msra.gmra.mxu3 %vm197_vm6, %v3787_v53 }
0x2747   :  { %v3789_v21 = vpop.permute.xlu0 %3788 }
0x2748   :  { %4043 = vmatmul.msk.bf16.gmra.mxu3 %vm197_vm6, %v3789_v21 }
0x278b   :  { %v3805_v48 = vpop.f32.mrf.mxu3 }
0x278c   :  { %v3806_v46 = vadd.f32 %v4817_v59, %v3805_v48 }
0x278e   :  { %4044 = vst.msk [vmem:[%s6674_s7 + $0x60] sm:$0xff] %vm36_vm2, %v3806_v46 }
0x2793   :  { %v3807_v43 = vpop.f32.mrf.mxu3 }
0x2794   :  { %v3808_v2 = vadd.f32 %v4817_v59, %v3807_v43 }
0x2796   :  { %4045 = vst.msk [vmem:[%s6674_s7 + $0x68] sm:$0xff] %vm36_vm2, %v3808_v2 }
0x27cb   :  { %v3810_v14 = vpop.f32.mrf.mxu3 }
0x27cc   :  { %v3811_v30 = vadd.f32 %v4817_v59, %v3810_v14 }
0x27ce   :  { %4046 = vst.msk [vmem:[%s6674_s7 + $0x70] sm:$0xff] %vm36_vm2, %v3811_v30 }
0x27d3   :  { %v3812_v57 = vpop.f32.mrf.mxu3 }
0x27d4   :  { %v3813_v55 = vadd.f32 %v4817_v59, %v3812_v57 }
0x27d6   :  { %4047 = vst.msk [vmem:[%s6674_s7 + $0x78] sm:$0xff] %vm36_vm2, %v3813_v55 }

</bundles_post_ra>
